<compile_context>
chip_gen: v7x
topology: tpu7x:2x2x1
jax: 0.10.0
libtpu: 0.0.40
codegen_flags: <defaults>
</compile_context>

<pallas_src>
import math
from itertools import combinations

import numpy as np
import jax
import jax.numpy as jnp
from jax import lax
from jax.experimental import pallas as pl
from jax.experimental.pallas import tpu as pltpu


# ----------------------------------------------------------------------------
# Fused kernel: k|v projection + LayerNorm(key) + per-class cross attention
# + negative squared-Frobenius distance logits (in unique-label order).
# ----------------------------------------------------------------------------
def _make_fused_kernel(*, d_out, n_support_rows, n_query_rows, rows_per_class,
                       n_classes, n_queries, tuples_len):
    scale = 1.0 / math.sqrt(d_out)
    neg_inv_t = -1.0 / float(tuples_len)

    def kernel(x_ref, w_ref, b_ref, g_ref, bln_ref, out_ref):
        # Fused k|v projection: one MXU stream over the (K_in, 2*d_out) weight.
        kv = jnp.dot(x_ref[...], w_ref[...],
                     preferred_element_type=jnp.float32) + b_ref[...]
        k = kv[:, :d_out]
        v = kv[:, d_out:]

        # LayerNorm on the key branch only (norm_k); norm_v exists in __init__
        # but is never applied in the PyTorch forward.
        mean = jnp.mean(k, axis=-1, keepdims=True)
        var = jnp.mean((k - mean) ** 2, axis=-1, keepdims=True)
        kn = (k - mean) * lax.rsqrt(var + 1e-5) * g_ref[...] + bln_ref[...]

        # Query rows live after the class-sorted support rows.
        q0 = n_support_rows
        qk = kn[q0:q0 + n_query_rows] * scale        # fold 1/sqrt(D) into queries
        qv = v[q0:q0 + n_query_rows]                 # [nq*T, D]

        # Grouping matrix (built from iota, no extra input DMA): row q carries
        # -1/T on its T tuple columns, so gmat @ rowsq = -||diff_q||_F^2 / T.
        q_idx = lax.broadcasted_iota(jnp.int32, (n_queries, n_query_rows), 0)
        r_idx = lax.broadcasted_iota(jnp.int32, (n_queries, n_query_rows), 1)
        in_group = (r_idx >= q_idx * tuples_len) & (r_idx < (q_idx + 1) * tuples_len)
        gmat = jnp.where(in_group, jnp.float32(neg_inv_t), jnp.float32(0.0))

        col = lax.broadcasted_iota(jnp.int32, (n_queries, n_classes), 1)
        out_val = jnp.zeros((n_queries, n_classes), jnp.float32)
        for c in range(n_classes):                   # static unroll; way is small
            r0 = c * rows_per_class
            kc = kn[r0:r0 + rows_per_class]          # [shot*T, D]
            vc = v[r0:r0 + rows_per_class]           # [shot*T, D]
            # scaled scores + softmax over this class' shot*T keys
            s = lax.dot_general(qk, kc, (((1,), (1,)), ((), ())),
                                preferred_element_type=jnp.float32)
            m = jnp.max(s, axis=-1, keepdims=True)
            e = jnp.exp(s - m)
            a = e * pl.reciprocal(jnp.sum(e, axis=-1, keepdims=True), approx=True)
            proto = jnp.dot(a, vc, preferred_element_type=jnp.float32)  # [nq*T, D]
            diff = qv - proto
            rowsq = jnp.sum(diff * diff, axis=-1, keepdims=True)        # [nq*T, 1]
            dist = jnp.dot(gmat, rowsq, preferred_element_type=jnp.float32)  # [nq, 1]
            out_val = jnp.where(col == c, dist, out_val)
        out_ref[...] = out_val

    return kernel


def fused_tct_kernel(x_all, w_kv, b_kv, gamma, beta, *, d_out, n_support_rows,
                     n_query_rows, rows_per_class, n_classes, n_queries,
                     tuples_len):
    kernel = _make_fused_kernel(
        d_out=d_out, n_support_rows=n_support_rows, n_query_rows=n_query_rows,
        rows_per_class=rows_per_class, n_classes=n_classes,
        n_queries=n_queries, tuples_len=tuples_len)
    vmem = pltpu.MemorySpace.VMEM
    # TODO(synk): if d_out / episode size is scaled up, set
    # pltpu.CompilerParams(vmem_limit_bytes=...) and re-check against the v7x
    # 64 MiB VMEM; at the current ~4.8 MB footprint the defaults are ample.
    return pl.pallas_call(
        kernel,
        out_shape=jax.ShapeDtypeStruct((n_queries, n_classes), jnp.float32),
        in_specs=[pl.BlockSpec(memory_space=vmem)] * 5,
        out_specs=pl.BlockSpec(memory_space=vmem),
    )(x_all, w_kv, b_kv, gamma, beta)


# ----------------------------------------------------------------------------
# Plain-JAX glue (PE buffer, tuple gather, class sort) + parameters.
# ----------------------------------------------------------------------------
def positional_encoding(max_len, d_model, pe_scale_factor=0.1):
    position = np.arange(max_len, dtype=np.float32)[:, None]
    div_term = np.exp(np.arange(0, d_model, 2, dtype=np.float32)
                      * (-math.log(10000.0) / d_model))
    pe = np.zeros((max_len, d_model), dtype=np.float32)
    pe[:, 0::2] = np.sin(position * div_term) * pe_scale_factor
    pe[:, 1::2] = np.cos(position * div_term) * pe_scale_factor
    return jnp.asarray(pe)


def init_params(key, d_model, temporal_set_size, out_dim):
    in_dim = d_model * temporal_set_size
    bound = 1.0 / math.sqrt(in_dim)
    k1, k2, k3, k4 = jax.random.split(key, 4)
    return dict(
        wk=jax.random.uniform(k1, (in_dim, out_dim), jnp.float32, -bound, bound),
        bk=jax.random.uniform(k2, (out_dim,), jnp.float32, -bound, bound),
        wv=jax.random.uniform(k3, (in_dim, out_dim), jnp.float32, -bound, bound),
        bv=jax.random.uniform(k4, (out_dim,), jnp.float32, -bound, bound),
        ln_gamma=jnp.ones((out_dim,), jnp.float32),   # norm_k default init
        ln_beta=jnp.zeros((out_dim,), jnp.float32),
        # NOTE: norm_v exists in __init__ but is never used in forward.
    )


def temporal_cross_transformer_forward(params, support_set, support_labels,
                                       queries, *, seq_len, way,
                                       temporal_set_size=2):
    d_model = support_set.shape[-1]
    n_support = support_set.shape[0]
    n_queries = queries.shape[0]
    d_out = params["ln_gamma"].shape[0]

    # Positional encoding (pe_scale_factor=0.1).
    # TODO(synk): nn.Dropout(trans_dropout) is stochastic; eval-mode identity used.
    max_len = int(seq_len * 1.5)
    pe = positional_encoding(max_len, d_model)
    support_set = support_set + pe[None, :seq_len, :]
    queries = queries + pe[None, :seq_len, :]

    # Temporal tuple gather: combinations(seq_len, temporal_set_size).
    tuples = np.array(list(combinations(range(seq_len), temporal_set_size)),
                      dtype=np.int32)
    T = tuples.shape[0]
    s = support_set[:, tuples, :].reshape(n_support, T, temporal_set_size * d_model)
    q = queries[:, tuples, :].reshape(n_queries, T, temporal_set_size * d_model)

    # Class-sort the support videos (labels are host-side constants, mirroring
    # the torch per-class index_select loop) so each class is a contiguous
    # shot*T row block inside the fused kernel.
    labels_np = np.asarray(support_labels)
    unique_labels = np.unique(labels_np)
    class_indices = [np.where(labels_np == c)[0] for c in unique_labels]
    counts = {len(ci) for ci in class_indices}
    assert len(counts) == 1, "equal shot count per class is assumed"
    shot = counts.pop()
    perm = np.concatenate(class_indices).astype(np.int32)
    s_sorted = jnp.take(s, jnp.asarray(perm), axis=0)

    # One row slab for all projected rows (support first, then queries),
    # zero-padded to a sublane multiple; the k/v weight streams from HBM once.
    Rs, Rq = n_support * T, n_queries * T
    x_all = jnp.concatenate([s_sorted.reshape(Rs, -1), q.reshape(Rq, -1)], axis=0)
    R_pad = ((Rs + Rq + 7) // 8) * 8
    if R_pad > Rs + Rq:
        x_all = jnp.concatenate(
            [x_all,
             jnp.zeros((R_pad - Rs - Rq, x_all.shape[1]), x_all.dtype)], axis=0)

    # Fused k|v parameters: one (in_dim, 2*d_out) weight, one (1, 2*d_out) bias.
    w_kv = jnp.concatenate([params["wk"], params["wv"]], axis=1)
    b_kv = jnp.concatenate([params["bk"], params["bv"]]).reshape(1, -1)
    gamma = params["ln_gamma"].reshape(1, -1)
    beta = params["ln_beta"].reshape(1, -1)

    dist = fused_tct_kernel(
        x_all, w_kv, b_kv, gamma, beta, d_out=d_out, n_support_rows=Rs,
        n_query_rows=Rq, rows_per_class=shot * T,
        n_classes=unique_labels.shape[0], n_queries=n_queries, tuples_len=T)

    # Place each class' distances at the column given by its label value
    # (c_idx = c in the torch loop); unused columns stay zero like torch.zeros.
    logits = jnp.zeros((n_queries, way), jnp.float32)
    logits = logits.at[:, np.asarray(unique_labels, dtype=np.int32)].set(dist)
    return {"logits": logits}


# ----------------------------------------------------------------------------
# Pure-JAX reference (direct translation of the torch forward) for validation.
# ----------------------------------------------------------------------------
def _reference_forward(params, support_set, support_labels, queries, *,
                       seq_len, way, temporal_set_size=2):
    d_model = support_set.shape[-1]
    n_support = support_set.shape[0]
    n_queries = queries.shape[0]
    d_out = params["ln_gamma"].shape[0]

    max_len = int(seq_len * 1.5)
    pe = positional_encoding(max_len, d_model)
    support_set = support_set + pe[None, :seq_len, :]
    queries = queries + pe[None, :seq_len, :]
    tuples = np.array(list(combinations(range(seq_len), temporal_set_size)),
                      dtype=np.int32)
    T = tuples.shape[0]
    s = support_set[:, tuples, :].reshape(n_support, T, -1)
    q = queries[:, tuples, :].reshape(n_queries, T, -1)

    def ln(x):
        mu = jnp.mean(x, axis=-1, keepdims=True)
        var = jnp.mean((x - mu) ** 2, axis=-1, keepdims=True)
        return ((x - mu) * lax.rsqrt(var + 1e-5) * params["ln_gamma"]
                + params["ln_beta"])

    sk = ln(s @ params["wk"] + params["bk"])
    qk = ln(q @ params["wk"] + params["bk"])
    sv = s @ params["wv"] + params["bv"]
    qv = q @ params["wv"] + params["bv"]

    labels_np = np.asarray(support_labels)
    logits = jnp.zeros((n_queries, way), jnp.float32)
    for c in np.unique(labels_np):
        idx = np.where(labels_np == c)[0]
        kc = sk[idx].reshape(-1, d_out)
        vc = sv[idx].reshape(-1, d_out)
        scores = (qk.reshape(-1, d_out) @ kc.T) / math.sqrt(d_out)
        attn = jax.nn.softmax(scores, axis=-1)
        proto = (attn @ vc).reshape(n_queries, T, d_out)
        diff = qv - proto
        dist = -jnp.sum(diff * diff, axis=(1, 2)) / T
        logits = logits.at[:, int(c)].set(dist)
    return {"logits": logits}


if __name__ == "__main__":
    # args: seq_len=4, way=2, shot=2, trans_linear_out_dim=128, trans_dropout=0.1
    seq_len = 4
    way = 2
    shot = 2
    n_queries = 3
    out_dim = 128
    d_model = 2048            # hard-coded in the PyTorch module
    temporal_set_size = 2
    n_support = way * shot

    key = jax.random.PRNGKey(0)
    kp, ksup, kqry = jax.random.split(key, 3)
    params = init_params(kp, d_model, temporal_set_size, out_dim)
    support_set = jax.random.normal(ksup, (n_support, seq_len, d_model),
                                    jnp.float32) * 0.5
    queries = jax.random.normal(kqry, (n_queries, seq_len, d_model),
                                jnp.float32) * 0.5
    support_labels = jnp.array([0, 1, 0, 1], dtype=jnp.int32)

    out = temporal_cross_transformer_forward(
        params, support_set, support_labels, queries,
        seq_len=seq_len, way=way, temporal_set_size=temporal_set_size)
    logits = jax.block_until_ready(out["logits"])

    ref = _reference_forward(
        params, support_set, support_labels, queries,
        seq_len=seq_len, way=way, temporal_set_size=temporal_set_size)["logits"]
    ref = jax.block_until_ready(ref)

    assert logits.shape == (n_queries, way)
    assert bool(jnp.all(jnp.isfinite(logits)))
    # Loose tolerance: approx EUP reciprocal in the softmax + f32 reassociation.
    assert bool(jnp.allclose(logits, ref, rtol=5e-2, atol=5e-2)), (logits, ref)
    print("KERNEL_OK")
</pallas_src>

<mosaic_0001>
module attributes {stable_mosaic.version = 11 : i64} {
  func.func @kernel(%arg0: memref<48x4096xf32, #tpu.memory_space<vmem>>, %arg1: memref<4096x256xf32, #tpu.memory_space<vmem>>, %arg2: memref<1x256xf32, #tpu.memory_space<vmem>>, %arg3: memref<1x128xf32, #tpu.memory_space<vmem>>, %arg4: memref<1x128xf32, #tpu.memory_space<vmem>>, %arg5: memref<3x2xf32, #tpu.memory_space<vmem>>) attributes {dimension_semantics = [], scalar_prefetch = 0 : i64, scratch_operands = 0 : i64, tpu.core_type = #tpu.core_type<tc>} {
    %c0 = arith.constant 0 : index
    %c0_0 = arith.constant 0 : index
    %0 = vector.load %arg0[%c0, %c0_0] : memref<48x4096xf32, #tpu.memory_space<vmem>>, vector<48x4096xf32>
    %c0_1 = arith.constant 0 : index
    %c0_2 = arith.constant 0 : index
    %1 = vector.load %arg1[%c0_1, %c0_2] : memref<4096x256xf32, #tpu.memory_space<vmem>>, vector<4096x256xf32>
    %cst = arith.constant dense<0.000000e+00> : vector<48x256xf32>
    %2 = tpu.matmul %0, %1, %cst {dimension_numbers = #tpu.dot_dimension_numbers<[1], [0], [0], [1], [0, 0, 1, 1], [], []>} : vector<48x4096xf32>, vector<4096x256xf32>, vector<48x256xf32> -> vector<48x256xf32>
    %c0_3 = arith.constant 0 : index
    %c0_4 = arith.constant 0 : index
    %3 = vector.load %arg2[%c0_3, %c0_4] : memref<1x256xf32, #tpu.memory_space<vmem>>, vector<1x256xf32>
    %4 = vector.broadcast %3 : vector<1x256xf32> to vector<48x256xf32>
    %5 = arith.addf %2, %4 : vector<48x256xf32>
    %6 = vector.extract_strided_slice %5 {offsets = [0, 0], sizes = [48, 128], strides = [1, 1]} : vector<48x256xf32> to vector<48x128xf32>
    %7 = vector.extract_strided_slice %5 {offsets = [0, 128], sizes = [48, 128], strides = [1, 1]} : vector<48x256xf32> to vector<48x128xf32>
    %cst_5 = arith.constant dense<0.000000e+00> : vector<48xf32>
    %8 = vector.multi_reduction <add>, %6, %cst_5 [1] : vector<48x128xf32> to vector<48xf32>
    %9 = vector.shape_cast %8 : vector<48xf32> to vector<48x1xf32>
    %cst_6 = arith.constant 1.280000e+02 : f32
    %10 = vector.broadcast %cst_6 : f32 to vector<48x1xf32>
    %11 = arith.divf %9, %10 : vector<48x1xf32>
    %12 = vector.broadcast %11 : vector<48x1xf32> to vector<48x128xf32>
    %13 = arith.subf %6, %12 : vector<48x128xf32>
    %14 = arith.mulf %13, %13 : vector<48x128xf32>
    %cst_7 = arith.constant dense<0.000000e+00> : vector<48xf32>
    %15 = vector.multi_reduction <add>, %14, %cst_7 [1] : vector<48x128xf32> to vector<48xf32>
    %16 = vector.shape_cast %15 : vector<48xf32> to vector<48x1xf32>
    %cst_8 = arith.constant 1.280000e+02 : f32
    %17 = vector.broadcast %cst_8 : f32 to vector<48x1xf32>
    %18 = arith.divf %16, %17 : vector<48x1xf32>
    %19 = vector.broadcast %11 : vector<48x1xf32> to vector<48x128xf32>
    %20 = arith.subf %6, %19 : vector<48x128xf32>
    %cst_9 = arith.constant 9.99999974E-6 : f32
    %21 = vector.broadcast %cst_9 : f32 to vector<48x1xf32>
    %22 = arith.addf %18, %21 : vector<48x1xf32>
    %23 = math.rsqrt %22 : vector<48x1xf32>
    %24 = vector.broadcast %23 : vector<48x1xf32> to vector<48x128xf32>
    %25 = arith.mulf %20, %24 : vector<48x128xf32>
    %c0_10 = arith.constant 0 : index
    %c0_11 = arith.constant 0 : index
    %26 = vector.load %arg3[%c0_10, %c0_11] : memref<1x128xf32, #tpu.memory_space<vmem>>, vector<1x128xf32>
    %27 = vector.broadcast %26 : vector<1x128xf32> to vector<48x128xf32>
    %28 = arith.mulf %25, %27 : vector<48x128xf32>
    %c0_12 = arith.constant 0 : index
    %c0_13 = arith.constant 0 : index
    %29 = vector.load %arg4[%c0_12, %c0_13] : memref<1x128xf32, #tpu.memory_space<vmem>>, vector<1x128xf32>
    %30 = vector.broadcast %29 : vector<1x128xf32> to vector<48x128xf32>
    %31 = arith.addf %28, %30 : vector<48x128xf32>
    %32 = vector.extract_strided_slice %31 {offsets = [24, 0], sizes = [18, 128], strides = [1, 1]} : vector<48x128xf32> to vector<18x128xf32>
    %cst_14 = arith.constant 0.0883883461 : f32
    %33 = vector.broadcast %cst_14 : f32 to vector<18x128xf32>
    %34 = arith.mulf %32, %33 : vector<18x128xf32>
    %35 = vector.extract_strided_slice %7 {offsets = [24, 0], sizes = [18, 128], strides = [1, 1]} : vector<48x128xf32> to vector<18x128xf32>
    %36 = tpu.iota {dimensions = array<i32: 0>} : vector<3x18xi32>
    %37 = tpu.iota {dimensions = array<i32: 1>} : vector<3x18xi32>
    %c6_i32 = arith.constant 6 : i32
    %38 = vector.broadcast %c6_i32 : i32 to vector<3x18xi32>
    %39 = arith.muli %36, %38 : vector<3x18xi32>
    %40 = arith.cmpi sge, %37, %39 : vector<3x18xi32>
    %c1_i32 = arith.constant 1 : i32
    %41 = vector.broadcast %c1_i32 : i32 to vector<3x18xi32>
    %42 = arith.addi %36, %41 : vector<3x18xi32>
    %c6_i32_15 = arith.constant 6 : i32
    %43 = vector.broadcast %c6_i32_15 : i32 to vector<3x18xi32>
    %44 = arith.muli %42, %43 : vector<3x18xi32>
    %45 = arith.cmpi slt, %37, %44 : vector<3x18xi32>
    %46 = arith.andi %40, %45 : vector<3x18xi1>
    %cst_16 = arith.constant -0.166666672 : f32
    %cst_17 = arith.constant 0.000000e+00 : f32
    %47 = vector.broadcast %cst_16 : f32 to vector<3x18xf32>
    %48 = vector.broadcast %cst_17 : f32 to vector<3x18xf32>
    %49 = arith.select %46, %47, %48 : vector<3x18xi1>, vector<3x18xf32>
    %50 = tpu.iota {dimensions = array<i32: 1>} : vector<3x2xi32>
    %cst_18 = arith.constant 0.000000e+00 : f32
    %51 = vector.broadcast %cst_18 : f32 to vector<3x2xf32>
    %52 = vector.extract_strided_slice %31 {offsets = [0, 0], sizes = [12, 128], strides = [1, 1]} : vector<48x128xf32> to vector<12x128xf32>
    %53 = vector.extract_strided_slice %7 {offsets = [0, 0], sizes = [12, 128], strides = [1, 1]} : vector<48x128xf32> to vector<12x128xf32>
    %cst_19 = arith.constant dense<0.000000e+00> : vector<18x12xf32>
    %54 = tpu.matmul %34, %52, %cst_19 {dimension_numbers = #tpu.dot_dimension_numbers<[1], [1], [0], [0], [0, 0, 1, 0], [], []>} : vector<18x128xf32>, vector<12x128xf32>, vector<18x12xf32> -> vector<18x12xf32>
    %cst_20 = arith.constant dense<0xFF800000> : vector<18xf32>
    %55 = vector.multi_reduction <maximumf>, %54, %cst_20 [1] : vector<18x12xf32> to vector<18xf32>
    %56 = vector.shape_cast %55 : vector<18xf32> to vector<18x1xf32>
    %57 = vector.broadcast %56 : vector<18x1xf32> to vector<18x12xf32>
    %58 = arith.subf %54, %57 : vector<18x12xf32>
    %59 = math.exp %58 : vector<18x12xf32>
    %cst_21 = arith.constant dense<0.000000e+00> : vector<18xf32>
    %60 = vector.multi_reduction <add>, %59, %cst_21 [1] : vector<18x12xf32> to vector<18xf32>
    %61 = vector.shape_cast %60 : vector<18xf32> to vector<18x1xf32>
    %62 = tpu.reciprocal %61 {approx = true} : vector<18x1xf32> -> vector<18x1xf32>
    %63 = vector.broadcast %62 : vector<18x1xf32> to vector<18x12xf32>
    %64 = arith.mulf %59, %63 : vector<18x12xf32>
    %cst_22 = arith.constant dense<0.000000e+00> : vector<18x128xf32>
    %65 = tpu.matmul %64, %53, %cst_22 {dimension_numbers = #tpu.dot_dimension_numbers<[1], [0], [0], [1], [0, 0, 1, 1], [], []>} : vector<18x12xf32>, vector<12x128xf32>, vector<18x128xf32> -> vector<18x128xf32>
    %66 = arith.subf %35, %65 : vector<18x128xf32>
    %67 = arith.mulf %66, %66 : vector<18x128xf32>
    %cst_23 = arith.constant dense<0.000000e+00> : vector<18xf32>
    %68 = vector.multi_reduction <add>, %67, %cst_23 [1] : vector<18x128xf32> to vector<18xf32>
    %69 = vector.shape_cast %68 : vector<18xf32> to vector<18x1xf32>
    %cst_24 = arith.constant dense<0.000000e+00> : vector<3x1xf32>
    %70 = tpu.matmul %49, %69, %cst_24 {dimension_numbers = #tpu.dot_dimension_numbers<[1], [0], [0], [1], [0, 0, 1, 1], [], []>} : vector<3x18xf32>, vector<18x1xf32>, vector<3x1xf32> -> vector<3x1xf32>
    %c0_i32 = arith.constant 0 : i32
    %71 = vector.broadcast %c0_i32 : i32 to vector<3x2xi32>
    %72 = arith.cmpi eq, %50, %71 : vector<3x2xi32>
    %73 = vector.shape_cast %70 : vector<3x1xf32> to vector<3x1xf32>
    %74 = vector.broadcast %73 : vector<3x1xf32> to vector<3x2xf32>
    %75 = arith.select %72, %74, %51 : vector<3x2xi1>, vector<3x2xf32>
    %76 = vector.extract_strided_slice %31 {offsets = [12, 0], sizes = [12, 128], strides = [1, 1]} : vector<48x128xf32> to vector<12x128xf32>
    %77 = vector.extract_strided_slice %7 {offsets = [12, 0], sizes = [12, 128], strides = [1, 1]} : vector<48x128xf32> to vector<12x128xf32>
    %cst_25 = arith.constant dense<0.000000e+00> : vector<18x12xf32>
    %78 = tpu.matmul %34, %76, %cst_25 {dimension_numbers = #tpu.dot_dimension_numbers<[1], [1], [0], [0], [0, 0, 1, 0], [], []>} : vector<18x128xf32>, vector<12x128xf32>, vector<18x12xf32> -> vector<18x12xf32>
    %cst_26 = arith.constant dense<0xFF800000> : vector<18xf32>
    %79 = vector.multi_reduction <maximumf>, %78, %cst_26 [1] : vector<18x12xf32> to vector<18xf32>
    %80 = vector.shape_cast %79 : vector<18xf32> to vector<18x1xf32>
    %81 = vector.broadcast %80 : vector<18x1xf32> to vector<18x12xf32>
    %82 = arith.subf %78, %81 : vector<18x12xf32>
    %83 = math.exp %82 : vector<18x12xf32>
    %cst_27 = arith.constant dense<0.000000e+00> : vector<18xf32>
    %84 = vector.multi_reduction <add>, %83, %cst_27 [1] : vector<18x12xf32> to vector<18xf32>
    %85 = vector.shape_cast %84 : vector<18xf32> to vector<18x1xf32>
    %86 = tpu.reciprocal %85 {approx = true} : vector<18x1xf32> -> vector<18x1xf32>
    %87 = vector.broadcast %86 : vector<18x1xf32> to vector<18x12xf32>
    %88 = arith.mulf %83, %87 : vector<18x12xf32>
    %cst_28 = arith.constant dense<0.000000e+00> : vector<18x128xf32>
    %89 = tpu.matmul %88, %77, %cst_28 {dimension_numbers = #tpu.dot_dimension_numbers<[1], [0], [0], [1], [0, 0, 1, 1], [], []>} : vector<18x12xf32>, vector<12x128xf32>, vector<18x128xf32> -> vector<18x128xf32>
    %90 = arith.subf %35, %89 : vector<18x128xf32>
    %91 = arith.mulf %90, %90 : vector<18x128xf32>
    %cst_29 = arith.constant dense<0.000000e+00> : vector<18xf32>
    %92 = vector.multi_reduction <add>, %91, %cst_29 [1] : vector<18x128xf32> to vector<18xf32>
    %93 = vector.shape_cast %92 : vector<18xf32> to vector<18x1xf32>
    %cst_30 = arith.constant dense<0.000000e+00> : vector<3x1xf32>
    %94 = tpu.matmul %49, %93, %cst_30 {dimension_numbers = #tpu.dot_dimension_numbers<[1], [0], [0], [1], [0, 0, 1, 1], [], []>} : vector<3x18xf32>, vector<18x1xf32>, vector<3x1xf32> -> vector<3x1xf32>
    %c1_i32_31 = arith.constant 1 : i32
    %95 = vector.broadcast %c1_i32_31 : i32 to vector<3x2xi32>
    %96 = arith.cmpi eq, %50, %95 : vector<3x2xi32>
    %97 = vector.shape_cast %94 : vector<3x1xf32> to vector<3x1xf32>
    %98 = vector.broadcast %97 : vector<3x1xf32> to vector<3x2xf32>
    %99 = arith.select %96, %98, %75 : vector<3x2xi1>, vector<3x2xf32>
    %c0_32 = arith.constant 0 : index
    %c0_33 = arith.constant 0 : index
    %100 = vector.load %arg5[%c0_32, %c0_33] : memref<3x2xf32, #tpu.memory_space<vmem>>, vector<3x2xf32>
    tpu.vector_store %arg5[%c0_32, %c0_33], %99 {strides = array<i32>} : memref<3x2xf32, #tpu.memory_space<vmem>>, vector<3x2xf32>,
    return
  }
}

</mosaic_0001>

<bundles_post_ra>
// kernel: tpu_custom_call.1
= control target key start
LH: loop header
LB: loop body
LE: loop exit
PB: predicated region body
PF: predicated region fallthrough
CT: control target
= control target key end

     0   :  { %10 = vsyncpa [#allocation3], 0  ;;  %s5595_s0 = inlined_call_operand.hbm [shape: f32[48,4096], index: 0, kind: input, shape index: {}]   ;;  %s5596_s1 = inlined_call_operand.hbm [shape: f32[4096,256], index: 1, kind: input, shape index: {}]   ;;  %s5597_s2 = inlined_call_operand.hbm [shape: f32[1,256], index: 2, kind: input, shape index: {}]   ;;  %s5598_s3 = inlined_call_operand.hbm [shape: f32[1,128], index: 3, kind: input, shape index: {}]   ;;  %s5599_s4 = inlined_call_operand.hbm [shape: f32[1,128], index: 4, kind: input, shape index: {}]   ;;  %s5600_s5 = inlined_call_operand.vmem [shape: f32[3,2], index: 5, kind: output, shape index: {}]  }
   0x1   :  { %11 = vsyncpa [#allocation5], 0 }
   0x2   :  { %12 = vsyncpa [#allocation8], 0  ;;  %s5204_s18 = smov [#allocation4]   ;;  %s5088_s22 = scalar_lea.hbm %s5596_s1, 131072 }
   0x3   :  { %s30_s19 = sshll.u32 %s5204_s18, 4  ;;  %p5089_p0 = scmp.ne.s32.totalorder %s5596_s1, %s5088_s22  ;;  %s31_s19 = int_to_ptr.vmem [resolvable:$true] %s30_s19 }
   0x4   :  { %p5092_p1 = scmp.lt.u32.totalorder %s5088_s22, %s5596_s1 }
   0x6   :  { %p5094_p2 = pnand %p5092_p1, %p5089_p0 }
   0x8   :  { %5097 = shalt.err (!%p5094_p2)
}
   0x9   :  { %s5098_s27 = scalar_lea.vmem %s31_s19, 131072  ;;  %p5103_p4 = scmp.lt.s32.totalorder %s31_s19, %s31_s19 }
   0xa   :  { %p5099_p3 = scmp.ne.s32.totalorder %s31_s19, %s5098_s27  ;;  %p5104_p5 = scmp.lt.s32.totalorder %s5098_s27, %s5098_s27 }
   0xc   :  { %p5105_p6 = por %p5104_p5, %p5103_p4 }
   0xe   :  { %p5106_p7 = pnand %p5105_p6, %p5099_p3 }
  0x10   :  { %5109 = shalt.err (!%p5106_p7)
}
  0x11   :  { %s5205_s28 = smov 256   ;;  %s5206_s29 = smov 16  }
  0x12   :  { %36 = dma.hbm_to_vmem [thread:$0]  %s5596_s1, 131072, %s31_s19, [#allocation5], %s5205_s28, %s5205_s28, %s5206_s29  }
  0x13   :  { %s5207_s7 = smov [#allocation7]   ;;  %s5208_s9 = smov [#allocation2]  }
  0x14   :  { %s53_s8 = sshll.u32 %s5207_s7, 4  ;;  %s18_s10 = sshll.u32 %s5208_s9, 4  ;;  %s54_s8 = int_to_ptr.vmem [resolvable:$true] %s53_s8  ;;  %s19_s10 = int_to_ptr.vmem [resolvable:$true] %s18_s10 }
  0x15   :  { %s5110_s13 = scalar_lea.hbm %s5598_s3, 16 }
  0x16   :  { %p5111_p8 = scmp.ne.s32.totalorder %s5598_s3, %s5110_s13  ;;  %p5114_p9 = scmp.lt.u32.totalorder %s5110_s13, %s5598_s3 }
  0x18   :  { %p5116_p10 = pnand %p5114_p9, %p5111_p8 }
  0x1a   :  { %5119 = shalt.err (!%p5116_p10)
}
  0x1b   :  { %s5120_s1 = scalar_lea.vmem %s54_s8, 16  ;;  %s5124_s18 = scalar_lea.vmem %s54_s8, 32 }
  0x1c   :  { %p5121_p11 = scmp.ne.s32.totalorder %s54_s8, %s5120_s1  ;;  %p5125_p12 = scmp.lt.s32.totalorder %s54_s8, %s54_s8 }
  0x1d   :  { %p5126_p13 = scmp.lt.s32.totalorder %s5124_s18, %s5120_s1 }
  0x1f   :  { %p5127_p0 = por %p5126_p13, %p5125_p12 }
  0x21   :  { %p5128_p1 = pnand %p5127_p0, %p5121_p11 }
  0x23   :  { %5131 = shalt.err (!%p5128_p1)
}
  0x24   :  { %56 = dma.hbm_to_vmem [thread:$0]  %s5598_s3, 16, %s54_s8, [#allocation8]  }
  0x25   :  { %s5132_s23 = scalar_lea.hbm %s5595_s0, 24576 }
  0x26   :  { %p5133_p2 = scmp.ne.s32.totalorder %s5595_s0, %s5132_s23  ;;  %p5136_p3 = scmp.lt.u32.totalorder %s5132_s23, %s5595_s0 }
  0x28   :  { %p5138_p4 = pnand %p5136_p3, %p5133_p2 }
  0x2a   :  { %5141 = shalt.err (!%p5138_p4)
}
  0x2b   :  { %s5142_s29 = scalar_lea.vmem %s19_s10, 24576  ;;  %p5147_p6 = scmp.lt.s32.totalorder %s19_s10, %s19_s10 }
  0x2c   :  { %p5143_p5 = scmp.ne.s32.totalorder %s19_s10, %s5142_s29  ;;  %p5148_p7 = scmp.lt.s32.totalorder %s5142_s29, %s5142_s29 }
  0x2e   :  { %p5149_p8 = por %p5148_p7, %p5147_p6 }
  0x30   :  { %p5150_p9 = pnand %p5149_p8, %p5143_p5 }
  0x32   :  { %5153 = shalt.err (!%p5150_p9)
}
  0x33   :  { %s5209_s3 = smov 4096   ;;  %s5210_s7 = smov [#allocation6]  }
  0x34   :  { %24 = dma.hbm_to_vmem [thread:$0]  %s5595_s0, 24576, %s19_s10, [#allocation3], %s5209_s3, %s5209_s3, %s5205_s28  }
  0x35   :  { %s43_s8 = sshll.u32 %s5210_s7, 4  ;;  %s5211_s9 = smov [#allocation9]   ;;  %s44_s8 = int_to_ptr.vmem [resolvable:$true] %s43_s8 }
  0x36   :  { %s63_s11 = sshll.u32 %s5211_s9, 4  ;;  %s5154_s14 = scalar_lea.hbm %s5597_s2, 32  ;;  %s64_s11 = int_to_ptr.vmem [resolvable:$true] %s63_s11 }
  0x37   :  { %p5155_p10 = scmp.ne.s32.totalorder %s5597_s2, %s5154_s14  ;;  %p5158_p11 = scmp.lt.u32.totalorder %s5154_s14, %s5597_s2 }
  0x39   :  { %p5160_p12 = pnand %p5158_p11, %p5155_p10 }
  0x3b   :  { %5163 = shalt.err (!%p5160_p12)
}
  0x3c   :  { %s5164_s0 = scalar_lea.vmem %s44_s8, 32  ;;  %p5169_p0 = scmp.lt.s32.totalorder %s44_s8, %s44_s8 }
  0x3d   :  { %p5165_p13 = scmp.ne.s32.totalorder %s44_s8, %s5164_s0  ;;  %p5170_p1 = scmp.lt.s32.totalorder %s5164_s0, %s5164_s0 }
  0x3f   :  { %p5171_p2 = por %p5170_p1, %p5169_p0 }
  0x41   :  { %p5172_p3 = pnand %p5171_p2, %p5165_p13 }
  0x43   :  { %5175 = shalt.err (!%p5172_p3)
}
  0x44   :  { %46 = dma.hbm_to_vmem [thread:$0]  %s5597_s2, 32, %s44_s8, [#allocation5]  }
  0x45   :  { %s5176_s20 = scalar_lea.hbm %s5599_s4, 16 }
  0x46   :  { %p5177_p4 = scmp.ne.s32.totalorder %s5599_s4, %s5176_s20  ;;  %p5180_p5 = scmp.lt.u32.totalorder %s5176_s20, %s5599_s4 }
  0x48   :  { %p5182_p6 = pnand %p5180_p5, %p5177_p4 }
  0x4a   :  { %5185 = shalt.err (!%p5182_p6)
}
  0x4b   :  { %s5186_s25 = scalar_lea.vmem %s64_s11, 16  ;;  %s5190_s26 = scalar_lea.vmem %s64_s11, 32 }
  0x4c   :  { %p5187_p7 = scmp.ne.s32.totalorder %s64_s11, %s5186_s25  ;;  %p5191_p8 = scmp.lt.s32.totalorder %s64_s11, %s64_s11 }
  0x4d   :  { %p5192_p9 = scmp.lt.s32.totalorder %s5190_s26, %s5186_s25 }
  0x4f   :  { %p5193_p10 = por %p5192_p9, %p5191_p8 }
  0x51   :  { %p5194_p11 = pnand %p5193_p10, %p5187_p7 }
  0x53   :  { %5197 = shalt.err (!%p5194_p11)
}
  0x54   :  { %66 = dma.hbm_to_vmem [thread:$0]  %s5599_s4, 16, %s64_s11, [#allocation8]  }
  0x55   :  { %5198 = dma.done.wait [#allocation3], 24576  }
  0x56   :  { %5199 = vsyncadd [#allocation3], 4294942720 }
  0x57   :  { %5200 = dma.done.wait [#allocation5], 131104  }
  0x58   :  { %5201 = vsyncadd [#allocation5], 4294836192 }
  0x59   :  { %5202 = dma.done.wait [#allocation8], 32  }
  0x5a   :  { %5203 = vsyncadd [#allocation8], 4294967264  ;;  %v275_v0 = vld [vmem:[#allocation4 + $0x8] sm:$0xff]  ;;  %v277_v1 = vld [vmem:[#allocation4 + $0x18] sm:$0xff]  ;;  %vm3157_vm0 = vcmask 1043456   ;;  %vm5213_vm1 = vmmov 0  }
  0x5b   :  { %v723_v2 = vld [vmem:[#allocation4 + $0xe08] sm:$0xff]  ;;  %v3769_v3 = vpack.c.bf16 %v277_v1, %v275_v0  ;;  %v725_v4 = vld [vmem:[#allocation4 + $0xe18] sm:$0xff]  ;;  %v274_v5 = vld [vmem:[#allocation4] sm:$0xff]  ;;  %vm5215_vm2 = vmmov 1   ;;  %vm3113_vm4 = vcmask 97280   ;;  %vm3120_vm5 = vcmask 91136  }
  0x5c   :  { %v276_v6 = vld [vmem:[#allocation4 + $0x10] sm:$0xff]  ;;  %v4217_v7 = vpack.c.bf16 %v725_v4, %v723_v2  ;;  %v722_v9 = vld [vmem:[#allocation4 + $0xe00] sm:$0xff]  ;;  %v279_v11 = vld [vmem:[#allocation4 + $0x28] sm:$0xff]  ;;  %vm3251_vm6 = vcmask 1041408   ;;  %vm3255_vm10 = vcmask 146432   ;;  %vm3648_vm13 = vcmask 10240  }
  0x5d   :  { %v3771_v8 = vpack.c.bf16 %v276_v6, %v274_v5  ;;  %v724_v10 = vld [vmem:[#allocation4 + $0xe10] sm:$0xff]  ;;  %3770 = vmatprep.subr.bf16.mxu1 %v3769_v3  ;;  %v281_v13 = vld [vmem:[#allocation4 + $0x38] sm:$0xff]  ;;  %v727_v14 = vld [vmem:[#allocation4 + $0xe28] sm:$0xff] }
  0x5e   :  { %v4219_v12 = vpack.c.bf16 %v724_v10, %v722_v9  ;;  %v729_v15 = vld [vmem:[#allocation4 + $0xe38] sm:$0xff]  ;;  %4218 = vmatprep.subr.bf16.mxu0 %v4217_v7  ;;  %v3773_v16 = vpack.c.bf16 %v281_v13, %v279_v11  ;;  %v278_v18 = vld [vmem:[#allocation4 + $0x20] sm:$0xff]  ;;  %v280_v19 = vld [vmem:[#allocation4 + $0x30] sm:$0xff] }
  0x5f   :  { %3772 = vmatpush1.bf16.msra.mxu1 %v3771_v8  ;;  %v4221_v17 = vpack.c.bf16 %v729_v15, %v727_v14  ;;  %v726_v20 = vld [vmem:[#allocation4 + $0xe20] sm:$0xff]  ;;  %v3775_v21 = vpack.c.bf16 %v280_v19, %v278_v18  ;;  %v728_v22 = vld [vmem:[#allocation4 + $0xe30] sm:$0xff]  ;;  %v283_v23 = vld [vmem:[#allocation4 + $0x48] sm:$0xff] }
  0x60   :  { %4220 = vmatpush1.bf16.msra.mxu0 %v4219_v12  ;;  %v285_v24 = vld [vmem:[#allocation4 + $0x58] sm:$0xff]  ;;  %3774 = vmatprep.subr.bf16.mxu1 %v3773_v16  ;;  %v4223_v25 = vpack.c.bf16 %v728_v22, %v726_v20  ;;  %v731_v27 = vld [vmem:[#allocation4 + $0xe48] sm:$0xff]  ;;  %v282_v29 = vld [vmem:[#allocation4 + $0x40] sm:$0xff] }
  0x61   :  { %4222 = vmatprep.subr.bf16.mxu0 %v4221_v17  ;;  %v3777_v26 = vpack.c.bf16 %v285_v24, %v283_v23  ;;  %v733_v28 = vld [vmem:[#allocation4 + $0xe58] sm:$0xff]  ;;  %v284_v31 = vld [vmem:[#allocation4 + $0x50] sm:$0xff]  ;;  %v730_v32 = vld [vmem:[#allocation4 + $0xe40] sm:$0xff] }
  0x62   :  { %v4225_v30 = vpack.c.bf16 %v733_v28, %v731_v27  ;;  %v732_v33 = vld [vmem:[#allocation4 + $0xe50] sm:$0xff]  ;;  %v3779_v34 = vpack.c.bf16 %v284_v31, %v282_v29  ;;  %v287_v35 = vld [vmem:[#allocation4 + $0x68] sm:$0xff]  ;;  %v289_v36 = vld [vmem:[#allocation4 + $0x78] sm:$0xff] }
  0x63   :  { %3776 = vmatpush1.bf16.msra.mxu1 %v3775_v21  ;;  %v735_v37 = vld [vmem:[#allocation4 + $0xe68] sm:$0xff]  ;;  %v4227_v38 = vpack.c.bf16 %v732_v33, %v730_v32  ;;  %v3781_v39 = vpack.c.bf16 %v289_v36, %v287_v35  ;;  %v737_v40 = vld [vmem:[#allocation4 + $0xe78] sm:$0xff]  ;;  %v286_v41 = vld [vmem:[#allocation4 + $0x60] sm:$0xff] }
  0x64   :  { %4224 = vmatpush1.bf16.msra.mxu0 %v4223_v25  ;;  %3778 = vmatprep.subr.bf16.mxu1 %v3777_v26  ;;  %v288_v42 = vld [vmem:[#allocation4 + $0x70] sm:$0xff]  ;;  %v4229_v43 = vpack.c.bf16 %v737_v40, %v735_v37  ;;  %v734_v44 = vld [vmem:[#allocation4 + $0xe60] sm:$0xff]  ;;  %v291_v46 = vld [vmem:[#allocation4 + $0x88] sm:$0xff] }
  0x65   :  { %4226 = vmatprep.subr.bf16.mxu0 %v4225_v30  ;;  %v736_v45 = vld [vmem:[#allocation4 + $0xe70] sm:$0xff]  ;;  %v293_v47 = vld [vmem:[#allocation4 + $0x98] sm:$0xff]  ;;  %v739_v48 = vld [vmem:[#allocation4 + $0xe88] sm:$0xff]  ;;  %v3783_v50 = vpack.c.bf16 %v288_v42, %v286_v41 }
  0x66   :  { %v741_v49 = vld [vmem:[#allocation4 + $0xe98] sm:$0xff]  ;;  %v4231_v51 = vpack.c.bf16 %v736_v45, %v734_v44  ;;  %v3785_v52 = vpack.c.bf16 %v293_v47, %v291_v46  ;;  %v290_v53 = vld [vmem:[#allocation4 + $0x80] sm:$0xff]  ;;  %v292_v54 = vld [vmem:[#allocation4 + $0x90] sm:$0xff] }
  0x67   :  { %3780 = vmatpush1.bf16.msra.mxu1 %v3779_v34  ;;  %v738_v55 = vld [vmem:[#allocation4 + $0xe80] sm:$0xff]  ;;  %v4233_v56 = vpack.c.bf16 %v741_v49, %v739_v48  ;;  %v740_v57 = vld [vmem:[#allocation4 + $0xe90] sm:$0xff]  ;;  %v295_v58 = vld [vmem:[#allocation4 + $0xa8] sm:$0xff]  ;;  %v3787_v62 = vpack.c.bf16 %v292_v54, %v290_v53 }
  0x68   :  { %4228 = vmatpush1.bf16.msra.mxu0 %v4227_v38  ;;  %3782 = vmatprep.subr.bf16.mxu1 %v3781_v39  ;;  %v297_v59 = vld [vmem:[#allocation4 + $0xb8] sm:$0xff]  ;;  %v743_v60 = vld [vmem:[#allocation4 + $0xea8] sm:$0xff]  ;;  %v4235_v63 = vpack.c.bf16 %v740_v57, %v738_v55  ;;  %v294_v1 = vld [vmem:[#allocation4 + $0xa0] sm:$0xff] }
  0x69   :  { %4230 = vmatprep.subr.bf16.mxu0 %v4229_v43  ;;  %v745_v61 = vld [vmem:[#allocation4 + $0xeb8] sm:$0xff]  ;;  %v3789_v0 = vpack.c.bf16 %v297_v59, %v295_v58  ;;  %v296_v2 = vld [vmem:[#allocation4 + $0xb0] sm:$0xff]  ;;  %v742_v3 = vld [vmem:[#allocation4 + $0xea0] sm:$0xff] }
  0x6a   :  { %v4237_v4 = vpack.c.bf16 %v745_v61, %v743_v60  ;;  %v744_v5 = vld [vmem:[#allocation4 + $0xeb0] sm:$0xff]  ;;  %v299_v6 = vld [vmem:[#allocation4 + $0xc8] sm:$0xff]  ;;  %v301_v7 = vld [vmem:[#allocation4 + $0xd8] sm:$0xff]  ;;  %v3791_v10 = vpack.c.bf16 %v296_v2, %v294_v1 }
  0x6b   :  { %3784 = vmatpush1.bf16.msra.mxu1 %v3783_v50  ;;  %v747_v8 = vld [vmem:[#allocation4 + $0xec8] sm:$0xff]  ;;  %v749_v9 = vld [vmem:[#allocation4 + $0xed8] sm:$0xff]  ;;  %v4239_v11 = vpack.c.bf16 %v744_v5, %v742_v3  ;;  %v3793_v12 = vpack.c.bf16 %v301_v7, %v299_v6  ;;  %v298_v13 = vld [vmem:[#allocation4 + $0xc0] sm:$0xff] }
  0x6c   :  { %4232 = vmatpush1.bf16.msra.mxu0 %v4231_v51  ;;  %3786 = vmatprep.subr.bf16.mxu1 %v3785_v52  ;;  %v300_v14 = vld [vmem:[#allocation4 + $0xd0] sm:$0xff]  ;;  %v746_v15 = vld [vmem:[#allocation4 + $0xec0] sm:$0xff]  ;;  %v4241_v16 = vpack.c.bf16 %v749_v9, %v747_v8  ;;  %v303_v18 = vld [vmem:[#allocation4 + $0xe8] sm:$0xff] }
  0x6d   :  { %4234 = vmatprep.subr.bf16.mxu0 %v4233_v56  ;;  %v748_v17 = vld [vmem:[#allocation4 + $0xed0] sm:$0xff]  ;;  %v305_v19 = vld [vmem:[#allocation4 + $0xf8] sm:$0xff]  ;;  %v751_v20 = vld [vmem:[#allocation4 + $0xee8] sm:$0xff]  ;;  %v3795_v22 = vpack.c.bf16 %v300_v14, %v298_v13 }
  0x6e   :  { %v753_v21 = vld [vmem:[#allocation4 + $0xef8] sm:$0xff]  ;;  %v4243_v23 = vpack.c.bf16 %v748_v17, %v746_v15  ;;  %v3797_v24 = vpack.c.bf16 %v305_v19, %v303_v18  ;;  %v302_v25 = vld [vmem:[#allocation4 + $0xe0] sm:$0xff]  ;;  %v304_v26 = vld [vmem:[#allocation4 + $0xf0] sm:$0xff] }
  0x6f   :  { %3788 = vmatpush1.bf16.msra.mxu1 %v3787_v62  ;;  %v750_v27 = vld [vmem:[#allocation4 + $0xee0] sm:$0xff]  ;;  %v4245_v28 = vpack.c.bf16 %v753_v21, %v751_v20  ;;  %v752_v29 = vld [vmem:[#allocation4 + $0xef0] sm:$0xff]  ;;  %v307_v30 = vld [vmem:[#allocation4 + $0x108] sm:$0xff]  ;;  %v3799_v34 = vpack.c.bf16 %v304_v26, %v302_v25 }
  0x70   :  { %4236 = vmatpush1.bf16.msra.mxu0 %v4235_v63  ;;  %3790 = vmatprep.subr.bf16.mxu1 %v3789_v0  ;;  %v309_v31 = vld [vmem:[#allocation4 + $0x118] sm:$0xff]  ;;  %v755_v32 = vld [vmem:[#allocation4 + $0xf08] sm:$0xff]  ;;  %v4247_v35 = vpack.c.bf16 %v752_v29, %v750_v27  ;;  %v306_v37 = vld [vmem:[#allocation4 + $0x100] sm:$0xff] }
  0x71   :  { %4238 = vmatprep.subr.bf16.mxu0 %v4237_v4  ;;  %v757_v33 = vld [vmem:[#allocation4 + $0xf18] sm:$0xff]  ;;  %v3801_v36 = vpack.c.bf16 %v309_v31, %v307_v30  ;;  %v308_v38 = vld [vmem:[#allocation4 + $0x110] sm:$0xff]  ;;  %v754_v39 = vld [vmem:[#allocation4 + $0xf00] sm:$0xff] }
  0x72   :  { %v4249_v40 = vpack.c.bf16 %v757_v33, %v755_v32  ;;  %v756_v41 = vld [vmem:[#allocation4 + $0xf10] sm:$0xff]  ;;  %v311_v42 = vld [vmem:[#allocation4 + $0x128] sm:$0xff]  ;;  %v313_v43 = vld [vmem:[#allocation4 + $0x138] sm:$0xff]  ;;  %v3803_v46 = vpack.c.bf16 %v308_v38, %v306_v37 }
  0x73   :  { %3792 = vmatpush1.bf16.msra.mxu1 %v3791_v10  ;;  %v759_v44 = vld [vmem:[#allocation4 + $0xf28] sm:$0xff]  ;;  %v761_v45 = vld [vmem:[#allocation4 + $0xf38] sm:$0xff]  ;;  %v4251_v47 = vpack.c.bf16 %v756_v41, %v754_v39  ;;  %v3805_v48 = vpack.c.bf16 %v313_v43, %v311_v42  ;;  %v310_v49 = vld [vmem:[#allocation4 + $0x120] sm:$0xff] }
  0x74   :  { %4240 = vmatpush1.bf16.msra.mxu0 %v4239_v11  ;;  %3794 = vmatprep.subr.bf16.mxu1 %v3793_v12  ;;  %v312_v50 = vld [vmem:[#allocation4 + $0x130] sm:$0xff]  ;;  %v758_v51 = vld [vmem:[#allocation4 + $0xf20] sm:$0xff]  ;;  %v4253_v52 = vpack.c.bf16 %v761_v45, %v759_v44  ;;  %v315_v54 = vld [vmem:[#allocation4 + $0x148] sm:$0xff] }
  0x75   :  { %4242 = vmatprep.subr.bf16.mxu0 %v4241_v16  ;;  %v760_v53 = vld [vmem:[#allocation4 + $0xf30] sm:$0xff]  ;;  %v317_v55 = vld [vmem:[#allocation4 + $0x158] sm:$0xff]  ;;  %v763_v56 = vld [vmem:[#allocation4 + $0xf48] sm:$0xff]  ;;  %v3807_v58 = vpack.c.bf16 %v312_v50, %v310_v49 }
  0x76   :  { %v765_v57 = vld [vmem:[#allocation4 + $0xf58] sm:$0xff]  ;;  %v4255_v59 = vpack.c.bf16 %v760_v53, %v758_v51  ;;  %v3809_v60 = vpack.c.bf16 %v317_v55, %v315_v54  ;;  %v314_v61 = vld [vmem:[#allocation4 + $0x140] sm:$0xff]  ;;  %v316_v62 = vld [vmem:[#allocation4 + $0x150] sm:$0xff] }
  0x77   :  { %3796 = vmatpush1.bf16.msra.mxu1 %v3795_v22  ;;  %v762_v63 = vld [vmem:[#allocation4 + $0xf40] sm:$0xff]  ;;  %v4257_v0 = vpack.c.bf16 %v765_v57, %v763_v56  ;;  %v764_v1 = vld [vmem:[#allocation4 + $0xf50] sm:$0xff]  ;;  %v319_v2 = vld [vmem:[#allocation4 + $0x168] sm:$0xff]  ;;  %v3811_v6 = vpack.c.bf16 %v316_v62, %v314_v61 }
  0x78   :  { %4244 = vmatpush1.bf16.msra.mxu0 %v4243_v23  ;;  %3798 = vmatprep.subr.bf16.mxu1 %v3797_v24  ;;  %v321_v3 = vld [vmem:[#allocation4 + $0x178] sm:$0xff]  ;;  %v767_v4 = vld [vmem:[#allocation4 + $0xf68] sm:$0xff]  ;;  %v318_v7 = vld [vmem:[#allocation4 + $0x160] sm:$0xff]  ;;  %v4259_v8 = vpack.c.bf16 %v764_v1, %v762_v63 }
  0x79   :  { %4246 = vmatprep.subr.bf16.mxu0 %v4245_v28  ;;  %v769_v5 = vld [vmem:[#allocation4 + $0xf78] sm:$0xff]  ;;  %v3813_v9 = vpack.c.bf16 %v321_v3, %v319_v2  ;;  %v320_v10 = vld [vmem:[#allocation4 + $0x170] sm:$0xff]  ;;  %v766_v11 = vld [vmem:[#allocation4 + $0xf60] sm:$0xff] }
  0x7a   :  { %v768_v12 = vld [vmem:[#allocation4 + $0xf70] sm:$0xff]  ;;  %v4261_v13 = vpack.c.bf16 %v769_v5, %v767_v4  ;;  %v323_v14 = vld [vmem:[#allocation4 + $0x188] sm:$0xff]  ;;  %v325_v15 = vld [vmem:[#allocation4 + $0x198] sm:$0xff]  ;;  %v3815_v20 = vpack.c.bf16 %v320_v10, %v318_v7 }
  0x7b   :  { %3800 = vmatpush1.bf16.msra.mxu1 %v3799_v34  ;;  %v83_v16 = vld [vmem:[#allocation2 + $0x8] sm:$0xff]  ;;  %v773_v18 = vld [vmem:[#allocation4 + $0xf98] sm:$0xff]  ;;  %v4263_v21 = vpack.c.bf16 %v768_v12, %v766_v11  ;;  %v3817_v22 = vpack.c.bf16 %v325_v15, %v323_v14  ;;  %v322_v23 = vld [vmem:[#allocation4 + $0x180] sm:$0xff] }
  0x7c   :  { %4248 = vmatpush1.bf16.msra.mxu0 %v4247_v35  ;;  %3802 = vmatprep.subr.bf16.mxu1 %v3801_v36  ;;  %v771_v17 = vld [vmem:[#allocation4 + $0xf88] sm:$0xff]  ;;  %v97_v19 = vld [vmem:[#allocation2 + $0x78] sm:$0xff]  ;;  %v324_v24 = vld [vmem:[#allocation4 + $0x190] sm:$0xff] }
  0x7d   :  { %4250 = vmatprep.subr.bf16.mxu0 %v4249_v40  ;;  %1374 = vmatprep.mubr.f32.mxu1 %v83_v16  ;;  %v770_v25 = vld [vmem:[#allocation4 + $0xf80] sm:$0xff]  ;;  %v4265_v26 = vpack.c.bf16 %v773_v18, %v771_v17  ;;  %v772_v27 = vld [vmem:[#allocation4 + $0xf90] sm:$0xff]  ;;  %v327_v28 = vld [vmem:[#allocation4 + $0x1a8] sm:$0xff]  ;;  %v3819_v32 = vpack.c.bf16 %v324_v24, %v322_v23 }
  0x7e   :  { %2081 = vmatprep.mubr.f32.mxu0 %v97_v19  ;;  %v329_v29 = vld [vmem:[#allocation4 + $0x1b8] sm:$0xff]  ;;  %v775_v30 = vld [vmem:[#allocation4 + $0xfa8] sm:$0xff]  ;;  %v4267_v33 = vpack.c.bf16 %v772_v27, %v770_v25  ;;  %v326_v35 = vld [vmem:[#allocation4 + $0x1a0] sm:$0xff] }
  0x7f   :  { %3804 = vmatpush1.bf16.msra.mxu1 %v3803_v46  ;;  %v777_v31 = vld [vmem:[#allocation4 + $0xfb8] sm:$0xff]  ;;  %v3821_v34 = vpack.c.bf16 %v329_v29, %v327_v28  ;;  %v328_v36 = vld [vmem:[#allocation4 + $0x1b0] sm:$0xff]  ;;  %v774_v37 = vld [vmem:[#allocation4 + $0xfa0] sm:$0xff] }
  0x80   :  { %4252 = vmatpush1.bf16.msra.mxu0 %v4251_v47  ;;  %3806 = vmatprep.subr.bf16.mxu1 %v3805_v48  ;;  %v4269_v38 = vpack.c.bf16 %v777_v31, %v775_v30  ;;  %v776_v39 = vld [vmem:[#allocation4 + $0xfb0] sm:$0xff]  ;;  %v331_v40 = vld [vmem:[#allocation4 + $0x1c8] sm:$0xff]  ;;  %v333_v41 = vld [vmem:[#allocation4 + $0x1d8] sm:$0xff]  ;;  %v3823_v44 = vpack.c.bf16 %v328_v36, %v326_v35 }
  0x81   :  { %4254 = vmatprep.subr.bf16.mxu0 %v4253_v52  ;;  %v779_v42 = vld [vmem:[#allocation4 + $0xfc8] sm:$0xff]  ;;  %v781_v43 = vld [vmem:[#allocation4 + $0xfd8] sm:$0xff]  ;;  %v4271_v45 = vpack.c.bf16 %v776_v39, %v774_v37  ;;  %v3825_v46 = vpack.c.bf16 %v333_v41, %v331_v40  ;;  %v330_v47 = vld [vmem:[#allocation4 + $0x1c0] sm:$0xff] }
  0x82   :  { %v332_v48 = vld [vmem:[#allocation4 + $0x1d0] sm:$0xff]  ;;  %v778_v49 = vld [vmem:[#allocation4 + $0xfc0] sm:$0xff]  ;;  %v4273_v50 = vpack.c.bf16 %v781_v43, %v779_v42  ;;  %v335_v52 = vld [vmem:[#allocation4 + $0x1e8] sm:$0xff] }
  0x83   :  { %3808 = vmatpush1.bf16.msra.mxu1 %v3807_v58  ;;  %v780_v51 = vld [vmem:[#allocation4 + $0xfd0] sm:$0xff]  ;;  %v337_v53 = vld [vmem:[#allocation4 + $0x1f8] sm:$0xff]  ;;  %v783_v54 = vld [vmem:[#allocation4 + $0xfe8] sm:$0xff]  ;;  %v3827_v56 = vpack.c.bf16 %v332_v48, %v330_v47 }
  0x84   :  { %4256 = vmatpush1.bf16.msra.mxu0 %v4255_v59  ;;  %3810 = vmatprep.subr.bf16.mxu1 %v3809_v60  ;;  %v785_v55 = vld [vmem:[#allocation4 + $0xff8] sm:$0xff]  ;;  %v4275_v57 = vpack.c.bf16 %v780_v51, %v778_v49  ;;  %v3829_v58 = vpack.c.bf16 %v337_v53, %v335_v52  ;;  %v334_v59 = vld [vmem:[#allocation4 + $0x1e0] sm:$0xff]  ;;  %v336_v60 = vld [vmem:[#allocation4 + $0x1f0] sm:$0xff] }
  0x85   :  { %4258 = vmatprep.subr.bf16.mxu0 %v4257_v0  ;;  %v782_v61 = vld [vmem:[#allocation4 + $0xfe0] sm:$0xff]  ;;  %v4277_v62 = vpack.c.bf16 %v785_v55, %v783_v54  ;;  %v784_v63 = vld [vmem:[#allocation4 + $0xff0] sm:$0xff]  ;;  %v339_v0 = vld [vmem:[#allocation4 + $0x208] sm:$0xff]  ;;  %v3831_v4 = vpack.c.bf16 %v336_v60, %v334_v59 }
  0x86   :  { %v341_v1 = vld [vmem:[#allocation4 + $0x218] sm:$0xff]  ;;  %v787_v2 = vld [vmem:[#allocation4 + $0x1008] sm:$0xff]  ;;  %v4279_v5 = vpack.c.bf16 %v784_v63, %v782_v61  ;;  %v338_v7 = vld [vmem:[#allocation4 + $0x200] sm:$0xff] }
  0x87   :  { %3812 = vmatpush1.bf16.msra.mxu1 %v3811_v6  ;;  %v789_v3 = vld [vmem:[#allocation4 + $0x1018] sm:$0xff]  ;;  %v3833_v6 = vpack.c.bf16 %v341_v1, %v339_v0  ;;  %v788_v11 = vld [vmem:[#allocation4 + $0x1010] sm:$0xff]  ;;  %v343_v12 = vld [vmem:[#allocation4 + $0x228] sm:$0xff] }
  0x88   :  { %4260 = vmatpush1.bf16.msra.mxu0 %v4259_v8  ;;  %3814 = vmatprep.subr.bf16.mxu1 %v3813_v9  ;;  %v340_v8 = vld [vmem:[#allocation4 + $0x210] sm:$0xff]  ;;  %v786_v9 = vld [vmem:[#allocation4 + $0x1000] sm:$0xff]  ;;  %v4281_v10 = vpack.c.bf16 %v789_v3, %v787_v2  ;;  %v791_v14 = vld [vmem:[#allocation4 + $0x1028] sm:$0xff] }
  0x89   :  { %4262 = vmatprep.subr.bf16.mxu0 %v4261_v13  ;;  %v345_v13 = vld [vmem:[#allocation4 + $0x238] sm:$0xff]  ;;  %v82_v16 = vld [vmem:[#allocation2] sm:$0xff]  ;;  %v3835_v17 = vpack.c.bf16 %v340_v8, %v338_v7  ;;  %v96_v18 = vld [vmem:[#allocation2 + $0x70] sm:$0xff]  ;;  %v4283_v19 = vpack.c.bf16 %v788_v11, %v786_v9 }
  0x8a   :  { %v793_v15 = vld [vmem:[#allocation4 + $0x1038] sm:$0xff]  ;;  %v790_v23 = vld [vmem:[#allocation4 + $0x1020] sm:$0xff]  ;;  %v792_v25 = vld [vmem:[#allocation4 + $0x1030] sm:$0xff] }
  0x8b   :  { %3816 = vmatpush1.bf16.msra.mxu1 %v3815_v20  ;;  %v3837_v20 = vpack.c.bf16 %v345_v13, %v343_v12  ;;  %v4285_v24 = vpack.c.bf16 %v793_v15, %v791_v14  ;;  %v349_v27 = vld [vmem:[#allocation4 + $0x258] sm:$0xff]  ;;  %v795_v28 = vld [vmem:[#allocation4 + $0x1048] sm:$0xff]  ;;  %v4287_v31 = vpack.c.bf16 %v792_v25, %v790_v23  ;;  %v794_v35 = vld [vmem:[#allocation4 + $0x1040] sm:$0xff] }
  0x8c   :  { %4264 = vmatpush1.bf16.msra.mxu0 %v4263_v21  ;;  %3818 = vmatprep.subr.bf16.mxu1 %v3817_v22  ;;  %v342_v21 = vld [vmem:[#allocation4 + $0x220] sm:$0xff]  ;;  %v344_v22 = vld [vmem:[#allocation4 + $0x230] sm:$0xff]  ;;  %v797_v29 = vld [vmem:[#allocation4 + $0x1058] sm:$0xff] }
  0x8d   :  { %4266 = vmatprep.subr.bf16.mxu0 %v4265_v26  ;;  %v347_v26 = vld [vmem:[#allocation4 + $0x248] sm:$0xff]  ;;  %v3839_v30 = vpack.c.bf16 %v344_v22, %v342_v21  ;;  %v4289_v36 = vpack.c.bf16 %v797_v29, %v795_v28  ;;  %v796_v37 = vld [vmem:[#allocation4 + $0x1050] sm:$0xff]  ;;  %v353_v39 = vld [vmem:[#allocation4 + $0x278] sm:$0xff] }
  0x8e   :  { %v799_v40 = vld [vmem:[#allocation4 + $0x1068] sm:$0xff]  ;;  %v801_v41 = vld [vmem:[#allocation4 + $0x1078] sm:$0xff]  ;;  %v350_v43 = vld [vmem:[#allocation4 + $0x260] sm:$0xff] }
  0x8f   :  { %3820 = vmatpush1.bf16.msra.mxu1 %v3819_v32  ;;  %v3841_v32 = vpack.c.bf16 %v349_v27, %v347_v26  ;;  %v798_v47 = vld [vmem:[#allocation4 + $0x1060] sm:$0xff]  ;;  %v800_v48 = vld [vmem:[#allocation4 + $0x1070] sm:$0xff]  ;;  %v115_v49 = vld [vmem:[#allocation2 + $0x108] sm:$0xff] }
  0x90   :  { %4268 = vmatpush1.bf16.msra.mxu0 %v4267_v33  ;;  %3822 = vmatprep.subr.bf16.mxu1 %v3821_v34  ;;  %v346_v33 = vld [vmem:[#allocation4 + $0x240] sm:$0xff]  ;;  %v348_v34 = vld [vmem:[#allocation4 + $0x250] sm:$0xff]  ;;  %v355_v51 = vld [vmem:[#allocation4 + $0x288] sm:$0xff]  ;;  %v4295_v61 = vpack.c.bf16 %v800_v48, %v798_v47 }
  0x91   :  { %4270 = vmatprep.subr.bf16.mxu0 %v4269_v38  ;;  %v351_v38 = vld [vmem:[#allocation4 + $0x268] sm:$0xff]  ;;  %v3843_v42 = vpack.c.bf16 %v348_v34, %v346_v33  ;;  %v357_v52 = vld [vmem:[#allocation4 + $0x298] sm:$0xff]  ;;  %v356_v59 = vld [vmem:[#allocation4 + $0x290] sm:$0xff] }
  0x92   :  { %v129_v53 = vld [vmem:[#allocation2 + $0x178] sm:$0xff]  ;;  %v803_v54 = vld [vmem:[#allocation4 + $0x1088] sm:$0xff]  ;;  %v128_v60 = vld [vmem:[#allocation2 + $0x170] sm:$0xff] }
  0x93   :  { %3824 = vmatpush1.bf16.msra.mxu1 %v3823_v44  ;;  %v352_v44 = vld [vmem:[#allocation4 + $0x270] sm:$0xff]  ;;  %v805_v55 = vld [vmem:[#allocation4 + $0x1098] sm:$0xff]  ;;  %v802_v63 = vld [vmem:[#allocation4 + $0x1080] sm:$0xff] }
  0x94   :  { %4272 = vmatpush1.bf16.msra.mxu0 %v4271_v45  ;;  %3826 = vmatprep.subr.bf16.mxu1 %v3825_v46  ;;  %v4291_v45 = vpack.c.bf16 %v796_v37, %v794_v35  ;;  %v3845_v46 = vpack.c.bf16 %v353_v39, %v351_v38  ;;  %v804_v0 = vld [vmem:[#allocation4 + $0x1090] sm:$0xff]  ;;  %v147_v1 = vld [vmem:[#allocation2 + $0x208] sm:$0xff]  ;;  %v4297_v2 = vpack.c.bf16 %v805_v55, %v803_v54  ;;  %v809_v7 = vld [vmem:[#allocation4 + $0x10b8] sm:$0xff] }
  0x95   :  { %4274 = vmatprep.subr.bf16.mxu0 %v4273_v50  ;;  %v4293_v50 = vpack.c.bf16 %v801_v41, %v799_v40  ;;  %v359_v3 = vld [vmem:[#allocation4 + $0x2a8] sm:$0xff]  ;;  %v146_v8 = vld [vmem:[#allocation2 + $0x200] sm:$0xff]  ;;  %v360_v11 = vld [vmem:[#allocation4 + $0x2b0] sm:$0xff]  ;;  %v4299_v13 = vpack.c.bf16 %v804_v0, %v802_v63 }
  0x96   :  { %v160_v12 = vld [vmem:[#allocation2 + $0x270] sm:$0xff]  ;;  %v806_v15 = vld [vmem:[#allocation4 + $0x10a0] sm:$0xff]  ;;  %v193_v21 = vld [vmem:[#allocation2 + $0x378] sm:$0xff] }
  0x97   :  { %3828 = vmatpush1.bf16.msra.mxu1 %v3827_v56  ;;  %v114_v56 = vld [vmem:[#allocation2 + $0x100] sm:$0xff]  ;;  %v811_v22 = vld [vmem:[#allocation4 + $0x10c8] sm:$0xff]  ;;  %v813_v23 = vld [vmem:[#allocation4 + $0x10d8] sm:$0xff] }
  0x98   :  { %4276 = vmatpush1.bf16.msra.mxu0 %v4275_v57  ;;  %3830 = vmatprep.subr.bf16.mxu1 %v3829_v58  ;;  %v3847_v57 = vpack.c.bf16 %v352_v44, %v350_v43  ;;  %v354_v58 = vld [vmem:[#allocation4 + $0x280] sm:$0xff]  ;;  %v364_v27 = vld [vmem:[#allocation4 + $0x2d0] sm:$0xff]  ;;  %v211_v33 = vld [vmem:[#allocation2 + $0x408] sm:$0xff]  ;;  %v4305_v34 = vpack.c.bf16 %v813_v23, %v811_v22 }
  0x99   :  { %4278 = vmatprep.subr.bf16.mxu0 %v4277_v62  ;;  %v3849_v62 = vpack.c.bf16 %v357_v52, %v355_v51  ;;  %v3851_v9 = vpack.c.bf16 %v356_v59, %v354_v58  ;;  %v362_v26 = vld [vmem:[#allocation4 + $0x2c0] sm:$0xff]  ;;  %v192_v28 = vld [vmem:[#allocation2 + $0x370] sm:$0xff]  ;;  %v367_v35 = vld [vmem:[#allocation4 + $0x2e8] sm:$0xff] }
  0x9a   :  { %v225_v37 = vld [vmem:[#allocation2 + $0x478] sm:$0xff]  ;;  %v815_v38 = vld [vmem:[#allocation4 + $0x10e8] sm:$0xff]  ;;  %v210_v40 = vld [vmem:[#allocation2 + $0x400] sm:$0xff]  ;;  %v3859_v41 = vpack.c.bf16 %v364_v27, %v362_v26 }
  0x9b   :  { %3832 = vmatpush1.bf16.msra.mxu1 %v3831_v4  ;;  %v361_v4 = vld [vmem:[#allocation4 + $0x2b8] sm:$0xff]  ;;  %v368_v43 = vld [vmem:[#allocation4 + $0x2f0] sm:$0xff]  ;;  %v814_v47 = vld [vmem:[#allocation4 + $0x10e0] sm:$0xff] }
  0x9c   :  { %4280 = vmatpush1.bf16.msra.mxu0 %v4279_v5  ;;  %3834 = vmatprep.subr.bf16.mxu1 %v3833_v6  ;;  %v161_v5 = vld [vmem:[#allocation2 + $0x278] sm:$0xff]  ;;  %v807_v6 = vld [vmem:[#allocation4 + $0x10a8] sm:$0xff]  ;;  %v3853_v14 = vpack.c.bf16 %v361_v4, %v359_v3  ;;  %v224_v44 = vld [vmem:[#allocation2 + $0x470] sm:$0xff] }
  0x9d   :  { %4282 = vmatprep.subr.bf16.mxu0 %v4281_v10  ;;  %v358_v10 = vld [vmem:[#allocation4 + $0x2a0] sm:$0xff]  ;;  %v817_v39 = vld [vmem:[#allocation4 + $0x10f8] sm:$0xff]  ;;  %v816_v48 = vld [vmem:[#allocation4 + $0x10f0] sm:$0xff] }
  0x9e   :  { %1375 = vmatmul.mubr.f32.vlgmr.msra.gmra.mrb[0].mxu1 %v82_v16  ;;  %v808_v16 = vld [vmem:[#allocation4 + $0x10b0] sm:$0xff]  ;;  %v3855_v25 = vpack.c.bf16 %v360_v11, %v358_v10  ;;  %v371_v51 = vld [vmem:[#allocation4 + $0x308] sm:$0xff]  ;;  %v373_v52 = vld [vmem:[#allocation4 + $0x318] sm:$0xff] }
  0x9f   :  { %3836 = vmatpush1.bf16.msra.mxu1 %v3835_v17  ;;  %2082 = vmatmul.mubr.f32.vlgmr.msra.gmra.mrb[0].mxu0 %v96_v18  ;;  %v179_v17 = vld [vmem:[#allocation2 + $0x308] sm:$0xff]  ;;  %v4301_v18 = vpack.c.bf16 %v809_v7, %v807_v6  ;;  %v4303_v29 = vpack.c.bf16 %v808_v16, %v806_v15  ;;  %v821_v55 = vld [vmem:[#allocation4 + $0x1118] sm:$0xff]  ;;  %v370_v58 = vld [vmem:[#allocation4 + $0x300] sm:$0xff] }
  0xa0   :  { %4284 = vmatpush1.bf16.msra.mxu0 %v4283_v19  ;;  %3838 = vmatprep.subr.bf16.mxu1 %v3837_v20  ;;  %v363_v19 = vld [vmem:[#allocation4 + $0x2c8] sm:$0xff]  ;;  %v365_v20 = vld [vmem:[#allocation4 + $0x2d8] sm:$0xff]  ;;  %v372_v59 = vld [vmem:[#allocation4 + $0x310] sm:$0xff] }
  0xa1   :  { %4286 = vmatprep.subr.bf16.mxu0 %v4285_v24  ;;  %1380 = vmatprep.mubr.f32.mxu1 %v115_v49  ;;  %v178_v24 = vld [vmem:[#allocation2 + $0x300] sm:$0xff]  ;;  %v243_v49 = vld [vmem:[#allocation2 + $0x508] sm:$0xff]  ;;  %v820_v0 = vld [vmem:[#allocation4 + $0x1110] sm:$0xff] }
  0xa2   :  { %2087 = vmatprep.mubr.f32.mxu0 %v129_v53  ;;  %1381 = vmatmul.mubr.f32.gmra.mrb[2].mxu1 %v114_v56  ;;  %v257_v53 = vld [vmem:[#allocation2 + $0x578] sm:$0xff]  ;;  %v819_v54 = vld [vmem:[#allocation4 + $0x1108] sm:$0xff]  ;;  %v242_v56 = vld [vmem:[#allocation2 + $0x500] sm:$0xff] }
  0xa3   :  { %3840 = vmatpush1.bf16.msra.mxu1 %v3839_v30  ;;  %2088 = vmatmul.mubr.f32.gmra.mrb[2].mxu0 %v128_v60  ;;  %v3857_v30 = vpack.c.bf16 %v365_v20, %v363_v19  ;;  %v256_v60 = vld [vmem:[#allocation2 + $0x570] sm:$0xff]  ;;  %v818_v63 = vld [vmem:[#allocation4 + $0x1100] sm:$0xff]  ;;  %v375_v3 = vld [vmem:[#allocation4 + $0x328] sm:$0xff] }
  0xa4   :  { %4288 = vmatpush1.bf16.msra.mxu0 %v4287_v31  ;;  %3842 = vmatprep.subr.bf16.mxu1 %v3841_v32  ;;  %v810_v31 = vld [vmem:[#allocation4 + $0x10c0] sm:$0xff]  ;;  %v812_v32 = vld [vmem:[#allocation4 + $0x10d0] sm:$0xff]  ;;  %v377_v4 = vld [vmem:[#allocation4 + $0x338] sm:$0xff] }
  0xa5   :  { %4290 = vmatprep.subr.bf16.mxu0 %v4289_v36  ;;  %1386 = vmatprep.mubr.f32.mxu1 %v147_v1  ;;  %v369_v36 = vld [vmem:[#allocation4 + $0x2f8] sm:$0xff]  ;;  %v823_v6 = vld [vmem:[#allocation4 + $0x1128] sm:$0xff]  ;;  %v3869_v10 = vpack.c.bf16 %v377_v4, %v375_v3  ;;  %v374_v11 = vld [vmem:[#allocation4 + $0x320] sm:$0xff] }
  0xa6   :  { %2093 = vmatprep.mubr.f32.mxu0 %v161_v5  ;;  %1387 = vmatmul.mubr.f32.gmra.mrb[4].mxu1 %v146_v8  ;;  %v85_v1 = vld [vmem:[#allocation2 + $0x18] sm:$0xff]  ;;  %v99_v5 = vld [vmem:[#allocation2 + $0x88] sm:$0xff]  ;;  %v3867_v8 = vpack.c.bf16 %v372_v59, %v370_v58  ;;  %v824_v15 = vld [vmem:[#allocation4 + $0x1130] sm:$0xff] }
  0xa7   :  { %3844 = vmatpush1.bf16.msra.mxu1 %v3843_v42  ;;  %2094 = vmatmul.mubr.f32.gmra.mrb[4].mxu0 %v160_v12  ;;  %v366_v42 = vld [vmem:[#allocation4 + $0x2e0] sm:$0xff]  ;;  %v825_v7 = vld [vmem:[#allocation4 + $0x1138] sm:$0xff]  ;;  %v376_v12 = vld [vmem:[#allocation4 + $0x330] sm:$0xff] }
  0xa8   :  { %4292 = vmatpush1.bf16.msra.mxu0 %v4291_v45  ;;  %3846 = vmatprep.subr.bf16.mxu1 %v3845_v46  ;;  %v4307_v45 = vpack.c.bf16 %v812_v32, %v810_v31  ;;  %v3861_v46 = vpack.c.bf16 %v369_v36, %v367_v35  ;;  %v379_v16 = vld [vmem:[#allocation4 + $0x348] sm:$0xff]  ;;  %v829_v19 = vld [vmem:[#allocation4 + $0x1158] sm:$0xff]  ;;  %v3871_v20 = vpack.c.bf16 %v376_v12, %v374_v11  ;;  %v378_v23 = vld [vmem:[#allocation4 + $0x340] sm:$0xff] }
  0xa9   :  { %4294 = vmatprep.subr.bf16.mxu0 %v4293_v50  ;;  %1392 = vmatprep.mubr.f32.mxu1 %v179_v17  ;;  %v4309_v50 = vpack.c.bf16 %v817_v39, %v815_v38  ;;  %v381_v17 = vld [vmem:[#allocation4 + $0x358] sm:$0xff]  ;;  %v828_v27 = vld [vmem:[#allocation4 + $0x1150] sm:$0xff]  ;;  %v382_v35 = vld [vmem:[#allocation4 + $0x360] sm:$0xff] }
  0xaa   :  { %2099 = vmatprep.mubr.f32.mxu0 %v193_v21  ;;  %1393 = vmatmul.mubr.f32.gmra.mrb[6].mxu1 %v178_v24  ;;  %v3873_v22 = vpack.c.bf16 %v381_v17, %v379_v16  ;;  %v380_v24 = vld [vmem:[#allocation4 + $0x350] sm:$0xff]  ;;  %v833_v31 = vld [vmem:[#allocation4 + $0x1178] sm:$0xff]  ;;  %v390_v59 = vld [vmem:[#allocation4 + $0x3a0] sm:$0xff] }
  0xab   :  { %3848 = vmatpush1.bf16.msra.mxu1 %v3847_v57  ;;  %2100 = vmatmul.mubr.f32.gmra.mrb[6].mxu0 %v192_v28  ;;  %v3863_v57 = vpack.c.bf16 %v368_v43, %v366_v42  ;;  %v383_v28 = vld [vmem:[#allocation4 + $0x368] sm:$0xff]  ;;  %v3875_v32 = vpack.c.bf16 %v380_v24, %v378_v23  ;;  %v384_v36 = vld [vmem:[#allocation4 + $0x370] sm:$0xff]  ;;  %v837_v43 = vld [vmem:[#allocation4 + $0x1198] sm:$0xff] }
  0xac   :  { %4296 = vmatpush1.bf16.msra.mxu0 %v4295_v61  ;;  %3850 = vmatprep.subr.bf16.mxu1 %v3849_v62  ;;  %v4311_v61 = vpack.c.bf16 %v816_v48, %v814_v47  ;;  %v3865_v62 = vpack.c.bf16 %v373_v52, %v371_v51  ;;  %v832_v39 = vld [vmem:[#allocation4 + $0x1170] sm:$0xff]  ;;  %v835_v42 = vld [vmem:[#allocation4 + $0x1188] sm:$0xff]  ;;  %v386_v47 = vld [vmem:[#allocation4 + $0x380] sm:$0xff] }
  0xad   :  { %4298 = vmatprep.subr.bf16.mxu0 %v4297_v2  ;;  %1398 = vmatprep.mubr.f32.mxu1 %v211_v33  ;;  %v4313_v2 = vpack.c.bf16 %v821_v55, %v819_v54  ;;  %v388_v48 = vld [vmem:[#allocation4 + $0x390] sm:$0xff]  ;;  %v391_v52 = vld [vmem:[#allocation4 + $0x3a8] sm:$0xff]  ;;  %v841_v55 = vld [vmem:[#allocation4 + $0x11b8] sm:$0xff] }
  0xae   :  { %2105 = vmatprep.mubr.f32.mxu0 %v225_v37  ;;  %1399 = vmatmul.mubr.f32.gmra.mrb[8].mxu1 %v210_v40  ;;  %v830_v37 = vld [vmem:[#allocation4 + $0x1160] sm:$0xff]  ;;  %v387_v40 = vld [vmem:[#allocation4 + $0x388] sm:$0xff]  ;;  %v836_v51 = vld [vmem:[#allocation4 + $0x1190] sm:$0xff] }
  0xaf   :  { %3852 = vmatpush1.bf16.msra.mxu1 %v3851_v9  ;;  %2106 = vmatmul.mubr.f32.gmra.mrb[8].mxu0 %v224_v44  ;;  %v4315_v9 = vpack.c.bf16 %v820_v0, %v818_v63  ;;  %v3879_v44 = vpack.c.bf16 %v384_v36, %v382_v35  ;;  %v839_v54 = vld [vmem:[#allocation4 + $0x11a8] sm:$0xff]  ;;  %v840_v63 = vld [vmem:[#allocation4 + $0x11b0] sm:$0xff]  ;;  %v845_v3 = vld [vmem:[#allocation4 + $0x11d8] sm:$0xff] }
  0xb0   :  { %4300 = vmatpush1.bf16.msra.mxu0 %v4299_v13  ;;  %3854 = vmatprep.subr.bf16.mxu1 %v3853_v14  ;;  %v822_v13 = vld [vmem:[#allocation4 + $0x1120] sm:$0xff]  ;;  %v4317_v14 = vpack.c.bf16 %v825_v7, %v823_v6  ;;  %v395_v0 = vld [vmem:[#allocation4 + $0x3c8] sm:$0xff]  ;;  %v844_v11 = vld [vmem:[#allocation4 + $0x11d0] sm:$0xff] }
  0xb1   :  { %4302 = vmatprep.subr.bf16.mxu0 %v4301_v18  ;;  %1404 = vmatprep.mubr.f32.mxu1 %v243_v49  ;;  %v827_v18 = vld [vmem:[#allocation4 + $0x1148] sm:$0xff]  ;;  %v4319_v21 = vpack.c.bf16 %v824_v15, %v822_v13  ;;  %v834_v49 = vld [vmem:[#allocation4 + $0x1180] sm:$0xff]  ;;  %v401_v13 = vld [vmem:[#allocation4 + $0x3f8] sm:$0xff] }
  0xb2   :  { %2111 = vmatprep.mubr.f32.mxu0 %v257_v53  ;;  %1405 = vmatmul.mubr.f32.gmra.mrb[10].mxu1 %v242_v56  ;;  %v4321_v26 = vpack.c.bf16 %v829_v19, %v827_v18  ;;  %v393_v53 = vld [vmem:[#allocation4 + $0x3b8] sm:$0xff]  ;;  %v3883_v56 = vpack.c.bf16 %v388_v48, %v386_v47  ;;  %v394_v7 = vld [vmem:[#allocation4 + $0x3c0] sm:$0xff]  ;;  %v399_v12 = vld [vmem:[#allocation4 + $0x3e8] sm:$0xff] }
  0xb3   :  { %3856 = vmatpush1.bf16.msra.mxu1 %v3855_v25  ;;  %2112 = vmatmul.mubr.f32.gmra.mrb[10].mxu0 %v256_v60  ;;  %v826_v25 = vld [vmem:[#allocation4 + $0x1140] sm:$0xff]  ;;  %v3885_v58 = vpack.c.bf16 %v393_v53, %v391_v52  ;;  %v392_v60 = vld [vmem:[#allocation4 + $0x3b0] sm:$0xff]  ;;  %v849_v15 = vld [vmem:[#allocation4 + $0x11f8] sm:$0xff]  ;;  %v3893_v18 = vpack.c.bf16 %v401_v13, %v399_v12 }
  0xb4   :  { %4304 = vmatpush1.bf16.msra.mxu0 %v4303_v29  ;;  %3858 = vmatprep.subr.bf16.mxu1 %v3857_v30  ;;  %v385_v29 = vld [vmem:[#allocation4 + $0x378] sm:$0xff]  ;;  %v831_v30 = vld [vmem:[#allocation4 + $0x1168] sm:$0xff]  ;;  %v4323_v33 = vpack.c.bf16 %v828_v27, %v826_v25  ;;  %v3887_v4 = vpack.c.bf16 %v392_v60, %v390_v59  ;;  %v398_v19 = vld [vmem:[#allocation4 + $0x3e0] sm:$0xff] }
  0xb5   :  { %4306 = vmatprep.subr.bf16.mxu0 %v4305_v34  ;;  %1475 = vmatprep.mubr.f32.mxu1 %v85_v1  ;;  %v3877_v34 = vpack.c.bf16 %v385_v29, %v383_v28  ;;  %v4325_v38 = vpack.c.bf16 %v833_v31, %v831_v30  ;;  %v397_v1 = vld [vmem:[#allocation4 + $0x3d8] sm:$0xff]  ;;  %v848_v23 = vld [vmem:[#allocation4 + $0x11f0] sm:$0xff]  ;;  %v403_v24 = vld [vmem:[#allocation4 + $0x408] sm:$0xff] }
  0xb6   :  { %2182 = vmatprep.mubr.f32.mxu0 %v99_v5  ;;  %v3889_v6 = vpack.c.bf16 %v397_v1, %v395_v0  ;;  %v405_v25 = vld [vmem:[#allocation4 + $0x418] sm:$0xff]  ;;  %v402_v31 = vld [vmem:[#allocation4 + $0x400] sm:$0xff]  ;;  %v852_v35 = vld [vmem:[#allocation4 + $0x1210] sm:$0xff] }
  0xb7   :  { %3860 = vmatpush1.bf16.msra.mxu1 %v3859_v41  ;;  %v389_v41 = vld [vmem:[#allocation4 + $0x398] sm:$0xff]  ;;  %v3897_v30 = vpack.c.bf16 %v405_v25, %v403_v24  ;;  %v407_v36 = vld [vmem:[#allocation4 + $0x428] sm:$0xff]  ;;  %v854_v47 = vld [vmem:[#allocation4 + $0x1220] sm:$0xff] }
  0xb8   :  { %4308 = vmatpush1.bf16.msra.mxu0 %v4307_v45  ;;  %3862 = vmatprep.subr.bf16.mxu1 %v3861_v46  ;;  %v4327_v45 = vpack.c.bf16 %v832_v39, %v830_v37  ;;  %v3881_v46 = vpack.c.bf16 %v389_v41, %v387_v40  ;;  %v853_v27 = vld [vmem:[#allocation4 + $0x1218] sm:$0xff]  ;;  %v84_v40 = vld [vmem:[#allocation2 + $0x10] sm:$0xff]  ;;  %v859_v52 = vld [vmem:[#allocation4 + $0x1248] sm:$0xff] }
  0xb9   :  { %4310 = vmatprep.subr.bf16.mxu0 %v4309_v50  ;;  %v4329_v50 = vpack.c.bf16 %v837_v43, %v835_v42  ;;  %v409_v37 = vld [vmem:[#allocation4 + $0x438] sm:$0xff]  ;;  %v98_v42 = vld [vmem:[#allocation2 + $0x80] sm:$0xff]  ;;  %v860_v1 = vld [vmem:[#allocation4 + $0x1250] sm:$0xff] }
  0xba   :  { %v857_v39 = vld [vmem:[#allocation4 + $0x1238] sm:$0xff]  ;;  %v416_v13 = vld [vmem:[#allocation4 + $0x470] sm:$0xff]  ;;  %v418_v24 = vld [vmem:[#allocation4 + $0x480] sm:$0xff] }
  0xbb   :  { %3864 = vmatpush1.bf16.msra.mxu1 %v3863_v57  ;;  %v4331_v57 = vpack.c.bf16 %v836_v51, %v834_v49  ;;  %v856_v49 = vld [vmem:[#allocation4 + $0x1230] sm:$0xff]  ;;  %v413_v51 = vld [vmem:[#allocation4 + $0x458] sm:$0xff]  ;;  %v195_v25 = vld [vmem:[#allocation2 + $0x388] sm:$0xff] }
  0xbc   :  { %4312 = vmatpush1.bf16.msra.mxu0 %v4311_v61  ;;  %3866 = vmatprep.subr.bf16.mxu1 %v3865_v62  ;;  %v838_v61 = vld [vmem:[#allocation4 + $0x11a0] sm:$0xff]  ;;  %v4333_v62 = vpack.c.bf16 %v841_v55, %v839_v54  ;;  %v861_v53 = vld [vmem:[#allocation4 + $0x1258] sm:$0xff]  ;;  %v4351_v59 = vpack.c.bf16 %v856_v49, %v854_v47  ;;  %v872_v49 = vld [vmem:[#allocation4 + $0x12b0] sm:$0xff] }
  0xbd   :  { %4314 = vmatprep.subr.bf16.mxu0 %v4313_v2  ;;  %v843_v2 = vld [vmem:[#allocation4 + $0x11c8] sm:$0xff]  ;;  %v4335_v5 = vpack.c.bf16 %v840_v63, %v838_v61  ;;  %v117_v54 = vld [vmem:[#allocation2 + $0x118] sm:$0xff]  ;;  %v412_v61 = vld [vmem:[#allocation4 + $0x450] sm:$0xff]  ;;  %v4353_v0 = vpack.c.bf16 %v861_v53, %v859_v52 }
  0xbe   :  { %v130_v63 = vld [vmem:[#allocation2 + $0x180] sm:$0xff]  ;;  %v875_v52 = vld [vmem:[#allocation4 + $0x12c8] sm:$0xff]  ;;  %v877_v53 = vld [vmem:[#allocation4 + $0x12d8] sm:$0xff] }
  0xbf   :  { %3868 = vmatpush1.bf16.msra.mxu1 %v3867_v8  ;;  %v396_v8 = vld [vmem:[#allocation4 + $0x3d0] sm:$0xff]  ;;  %v226_v47 = vld [vmem:[#allocation2 + $0x480] sm:$0xff]  ;;  %vm5482_vm3 = vmpackc.low %vm3157_vm0, %vm5215_vm2 }
  0xc0   :  { %4316 = vmatpush1.bf16.msra.mxu0 %v4315_v9  ;;  %3870 = vmatprep.subr.bf16.mxu1 %v3869_v10  ;;  %v842_v9 = vld [vmem:[#allocation4 + $0x11c0] sm:$0xff]  ;;  %v4337_v10 = vpack.c.bf16 %v845_v3, %v843_v2  ;;  %v3891_v16 = vpack.c.bf16 %v396_v8, %v394_v7  ;;  %v415_v2 = vld [vmem:[#allocation4 + $0x468] sm:$0xff]  ;;  %v417_v3 = vld [vmem:[#allocation4 + $0x478] sm:$0xff] }
  0xc1   :  { %4318 = vmatprep.subr.bf16.mxu0 %v4317_v14  ;;  %v847_v14 = vld [vmem:[#allocation4 + $0x11e8] sm:$0xff]  ;;  %v4339_v17 = vpack.c.bf16 %v844_v11, %v842_v9  ;;  %v414_v8 = vld [vmem:[#allocation4 + $0x460] sm:$0xff]  ;;  %v3909_v12 = vpack.c.bf16 %v417_v3, %v415_v2  ;;  %v433_v3 = vld [vmem:[#allocation4 + $0x4f8] sm:$0xff] }
  0xc2   :  { %v163_v9 = vld [vmem:[#allocation2 + $0x288] sm:$0xff] }
  0xc3   :  { %3872 = vmatpush1.bf16.msra.mxu1 %v3871_v20  ;;  %v400_v20 = vld [vmem:[#allocation4 + $0x3f0] sm:$0xff]  ;;  %v431_v2 = vld [vmem:[#allocation4 + $0x4e8] sm:$0xff] }
  0xc4   :  { %4320 = vmatpush1.bf16.msra.mxu0 %v4319_v21  ;;  %3874 = vmatprep.subr.bf16.mxu1 %v3873_v22  ;;  %v846_v21 = vld [vmem:[#allocation4 + $0x11e0] sm:$0xff]  ;;  %v4341_v22 = vpack.c.bf16 %v849_v15, %v847_v14  ;;  %v3895_v28 = vpack.c.bf16 %v400_v20, %v398_v19  ;;  %v421_v19 = vld [vmem:[#allocation4 + $0x498] sm:$0xff]  ;;  %v867_v20 = vld [vmem:[#allocation4 + $0x1288] sm:$0xff] }
  0xc5   :  { %4322 = vmatprep.subr.bf16.mxu0 %v4321_v26  ;;  %v851_v26 = vld [vmem:[#allocation4 + $0x1208] sm:$0xff]  ;;  %v4343_v29 = vpack.c.bf16 %v848_v23, %v846_v21  ;;  %v862_v14 = vld [vmem:[#allocation4 + $0x1260] sm:$0xff]  ;;  %v869_v21 = vld [vmem:[#allocation4 + $0x1298] sm:$0xff]  ;;  %v3911_v23 = vpack.c.bf16 %v416_v13, %v414_v8 }
  0xc6   :  { %v162_v15 = vld [vmem:[#allocation2 + $0x280] sm:$0xff]  ;;  %v101_v8 = vld [vmem:[#allocation2 + $0x98] sm:$0xff] }
  0xc7   :  { %3876 = vmatpush1.bf16.msra.mxu1 %v3875_v32  ;;  %v404_v32 = vld [vmem:[#allocation4 + $0x410] sm:$0xff]  ;;  %v878_v13 = vld [vmem:[#allocation4 + $0x12e0] sm:$0xff] }
  0xc8   :  { %4324 = vmatpush1.bf16.msra.mxu0 %v4323_v33  ;;  %3878 = vmatprep.subr.bf16.mxu1 %v3877_v34  ;;  %v850_v33 = vld [vmem:[#allocation4 + $0x1200] sm:$0xff]  ;;  %v4345_v34 = vpack.c.bf16 %v853_v27, %v851_v26  ;;  %v3899_v41 = vpack.c.bf16 %v404_v32, %v402_v31  ;;  %v180_v26 = vld [vmem:[#allocation2 + $0x310] sm:$0xff]  ;;  %v4361_v32 = vpack.c.bf16 %v869_v21, %v867_v20 }
  0xc9   :  { %4326 = vmatprep.subr.bf16.mxu0 %v4325_v38  ;;  %v855_v38 = vld [vmem:[#allocation4 + $0x1228] sm:$0xff]  ;;  %v4347_v43 = vpack.c.bf16 %v852_v35, %v850_v33  ;;  %v194_v31 = vld [vmem:[#allocation2 + $0x380] sm:$0xff]  ;;  %v868_v33 = vld [vmem:[#allocation4 + $0x1290] sm:$0xff] }
  0xca   :  { %v4349_v48 = vpack.c.bf16 %v857_v39, %v855_v38  ;;  %v425_v35 = vld [vmem:[#allocation4 + $0x4b8] sm:$0xff] }
  0xcb   :  { %3880 = vmatpush1.bf16.msra.mxu1 %v3879_v44  ;;  %v3901_v44 = vpack.c.bf16 %v409_v37, %v407_v36  ;;  %v871_v36 = vld [vmem:[#allocation4 + $0x12a8] sm:$0xff]  ;;  %v873_v37 = vld [vmem:[#allocation4 + $0x12b8] sm:$0xff] }
  0xcc   :  { %4328 = vmatpush1.bf16.msra.mxu0 %v4327_v45  ;;  %3882 = vmatprep.subr.bf16.mxu1 %v3881_v46  ;;  %v406_v45 = vld [vmem:[#allocation4 + $0x420] sm:$0xff]  ;;  %v408_v46 = vld [vmem:[#allocation4 + $0x430] sm:$0xff]  ;;  %v213_v38 = vld [vmem:[#allocation2 + $0x418] sm:$0xff] }
  0xcd   :  { %4330 = vmatprep.subr.bf16.mxu0 %v4329_v50  ;;  %v411_v50 = vld [vmem:[#allocation4 + $0x448] sm:$0xff]  ;;  %v3903_v55 = vpack.c.bf16 %v408_v46, %v406_v45  ;;  %v424_v45 = vld [vmem:[#allocation4 + $0x4b0] sm:$0xff]  ;;  %v870_v46 = vld [vmem:[#allocation4 + $0x12a0] sm:$0xff] }
  0xce   :  { %v3905_v60 = vpack.c.bf16 %v413_v51, %v411_v50  ;;  %v427_v50 = vld [vmem:[#allocation4 + $0x4c8] sm:$0xff]  ;;  %v429_v51 = vld [vmem:[#allocation4 + $0x4d8] sm:$0xff] }
  0xcf   :  { %3884 = vmatpush1.bf16.msra.mxu1 %v3883_v56  ;;  %v410_v56 = vld [vmem:[#allocation4 + $0x440] sm:$0xff] }
  0xd0   :  { %4332 = vmatpush1.bf16.msra.mxu0 %v4331_v57  ;;  %3886 = vmatprep.subr.bf16.mxu1 %v3885_v58  ;;  %v131_v57 = vld [vmem:[#allocation2 + $0x188] sm:$0xff]  ;;  %v116_v58 = vld [vmem:[#allocation2 + $0x110] sm:$0xff]  ;;  %v3907_v7 = vpack.c.bf16 %v412_v61, %v410_v56  ;;  %v426_v56 = vld [vmem:[#allocation4 + $0x4c0] sm:$0xff] }
  0xd1   :  { %4334 = vmatprep.subr.bf16.mxu0 %v4333_v62  ;;  %v858_v62 = vld [vmem:[#allocation4 + $0x1240] sm:$0xff]  ;;  %v428_v61 = vld [vmem:[#allocation4 + $0x4d0] sm:$0xff] }
  0xd2   :  { %v4355_v11 = vpack.c.bf16 %v860_v1, %v858_v62  ;;  %v874_v62 = vld [vmem:[#allocation4 + $0x12c0] sm:$0xff]  ;;  %v876_v1 = vld [vmem:[#allocation4 + $0x12d0] sm:$0xff] }
  0xd3   :  { %3888 = vmatpush1.bf16.msra.mxu1 %v3887_v4  ;;  %v863_v4 = vld [vmem:[#allocation4 + $0x1268] sm:$0xff] }
  0xd4   :  { %4336 = vmatpush1.bf16.msra.mxu0 %v4335_v5  ;;  %3890 = vmatprep.subr.bf16.mxu1 %v3889_v6  ;;  %v865_v5 = vld [vmem:[#allocation4 + $0x1278] sm:$0xff] }
  0xd5   :  { %4338 = vmatprep.subr.bf16.mxu0 %v4337_v10  ;;  %v149_v6 = vld [vmem:[#allocation2 + $0x218] sm:$0xff]  ;;  %v148_v10 = vld [vmem:[#allocation2 + $0x210] sm:$0xff] }
  0xd7   :  { %3892 = vmatpush1.bf16.msra.mxu1 %v3891_v16  ;;  %v4357_v16 = vpack.c.bf16 %v865_v5, %v863_v4  ;;  %v879_v4 = vld [vmem:[#allocation4 + $0x12e8] sm:$0xff]  ;;  %v881_v5 = vld [vmem:[#allocation4 + $0x12f8] sm:$0xff] }
  0xd8   :  { %4340 = vmatpush1.bf16.msra.mxu0 %v4339_v17  ;;  %3894 = vmatprep.subr.bf16.mxu1 %v3893_v18  ;;  %v864_v17 = vld [vmem:[#allocation4 + $0x1270] sm:$0xff]  ;;  %v419_v18 = vld [vmem:[#allocation4 + $0x488] sm:$0xff] }
  0xd9   :  { %4342 = vmatprep.subr.bf16.mxu0 %v4341_v22  ;;  %v181_v22 = vld [vmem:[#allocation2 + $0x318] sm:$0xff]  ;;  %v4359_v27 = vpack.c.bf16 %v864_v17, %v862_v14  ;;  %v4373_v14 = vpack.c.bf16 %v881_v5, %v879_v4 }
  0xda   :  { %v437_v17 = vld [vmem:[#allocation4 + $0x518] sm:$0xff] }
  0xdb   :  { %3896 = vmatpush1.bf16.msra.mxu1 %v3895_v28  ;;  %v3913_v28 = vpack.c.bf16 %v421_v19, %v419_v18  ;;  %v883_v18 = vld [vmem:[#allocation4 + $0x1308] sm:$0xff]  ;;  %v885_v19 = vld [vmem:[#allocation4 + $0x1318] sm:$0xff] }
  0xdc   :  { %4344 = vmatpush1.bf16.msra.mxu0 %v4343_v29  ;;  %3898 = vmatprep.subr.bf16.mxu1 %v3897_v30  ;;  %v420_v29 = vld [vmem:[#allocation4 + $0x490] sm:$0xff]  ;;  %v866_v30 = vld [vmem:[#allocation4 + $0x1280] sm:$0xff] }
  0xdd   :  { %4346 = vmatprep.subr.bf16.mxu0 %v4345_v34  ;;  %v423_v34 = vld [vmem:[#allocation4 + $0x4a8] sm:$0xff]  ;;  %v3915_v39 = vpack.c.bf16 %v420_v29, %v418_v24  ;;  %v436_v24 = vld [vmem:[#allocation4 + $0x510] sm:$0xff]  ;;  %v441_v29 = vld [vmem:[#allocation4 + $0x538] sm:$0xff] }
  0xde   :  { %1476 = vmatmul.mubr.f32.vlgmr.msra.gmra.mrb[0].mxu1 %v84_v40  ;;  %v422_v40 = vld [vmem:[#allocation4 + $0x4a0] sm:$0xff] }
  0xdf   :  { %3900 = vmatpush1.bf16.msra.mxu1 %v3899_v41  ;;  %2183 = vmatmul.mubr.f32.vlgmr.msra.gmra.mrb[0].mxu0 %v98_v42  ;;  %v227_v41 = vld [vmem:[#allocation2 + $0x488] sm:$0xff]  ;;  %v212_v42 = vld [vmem:[#allocation2 + $0x410] sm:$0xff] }
  0xe0   :  { %4348 = vmatpush1.bf16.msra.mxu0 %v4347_v43  ;;  %3902 = vmatprep.subr.bf16.mxu1 %v3901_v44  ;;  %v4363_v43 = vpack.c.bf16 %v868_v33, %v866_v30  ;;  %v3917_v44 = vpack.c.bf16 %v425_v35, %v423_v34  ;;  %v887_v30 = vld [vmem:[#allocation4 + $0x1328] sm:$0xff]  ;;  %v438_v35 = vld [vmem:[#allocation4 + $0x520] sm:$0xff] }
  0xe1   :  { %4350 = vmatprep.subr.bf16.mxu0 %v4349_v48  ;;  %1481 = vmatprep.mubr.f32.mxu1 %v117_v54  ;;  %v4365_v48 = vpack.c.bf16 %v873_v37, %v871_v36  ;;  %v245_v54 = vld [vmem:[#allocation2 + $0x518] sm:$0xff]  ;;  %v440_v36 = vld [vmem:[#allocation4 + $0x530] sm:$0xff]  ;;  %v886_v37 = vld [vmem:[#allocation4 + $0x1320] sm:$0xff] }
  0xe2   :  { %2188 = vmatprep.mubr.f32.mxu0 %v131_v57  ;;  %1482 = vmatmul.mubr.f32.gmra.mrb[2].mxu1 %v116_v58  ;;  %v259_v57 = vld [vmem:[#allocation2 + $0x588] sm:$0xff]  ;;  %v244_v58 = vld [vmem:[#allocation2 + $0x510] sm:$0xff] }
  0xe3   :  { %3904 = vmatpush1.bf16.msra.mxu1 %v3903_v55  ;;  %2189 = vmatmul.mubr.f32.gmra.mrb[2].mxu0 %v130_v63  ;;  %v3919_v55 = vpack.c.bf16 %v424_v45, %v422_v40  ;;  %v258_v63 = vld [vmem:[#allocation2 + $0x580] sm:$0xff]  ;;  %v443_v40 = vld [vmem:[#allocation4 + $0x548] sm:$0xff] }
  0xe4   :  { %4352 = vmatpush1.bf16.msra.mxu0 %v4351_v59  ;;  %3906 = vmatprep.subr.bf16.mxu1 %v3905_v60  ;;  %v4367_v59 = vpack.c.bf16 %v872_v49, %v870_v46  ;;  %v3921_v60 = vpack.c.bf16 %v429_v51, %v427_v50  ;;  %v890_v49 = vld [vmem:[#allocation4 + $0x1340] sm:$0xff]  ;;  %v892_v51 = vld [vmem:[#allocation4 + $0x1350] sm:$0xff] }
  0xe5   :  { %4354 = vmatprep.subr.bf16.mxu0 %v4353_v0  ;;  %1487 = vmatprep.mubr.f32.mxu1 %v149_v6  ;;  %v4369_v0 = vpack.c.bf16 %v877_v53, %v875_v52  ;;  %v87_v6 = vld [vmem:[#allocation2 + $0x28] sm:$0xff]  ;;  %v449_v53 = vld [vmem:[#allocation4 + $0x578] sm:$0xff] }
  0xe6   :  { %2194 = vmatprep.mubr.f32.mxu0 %v163_v9  ;;  %1488 = vmatmul.mubr.f32.gmra.mrb[4].mxu1 %v148_v10  ;;  %v4371_v9 = vpack.c.bf16 %v876_v1, %v874_v62  ;;  %v3925_v10 = vpack.c.bf16 %v433_v3, %v431_v2  ;;  %v447_v52 = vld [vmem:[#allocation4 + $0x568] sm:$0xff]  ;;  %v453_v1 = vld [vmem:[#allocation4 + $0x598] sm:$0xff] }
  0xe7   :  { %3908 = vmatpush1.bf16.msra.mxu1 %v3907_v7  ;;  %2195 = vmatmul.mubr.f32.gmra.mrb[4].mxu0 %v162_v15  ;;  %v3923_v7 = vpack.c.bf16 %v428_v61, %v426_v56  ;;  %v880_v15 = vld [vmem:[#allocation4 + $0x12f0] sm:$0xff]  ;;  %v894_v61 = vld [vmem:[#allocation4 + $0x1360] sm:$0xff]  ;;  %v899_v2 = vld [vmem:[#allocation4 + $0x1388] sm:$0xff] }
  0xe8   :  { %4356 = vmatpush1.bf16.msra.mxu0 %v4355_v11  ;;  %3910 = vmatprep.subr.bf16.mxu1 %v3909_v12  ;;  %v430_v11 = vld [vmem:[#allocation4 + $0x4e0] sm:$0xff]  ;;  %v432_v12 = vld [vmem:[#allocation4 + $0x4f0] sm:$0xff]  ;;  %v4375_v21 = vpack.c.bf16 %v880_v15, %v878_v13  ;;  %v901_v3 = vld [vmem:[#allocation4 + $0x1398] sm:$0xff] }
  0xe9   :  { %4358 = vmatprep.subr.bf16.mxu0 %v4357_v16  ;;  %1493 = vmatprep.mubr.f32.mxu1 %v181_v22  ;;  %v435_v16 = vld [vmem:[#allocation4 + $0x508] sm:$0xff]  ;;  %v3927_v20 = vpack.c.bf16 %v432_v12, %v430_v11  ;;  %v900_v11 = vld [vmem:[#allocation4 + $0x1390] sm:$0xff]  ;;  %v457_v13 = vld [vmem:[#allocation4 + $0x5b8] sm:$0xff] }
  0xea   :  { %2200 = vmatprep.mubr.f32.mxu0 %v195_v25  ;;  %1494 = vmatmul.mubr.f32.gmra.mrb[6].mxu1 %v180_v26  ;;  %v3929_v22 = vpack.c.bf16 %v437_v17, %v435_v16  ;;  %v882_v25 = vld [vmem:[#allocation4 + $0x1300] sm:$0xff]  ;;  %v4377_v26 = vpack.c.bf16 %v885_v19, %v883_v18  ;;  %v455_v12 = vld [vmem:[#allocation4 + $0x5a8] sm:$0xff]  ;;  %v905_v15 = vld [vmem:[#allocation4 + $0x13b8] sm:$0xff] }
  0xeb   :  { %3912 = vmatpush1.bf16.msra.mxu1 %v3911_v23  ;;  %2201 = vmatmul.mubr.f32.gmra.mrb[6].mxu0 %v194_v31  ;;  %v434_v23 = vld [vmem:[#allocation4 + $0x500] sm:$0xff]  ;;  %v889_v31 = vld [vmem:[#allocation4 + $0x1338] sm:$0xff]  ;;  %v3949_v18 = vpack.c.bf16 %v457_v13, %v455_v12  ;;  %v923_v12 = vld [vmem:[#allocation4 + $0x1448] sm:$0xff] }
  0xec   :  { %4360 = vmatpush1.bf16.msra.mxu0 %v4359_v27  ;;  %3914 = vmatprep.subr.bf16.mxu1 %v3913_v28  ;;  %v884_v27 = vld [vmem:[#allocation4 + $0x1310] sm:$0xff]  ;;  %v439_v28 = vld [vmem:[#allocation4 + $0x528] sm:$0xff]  ;;  %v454_v19 = vld [vmem:[#allocation4 + $0x5a0] sm:$0xff] }
  0xed   :  { %4362 = vmatprep.subr.bf16.mxu0 %v4361_v32  ;;  %1499 = vmatprep.mubr.f32.mxu1 %v213_v38  ;;  %v3931_v32 = vpack.c.bf16 %v436_v24, %v434_v23  ;;  %v4379_v33 = vpack.c.bf16 %v884_v27, %v882_v25  ;;  %v3933_v34 = vpack.c.bf16 %v441_v29, %v439_v28  ;;  %v904_v23 = vld [vmem:[#allocation4 + $0x13b0] sm:$0xff]  ;;  %v459_v24 = vld [vmem:[#allocation4 + $0x5c8] sm:$0xff]  ;;  %v461_v25 = vld [vmem:[#allocation4 + $0x5d8] sm:$0xff] }
  0xee   :  { %2206 = vmatprep.mubr.f32.mxu0 %v227_v41  ;;  %1500 = vmatmul.mubr.f32.gmra.mrb[8].mxu1 %v212_v42  ;;  %v4381_v38 = vpack.c.bf16 %v889_v31, %v887_v30  ;;  %v445_v41 = vld [vmem:[#allocation4 + $0x558] sm:$0xff]  ;;  %v891_v42 = vld [vmem:[#allocation4 + $0x1348] sm:$0xff]  ;;  %v3953_v30 = vpack.c.bf16 %v461_v25, %v459_v24  ;;  %v458_v31 = vld [vmem:[#allocation4 + $0x5c0] sm:$0xff] }
  0xef   :  { %3916 = vmatpush1.bf16.msra.mxu1 %v3915_v39  ;;  %2207 = vmatmul.mubr.f32.gmra.mrb[8].mxu0 %v226_v47  ;;  %v888_v39 = vld [vmem:[#allocation4 + $0x1330] sm:$0xff]  ;;  %v3937_v46 = vpack.c.bf16 %v445_v41, %v443_v40  ;;  %v442_v47 = vld [vmem:[#allocation4 + $0x540] sm:$0xff]  ;;  %v909_v27 = vld [vmem:[#allocation4 + $0x13d8] sm:$0xff] }
  0xf0   :  { %4364 = vmatpush1.bf16.msra.mxu0 %v4363_v43  ;;  %3918 = vmatprep.subr.bf16.mxu1 %v3917_v44  ;;  %v893_v43 = vld [vmem:[#allocation4 + $0x1358] sm:$0xff]  ;;  %v3935_v44 = vpack.c.bf16 %v440_v36, %v438_v35  ;;  %v4383_v45 = vpack.c.bf16 %v888_v39, %v886_v37  ;;  %v908_v35 = vld [vmem:[#allocation4 + $0x13d0] sm:$0xff]  ;;  %v463_v36 = vld [vmem:[#allocation4 + $0x5e8] sm:$0xff] }
  0xf1   :  { %4366 = vmatprep.subr.bf16.mxu0 %v4365_v48  ;;  %1505 = vmatprep.mubr.f32.mxu1 %v245_v54  ;;  %v444_v48 = vld [vmem:[#allocation4 + $0x550] sm:$0xff]  ;;  %v4385_v50 = vpack.c.bf16 %v893_v43, %v891_v42  ;;  %v895_v54 = vld [vmem:[#allocation4 + $0x1368] sm:$0xff]  ;;  %v465_v37 = vld [vmem:[#allocation4 + $0x5f8] sm:$0xff] }
  0xf2   :  { %2212 = vmatprep.mubr.f32.mxu0 %v259_v57  ;;  %1506 = vmatmul.mubr.f32.gmra.mrb[10].mxu1 %v244_v58  ;;  %v3939_v56 = vpack.c.bf16 %v444_v48, %v442_v47  ;;  %v4387_v57 = vpack.c.bf16 %v892_v51, %v890_v49  ;;  %v3941_v58 = vpack.c.bf16 %v449_v53, %v447_v52  ;;  %v913_v39 = vld [vmem:[#allocation4 + $0x13f8] sm:$0xff]  ;;  %v462_v43 = vld [vmem:[#allocation4 + $0x5e0] sm:$0xff]  ;;  %v912_v47 = vld [vmem:[#allocation4 + $0x13f0] sm:$0xff] }
  0xf3   :  { %3920 = vmatpush1.bf16.msra.mxu1 %v3919_v55  ;;  %2213 = vmatmul.mubr.f32.gmra.mrb[10].mxu0 %v258_v63  ;;  %v897_v55 = vld [vmem:[#allocation4 + $0x1378] sm:$0xff]  ;;  %v896_v63 = vld [vmem:[#allocation4 + $0x1370] sm:$0xff]  ;;  %v3957_v42 = vpack.c.bf16 %v465_v37, %v463_v36  ;;  %v467_v48 = vld [vmem:[#allocation4 + $0x608] sm:$0xff] }
  0xf4   :  { %4368 = vmatpush1.bf16.msra.mxu0 %v4367_v59  ;;  %3922 = vmatprep.subr.bf16.mxu1 %v3921_v60  ;;  %v446_v59 = vld [vmem:[#allocation4 + $0x560] sm:$0xff]  ;;  %v448_v60 = vld [vmem:[#allocation4 + $0x570] sm:$0xff]  ;;  %v4389_v62 = vpack.c.bf16 %v897_v55, %v895_v54  ;;  %v4391_v5 = vpack.c.bf16 %v896_v63, %v894_v61  ;;  %v469_v49 = vld [vmem:[#allocation4 + $0x618] sm:$0xff] }
  0xf5   :  { %4370 = vmatprep.subr.bf16.mxu0 %v4369_v0  ;;  %1576 = vmatprep.mubr.f32.mxu1 %v87_v6  ;;  %v451_v0 = vld [vmem:[#allocation4 + $0x588] sm:$0xff]  ;;  %v3943_v4 = vpack.c.bf16 %v448_v60, %v446_v59  ;;  %v917_v51 = vld [vmem:[#allocation4 + $0x1418] sm:$0xff]  ;;  %v3961_v54 = vpack.c.bf16 %v469_v49, %v467_v48  ;;  %v466_v55 = vld [vmem:[#allocation4 + $0x600] sm:$0xff] }
  0xf6   :  { %2283 = vmatprep.mubr.f32.mxu0 %v101_v8  ;;  %v3945_v6 = vpack.c.bf16 %v453_v1, %v451_v0  ;;  %v452_v8 = vld [vmem:[#allocation4 + $0x590] sm:$0xff]  ;;  %v471_v60 = vld [vmem:[#allocation4 + $0x628] sm:$0xff]  ;;  %v473_v61 = vld [vmem:[#allocation4 + $0x638] sm:$0xff] }
  0xf7   :  { %3924 = vmatpush1.bf16.msra.mxu1 %v3923_v7  ;;  %v450_v7 = vld [vmem:[#allocation4 + $0x580] sm:$0xff]  ;;  %v916_v59 = vld [vmem:[#allocation4 + $0x1410] sm:$0xff]  ;;  %v921_v63 = vld [vmem:[#allocation4 + $0x1438] sm:$0xff] }
  0xf8   :  { %4372 = vmatpush1.bf16.msra.mxu0 %v4371_v9  ;;  %3926 = vmatprep.subr.bf16.mxu1 %v3925_v10  ;;  %v898_v9 = vld [vmem:[#allocation4 + $0x1380] sm:$0xff]  ;;  %v4393_v10 = vpack.c.bf16 %v901_v3, %v899_v2  ;;  %v3947_v16 = vpack.c.bf16 %v452_v8, %v450_v7  ;;  %v100_v2 = vld [vmem:[#allocation2 + $0x90] sm:$0xff]  ;;  %v925_v13 = vld [vmem:[#allocation4 + $0x1458] sm:$0xff] }
  0xf9   :  { %4374 = vmatprep.subr.bf16.mxu0 %v4373_v14  ;;  %v903_v14 = vld [vmem:[#allocation4 + $0x13a8] sm:$0xff]  ;;  %v4395_v17 = vpack.c.bf16 %v900_v11, %v898_v9  ;;  %v86_v0 = vld [vmem:[#allocation2 + $0x20] sm:$0xff]  ;;  %v920_v9 = vld [vmem:[#allocation4 + $0x1430] sm:$0xff]  ;;  %v4417_v24 = vpack.c.bf16 %v925_v13, %v923_v12 }
  0xfa   :  { %v918_v7 = vld [vmem:[#allocation4 + $0x1420] sm:$0xff]  ;;  %v477_v11 = vld [vmem:[#allocation4 + $0x658] sm:$0xff]  ;;  %v924_v25 = vld [vmem:[#allocation4 + $0x1450] sm:$0xff] }
  0xfb   :  { %3928 = vmatpush1.bf16.msra.mxu1 %v3927_v20  ;;  %v456_v20 = vld [vmem:[#allocation4 + $0x5b0] sm:$0xff]  ;;  %v482_v48 = vld [vmem:[#allocation4 + $0x680] sm:$0xff]  ;;  %v197_v49 = vld [vmem:[#allocation2 + $0x398] sm:$0xff] }
  0xfc   :  { %4376 = vmatpush1.bf16.msra.mxu0 %v4375_v21  ;;  %3930 = vmatprep.subr.bf16.mxu1 %v3929_v22  ;;  %v902_v21 = vld [vmem:[#allocation4 + $0x13a0] sm:$0xff]  ;;  %v4397_v22 = vpack.c.bf16 %v905_v15, %v903_v14  ;;  %v3951_v28 = vpack.c.bf16 %v456_v20, %v454_v19  ;;  %v119_v14 = vld [vmem:[#allocation2 + $0x128] sm:$0xff]  ;;  %v4415_v19 = vpack.c.bf16 %v920_v9, %v918_v7  ;;  %v480_v37 = vld [vmem:[#allocation4 + $0x670] sm:$0xff] }
  0xfd   :  { %4378 = vmatprep.subr.bf16.mxu0 %v4377_v26  ;;  %v907_v26 = vld [vmem:[#allocation4 + $0x13c8] sm:$0xff]  ;;  %v4399_v29 = vpack.c.bf16 %v904_v23, %v902_v21  ;;  %v476_v21 = vld [vmem:[#allocation4 + $0x650] sm:$0xff]  ;;  %v941_v13 = vld [vmem:[#allocation4 + $0x14d8] sm:$0xff] }
  0xfe   :  { %v132_v23 = vld [vmem:[#allocation2 + $0x190] sm:$0xff]  ;;  %v939_v12 = vld [vmem:[#allocation4 + $0x14c8] sm:$0xff] }
  0xff   :  { %3932 = vmatpush1.bf16.msra.mxu1 %v3931_v32  ;;  %v460_v32 = vld [vmem:[#allocation4 + $0x5d0] sm:$0xff] }
 0x100   :  { %4380 = vmatpush1.bf16.msra.mxu0 %v4379_v33  ;;  %3934 = vmatprep.subr.bf16.mxu1 %v3933_v34  ;;  %v906_v33 = vld [vmem:[#allocation4 + $0x13c0] sm:$0xff]  ;;  %v4401_v34 = vpack.c.bf16 %v909_v27, %v907_v26  ;;  %v3955_v40 = vpack.c.bf16 %v460_v32, %v458_v31  ;;  %v479_v26 = vld [vmem:[#allocation4 + $0x668] sm:$0xff]  ;;  %v481_v27 = vld [vmem:[#allocation4 + $0x678] sm:$0xff] }
 0x101   :  { %4382 = vmatprep.subr.bf16.mxu0 %v4381_v38  ;;  %v911_v38 = vld [vmem:[#allocation4 + $0x13e8] sm:$0xff]  ;;  %v4403_v41 = vpack.c.bf16 %v908_v35, %v906_v33  ;;  %v478_v32 = vld [vmem:[#allocation4 + $0x660] sm:$0xff]  ;;  %v165_v33 = vld [vmem:[#allocation2 + $0x298] sm:$0xff]  ;;  %v3973_v36 = vpack.c.bf16 %v481_v27, %v479_v26 }
 0x102   :  { %v228_v7 = vld [vmem:[#allocation2 + $0x490] sm:$0xff]  ;;  %v495_v26 = vld [vmem:[#allocation4 + $0x6e8] sm:$0xff]  ;;  %v497_v27 = vld [vmem:[#allocation4 + $0x6f8] sm:$0xff] }
 0x103   :  { %3936 = vmatpush1.bf16.msra.mxu1 %v3935_v44  ;;  %v464_v44 = vld [vmem:[#allocation4 + $0x5f0] sm:$0xff] }
 0x104   :  { %4384 = vmatpush1.bf16.msra.mxu0 %v4383_v45  ;;  %3938 = vmatprep.subr.bf16.mxu1 %v3937_v46  ;;  %v910_v45 = vld [vmem:[#allocation4 + $0x13e0] sm:$0xff]  ;;  %v4405_v46 = vpack.c.bf16 %v913_v39, %v911_v38  ;;  %v3959_v52 = vpack.c.bf16 %v464_v44, %v462_v43  ;;  %v164_v39 = vld [vmem:[#allocation2 + $0x290] sm:$0xff]  ;;  %v485_v43 = vld [vmem:[#allocation4 + $0x698] sm:$0xff] }
 0x105   :  { %4386 = vmatprep.subr.bf16.mxu0 %v4385_v50  ;;  %v915_v50 = vld [vmem:[#allocation4 + $0x1408] sm:$0xff]  ;;  %v4407_v53 = vpack.c.bf16 %v912_v47, %v910_v45  ;;  %v926_v38 = vld [vmem:[#allocation4 + $0x1460] sm:$0xff]  ;;  %v933_v45 = vld [vmem:[#allocation4 + $0x1498] sm:$0xff]  ;;  %v3975_v47 = vpack.c.bf16 %v480_v37, %v478_v32 }
 0x106   :  { %v931_v44 = vld [vmem:[#allocation4 + $0x1488] sm:$0xff]  ;;  %v936_v9 = vld [vmem:[#allocation4 + $0x14b0] sm:$0xff]  ;;  %v942_v37 = vld [vmem:[#allocation4 + $0x14e0] sm:$0xff] }
 0x107   :  { %3940 = vmatpush1.bf16.msra.mxu1 %v3939_v56  ;;  %v468_v56 = vld [vmem:[#allocation4 + $0x610] sm:$0xff]  ;;  %v103_v32 = vld [vmem:[#allocation2 + $0xa8] sm:$0xff] }
 0x108   :  { %4388 = vmatpush1.bf16.msra.mxu0 %v4387_v57  ;;  %3942 = vmatprep.subr.bf16.mxu1 %v3941_v58  ;;  %v914_v57 = vld [vmem:[#allocation4 + $0x1400] sm:$0xff]  ;;  %v4409_v58 = vpack.c.bf16 %v917_v51, %v915_v50  ;;  %v3963_v1 = vpack.c.bf16 %v468_v56, %v466_v55  ;;  %v196_v55 = vld [vmem:[#allocation2 + $0x390] sm:$0xff]  ;;  %v4425_v56 = vpack.c.bf16 %v933_v45, %v931_v44 }
 0x109   :  { %4390 = vmatprep.subr.bf16.mxu0 %v4389_v62  ;;  %v919_v62 = vld [vmem:[#allocation4 + $0x1428] sm:$0xff]  ;;  %v4411_v3 = vpack.c.bf16 %v916_v59, %v914_v57  ;;  %v182_v50 = vld [vmem:[#allocation2 + $0x320] sm:$0xff]  ;;  %v932_v57 = vld [vmem:[#allocation4 + $0x1490] sm:$0xff] }
 0x10a   :  { %v4413_v8 = vpack.c.bf16 %v921_v63, %v919_v62  ;;  %v489_v59 = vld [vmem:[#allocation4 + $0x6b8] sm:$0xff]  ;;  %v215_v62 = vld [vmem:[#allocation2 + $0x428] sm:$0xff] }
 0x10b   :  { %3944 = vmatpush1.bf16.msra.mxu1 %v3943_v4  ;;  %v3965_v4 = vpack.c.bf16 %v473_v61, %v471_v60  ;;  %v935_v60 = vld [vmem:[#allocation4 + $0x14a8] sm:$0xff]  ;;  %v937_v61 = vld [vmem:[#allocation4 + $0x14b8] sm:$0xff] }
 0x10c   :  { %4392 = vmatpush1.bf16.msra.mxu0 %v4391_v5  ;;  %3946 = vmatprep.subr.bf16.mxu1 %v3945_v6  ;;  %v470_v5 = vld [vmem:[#allocation4 + $0x620] sm:$0xff]  ;;  %v472_v6 = vld [vmem:[#allocation4 + $0x630] sm:$0xff] }
 0x10d   :  { %4394 = vmatprep.subr.bf16.mxu0 %v4393_v10  ;;  %v475_v10 = vld [vmem:[#allocation4 + $0x648] sm:$0xff]  ;;  %v3967_v15 = vpack.c.bf16 %v472_v6, %v470_v5  ;;  %v488_v5 = vld [vmem:[#allocation4 + $0x6b0] sm:$0xff]  ;;  %v934_v6 = vld [vmem:[#allocation4 + $0x14a0] sm:$0xff] }
 0x10e   :  { %v3969_v20 = vpack.c.bf16 %v477_v11, %v475_v10  ;;  %v491_v10 = vld [vmem:[#allocation4 + $0x6c8] sm:$0xff]  ;;  %v493_v11 = vld [vmem:[#allocation4 + $0x6d8] sm:$0xff] }
 0x10f   :  { %3948 = vmatpush1.bf16.msra.mxu1 %v3947_v16  ;;  %v474_v16 = vld [vmem:[#allocation4 + $0x640] sm:$0xff] }
 0x110   :  { %4396 = vmatpush1.bf16.msra.mxu0 %v4395_v17  ;;  %3950 = vmatprep.subr.bf16.mxu1 %v3949_v18  ;;  %v133_v17 = vld [vmem:[#allocation2 + $0x198] sm:$0xff]  ;;  %v118_v18 = vld [vmem:[#allocation2 + $0x120] sm:$0xff]  ;;  %v3971_v31 = vpack.c.bf16 %v476_v21, %v474_v16  ;;  %v492_v21 = vld [vmem:[#allocation4 + $0x6d0] sm:$0xff] }
 0x111   :  { %4398 = vmatprep.subr.bf16.mxu0 %v4397_v22  ;;  %v922_v22 = vld [vmem:[#allocation4 + $0x1440] sm:$0xff] }
 0x112   :  { %v4419_v35 = vpack.c.bf16 %v924_v25, %v922_v22  ;;  %v490_v16 = vld [vmem:[#allocation4 + $0x6c0] sm:$0xff]  ;;  %v940_v25 = vld [vmem:[#allocation4 + $0x14d0] sm:$0xff] }
 0x113   :  { %3952 = vmatpush1.bf16.msra.mxu1 %v3951_v28  ;;  %v927_v28 = vld [vmem:[#allocation4 + $0x1468] sm:$0xff]  ;;  %v938_v22 = vld [vmem:[#allocation4 + $0x14c0] sm:$0xff] }
 0x114   :  { %4400 = vmatpush1.bf16.msra.mxu0 %v4399_v29  ;;  %3954 = vmatprep.subr.bf16.mxu1 %v3953_v30  ;;  %v929_v29 = vld [vmem:[#allocation4 + $0x1478] sm:$0xff]  ;;  %v151_v30 = vld [vmem:[#allocation2 + $0x228] sm:$0xff] }
 0x115   :  { %4402 = vmatprep.subr.bf16.mxu0 %v4401_v34  ;;  %v150_v34 = vld [vmem:[#allocation2 + $0x220] sm:$0xff] }
 0x117   :  { %3956 = vmatpush1.bf16.msra.mxu1 %v3955_v40  ;;  %v4421_v40 = vpack.c.bf16 %v929_v29, %v927_v28  ;;  %v943_v28 = vld [vmem:[#allocation4 + $0x14e8] sm:$0xff]  ;;  %v945_v29 = vld [vmem:[#allocation4 + $0x14f8] sm:$0xff] }
 0x118   :  { %4404 = vmatpush1.bf16.msra.mxu0 %v4403_v41  ;;  %3958 = vmatprep.subr.bf16.mxu1 %v3957_v42  ;;  %v928_v41 = vld [vmem:[#allocation4 + $0x1470] sm:$0xff]  ;;  %v483_v42 = vld [vmem:[#allocation4 + $0x688] sm:$0xff] }
 0x119   :  { %4406 = vmatprep.subr.bf16.mxu0 %v4405_v46  ;;  %v183_v46 = vld [vmem:[#allocation2 + $0x328] sm:$0xff]  ;;  %v4423_v51 = vpack.c.bf16 %v928_v41, %v926_v38  ;;  %v4437_v38 = vpack.c.bf16 %v945_v29, %v943_v28  ;;  %v501_v41 = vld [vmem:[#allocation4 + $0x718] sm:$0xff] }
 0x11b   :  { %3960 = vmatpush1.bf16.msra.mxu1 %v3959_v52  ;;  %v3977_v52 = vpack.c.bf16 %v485_v43, %v483_v42  ;;  %v947_v42 = vld [vmem:[#allocation4 + $0x1508] sm:$0xff]  ;;  %v949_v43 = vld [vmem:[#allocation4 + $0x1518] sm:$0xff] }
 0x11c   :  { %4408 = vmatpush1.bf16.msra.mxu0 %v4407_v53  ;;  %3962 = vmatprep.subr.bf16.mxu1 %v3961_v54  ;;  %v484_v53 = vld [vmem:[#allocation4 + $0x690] sm:$0xff]  ;;  %v930_v54 = vld [vmem:[#allocation4 + $0x1480] sm:$0xff] }
 0x11d   :  { %4410 = vmatprep.subr.bf16.mxu0 %v4409_v58  ;;  %v487_v58 = vld [vmem:[#allocation4 + $0x6a8] sm:$0xff]  ;;  %v3979_v63 = vpack.c.bf16 %v484_v53, %v482_v48  ;;  %v500_v48 = vld [vmem:[#allocation4 + $0x710] sm:$0xff]  ;;  %v505_v53 = vld [vmem:[#allocation4 + $0x738] sm:$0xff] }
 0x11e   :  { %1577 = vmatmul.mubr.f32.vlgmr.msra.gmra.mrb[0].mxu1 %v86_v0  ;;  %v486_v0 = vld [vmem:[#allocation4 + $0x6a0] sm:$0xff] }
 0x11f   :  { %3964 = vmatpush1.bf16.msra.mxu1 %v3963_v1  ;;  %2284 = vmatmul.mubr.f32.vlgmr.msra.gmra.mrb[0].mxu0 %v100_v2  ;;  %v229_v1 = vld [vmem:[#allocation2 + $0x498] sm:$0xff]  ;;  %v214_v2 = vld [vmem:[#allocation2 + $0x420] sm:$0xff] }
 0x120   :  { %4412 = vmatpush1.bf16.msra.mxu0 %v4411_v3  ;;  %3966 = vmatprep.subr.bf16.mxu1 %v3965_v4  ;;  %v4427_v3 = vpack.c.bf16 %v932_v57, %v930_v54  ;;  %v3981_v4 = vpack.c.bf16 %v489_v59, %v487_v58  ;;  %v951_v54 = vld [vmem:[#allocation4 + $0x1528] sm:$0xff]  ;;  %v502_v59 = vld [vmem:[#allocation4 + $0x720] sm:$0xff] }
 0x121   :  { %4414 = vmatprep.subr.bf16.mxu0 %v4413_v8  ;;  %1582 = vmatprep.mubr.f32.mxu1 %v119_v14  ;;  %v4429_v8 = vpack.c.bf16 %v937_v61, %v935_v60  ;;  %v247_v14 = vld [vmem:[#allocation2 + $0x528] sm:$0xff]  ;;  %v504_v60 = vld [vmem:[#allocation4 + $0x730] sm:$0xff]  ;;  %v950_v61 = vld [vmem:[#allocation4 + $0x1520] sm:$0xff] }
 0x122   :  { %2289 = vmatprep.mubr.f32.mxu0 %v133_v17  ;;  %1583 = vmatmul.mubr.f32.gmra.mrb[2].mxu1 %v118_v18  ;;  %v261_v17 = vld [vmem:[#allocation2 + $0x598] sm:$0xff]  ;;  %v246_v18 = vld [vmem:[#allocation2 + $0x520] sm:$0xff] }
 0x123   :  { %3968 = vmatpush1.bf16.msra.mxu1 %v3967_v15  ;;  %2290 = vmatmul.mubr.f32.gmra.mrb[2].mxu0 %v132_v23  ;;  %v3983_v15 = vpack.c.bf16 %v488_v5, %v486_v0  ;;  %v260_v23 = vld [vmem:[#allocation2 + $0x590] sm:$0xff]  ;;  %v507_v0 = vld [vmem:[#allocation4 + $0x748] sm:$0xff] }
 0x124   :  { %4416 = vmatpush1.bf16.msra.mxu0 %v4415_v19  ;;  %3970 = vmatprep.subr.bf16.mxu1 %v3969_v20  ;;  %v4431_v19 = vpack.c.bf16 %v936_v9, %v934_v6  ;;  %v3985_v20 = vpack.c.bf16 %v493_v11, %v491_v10  ;;  %v954_v9 = vld [vmem:[#allocation4 + $0x1540] sm:$0xff]  ;;  %v956_v11 = vld [vmem:[#allocation4 + $0x1550] sm:$0xff] }
 0x125   :  { %4418 = vmatprep.subr.bf16.mxu0 %v4417_v24  ;;  %1588 = vmatprep.mubr.f32.mxu1 %v151_v30  ;;  %v4433_v24 = vpack.c.bf16 %v941_v13, %v939_v12  ;;  %v89_v30 = vld [vmem:[#allocation2 + $0x38] sm:$0xff]  ;;  %v511_v12 = vld [vmem:[#allocation4 + $0x768] sm:$0xff] }
 0x126   :  { %2295 = vmatprep.mubr.f32.mxu0 %v165_v33  ;;  %1589 = vmatmul.mubr.f32.gmra.mrb[4].mxu1 %v150_v34  ;;  %v4435_v33 = vpack.c.bf16 %v940_v25, %v938_v22  ;;  %v3989_v34 = vpack.c.bf16 %v497_v27, %v495_v26  ;;  %v513_v13 = vld [vmem:[#allocation4 + $0x778] sm:$0xff]  ;;  %v963_v26 = vld [vmem:[#allocation4 + $0x1588] sm:$0xff] }
 0x127   :  { %3972 = vmatpush1.bf16.msra.mxu1 %v3971_v31  ;;  %2296 = vmatmul.mubr.f32.gmra.mrb[4].mxu0 %v164_v39  ;;  %v3987_v31 = vpack.c.bf16 %v492_v21, %v490_v16  ;;  %v944_v39 = vld [vmem:[#allocation4 + $0x14f0] sm:$0xff]  ;;  %v958_v21 = vld [vmem:[#allocation4 + $0x1560] sm:$0xff]  ;;  %v517_v25 = vld [vmem:[#allocation4 + $0x798] sm:$0xff] }
 0x128   :  { %4420 = vmatpush1.bf16.msra.mxu0 %v4419_v35  ;;  %3974 = vmatprep.subr.bf16.mxu1 %v3973_v36  ;;  %v494_v35 = vld [vmem:[#allocation4 + $0x6e0] sm:$0xff]  ;;  %v496_v36 = vld [vmem:[#allocation4 + $0x6f0] sm:$0xff]  ;;  %v4439_v45 = vpack.c.bf16 %v944_v39, %v942_v37  ;;  %v965_v27 = vld [vmem:[#allocation4 + $0x1598] sm:$0xff] }
 0x129   :  { %4422 = vmatprep.subr.bf16.mxu0 %v4421_v40  ;;  %1594 = vmatprep.mubr.f32.mxu1 %v183_v46  ;;  %v499_v40 = vld [vmem:[#allocation4 + $0x708] sm:$0xff]  ;;  %v3991_v44 = vpack.c.bf16 %v496_v36, %v494_v35  ;;  %v964_v35 = vld [vmem:[#allocation4 + $0x1590] sm:$0xff]  ;;  %v521_v37 = vld [vmem:[#allocation4 + $0x7b8] sm:$0xff] }
 0x12a   :  { %2301 = vmatprep.mubr.f32.mxu0 %v197_v49  ;;  %1595 = vmatmul.mubr.f32.gmra.mrb[6].mxu1 %v182_v50  ;;  %v3993_v46 = vpack.c.bf16 %v501_v41, %v499_v40  ;;  %v946_v49 = vld [vmem:[#allocation4 + $0x1500] sm:$0xff]  ;;  %v4441_v50 = vpack.c.bf16 %v949_v43, %v947_v42  ;;  %v519_v36 = vld [vmem:[#allocation4 + $0x7a8] sm:$0xff]  ;;  %v969_v39 = vld [vmem:[#allocation4 + $0x15b8] sm:$0xff] }
 0x12b   :  { %3976 = vmatpush1.bf16.msra.mxu1 %v3975_v47  ;;  %2302 = vmatmul.mubr.f32.gmra.mrb[6].mxu0 %v196_v55  ;;  %v498_v47 = vld [vmem:[#allocation4 + $0x700] sm:$0xff]  ;;  %v953_v55 = vld [vmem:[#allocation4 + $0x1538] sm:$0xff]  ;;  %v4013_v42 = vpack.c.bf16 %v521_v37, %v519_v36  ;;  %v987_v36 = vld [vmem:[#allocation4 + $0x1648] sm:$0xff] }
 0x12c   :  { %4424 = vmatpush1.bf16.msra.mxu0 %v4423_v51  ;;  %3978 = vmatprep.subr.bf16.mxu1 %v3977_v52  ;;  %v948_v51 = vld [vmem:[#allocation4 + $0x1510] sm:$0xff]  ;;  %v503_v52 = vld [vmem:[#allocation4 + $0x728] sm:$0xff]  ;;  %v518_v43 = vld [vmem:[#allocation4 + $0x7a0] sm:$0xff] }
 0x12d   :  { %4426 = vmatprep.subr.bf16.mxu0 %v4425_v56  ;;  %1600 = vmatprep.mubr.f32.mxu1 %v215_v62  ;;  %v3995_v56 = vpack.c.bf16 %v500_v48, %v498_v47  ;;  %v4443_v57 = vpack.c.bf16 %v948_v51, %v946_v49  ;;  %v3997_v58 = vpack.c.bf16 %v505_v53, %v503_v52  ;;  %v968_v47 = vld [vmem:[#allocation4 + $0x15b0] sm:$0xff]  ;;  %v523_v48 = vld [vmem:[#allocation4 + $0x7c8] sm:$0xff]  ;;  %v525_v49 = vld [vmem:[#allocation4 + $0x7d8] sm:$0xff] }
 0x12e   :  { %2307 = vmatprep.mubr.f32.mxu0 %v229_v1  ;;  %1601 = vmatmul.mubr.f32.gmra.mrb[8].mxu1 %v214_v2  ;;  %v4445_v62 = vpack.c.bf16 %v953_v55, %v951_v54  ;;  %v509_v1 = vld [vmem:[#allocation4 + $0x758] sm:$0xff]  ;;  %v955_v2 = vld [vmem:[#allocation4 + $0x1548] sm:$0xff]  ;;  %v4017_v54 = vpack.c.bf16 %v525_v49, %v523_v48  ;;  %v522_v55 = vld [vmem:[#allocation4 + $0x7c0] sm:$0xff] }
 0x12f   :  { %3980 = vmatpush1.bf16.msra.mxu1 %v3979_v63  ;;  %2308 = vmatmul.mubr.f32.gmra.mrb[8].mxu0 %v228_v7  ;;  %v952_v63 = vld [vmem:[#allocation4 + $0x1530] sm:$0xff]  ;;  %v4001_v6 = vpack.c.bf16 %v509_v1, %v507_v0  ;;  %v506_v7 = vld [vmem:[#allocation4 + $0x740] sm:$0xff]  ;;  %v973_v51 = vld [vmem:[#allocation4 + $0x15d8] sm:$0xff] }
 0x130   :  { %4428 = vmatpush1.bf16.msra.mxu0 %v4427_v3  ;;  %3982 = vmatprep.subr.bf16.mxu1 %v3981_v4  ;;  %v957_v3 = vld [vmem:[#allocation4 + $0x1558] sm:$0xff]  ;;  %v3999_v4 = vpack.c.bf16 %v504_v60, %v502_v59  ;;  %v4447_v5 = vpack.c.bf16 %v952_v63, %v950_v61  ;;  %v972_v59 = vld [vmem:[#allocation4 + $0x15d0] sm:$0xff]  ;;  %v527_v60 = vld [vmem:[#allocation4 + $0x7e8] sm:$0xff] }
 0x131   :  { %4430 = vmatprep.subr.bf16.mxu0 %v4429_v8  ;;  %1606 = vmatprep.mubr.f32.mxu1 %v247_v14  ;;  %v508_v8 = vld [vmem:[#allocation4 + $0x750] sm:$0xff]  ;;  %v4449_v10 = vpack.c.bf16 %v957_v3, %v955_v2  ;;  %v959_v14 = vld [vmem:[#allocation4 + $0x1568] sm:$0xff]  ;;  %v529_v61 = vld [vmem:[#allocation4 + $0x7f8] sm:$0xff] }
 0x132   :  { %2313 = vmatprep.mubr.f32.mxu0 %v261_v17  ;;  %1607 = vmatmul.mubr.f32.gmra.mrb[10].mxu1 %v246_v18  ;;  %v4003_v16 = vpack.c.bf16 %v508_v8, %v506_v7  ;;  %v4451_v17 = vpack.c.bf16 %v956_v11, %v954_v9  ;;  %v4005_v18 = vpack.c.bf16 %v513_v13, %v511_v12  ;;  %v977_v63 = vld [vmem:[#allocation4 + $0x15f8] sm:$0xff]  ;;  %v526_v3 = vld [vmem:[#allocation4 + $0x7e0] sm:$0xff]  ;;  %v976_v7 = vld [vmem:[#allocation4 + $0x15f0] sm:$0xff] }
 0x133   :  { %3984 = vmatpush1.bf16.msra.mxu1 %v3983_v15  ;;  %2314 = vmatmul.mubr.f32.gmra.mrb[10].mxu0 %v260_v23  ;;  %v961_v15 = vld [vmem:[#allocation4 + $0x1578] sm:$0xff]  ;;  %v960_v23 = vld [vmem:[#allocation4 + $0x1570] sm:$0xff]  ;;  %v4021_v2 = vpack.c.bf16 %v529_v61, %v527_v60  ;;  %v531_v8 = vld [vmem:[#allocation4 + $0x808] sm:$0xff] }
 0x134   :  { %4432 = vmatpush1.bf16.msra.mxu0 %v4431_v19  ;;  %3986 = vmatprep.subr.bf16.mxu1 %v3985_v20  ;;  %v510_v19 = vld [vmem:[#allocation4 + $0x760] sm:$0xff]  ;;  %v512_v20 = vld [vmem:[#allocation4 + $0x770] sm:$0xff]  ;;  %v4453_v22 = vpack.c.bf16 %v961_v15, %v959_v14  ;;  %v4455_v29 = vpack.c.bf16 %v960_v23, %v958_v21  ;;  %v533_v9 = vld [vmem:[#allocation4 + $0x818] sm:$0xff] }
 0x135   :  { %4434 = vmatprep.subr.bf16.mxu0 %v4433_v24  ;;  %1677 = vmatprep.mubr.f32.mxu1 %v89_v30  ;;  %v515_v24 = vld [vmem:[#allocation4 + $0x788] sm:$0xff]  ;;  %v4007_v28 = vpack.c.bf16 %v512_v20, %v510_v19  ;;  %v981_v11 = vld [vmem:[#allocation4 + $0x1618] sm:$0xff]  ;;  %v4025_v14 = vpack.c.bf16 %v533_v9, %v531_v8  ;;  %v530_v15 = vld [vmem:[#allocation4 + $0x800] sm:$0xff] }
 0x136   :  { %2384 = vmatprep.mubr.f32.mxu0 %v103_v32  ;;  %v4009_v30 = vpack.c.bf16 %v517_v25, %v515_v24  ;;  %v516_v32 = vld [vmem:[#allocation4 + $0x790] sm:$0xff]  ;;  %v535_v20 = vld [vmem:[#allocation4 + $0x828] sm:$0xff]  ;;  %v537_v21 = vld [vmem:[#allocation4 + $0x838] sm:$0xff] }
 0x137   :  { %3988 = vmatpush1.bf16.msra.mxu1 %v3987_v31  ;;  %v514_v31 = vld [vmem:[#allocation4 + $0x780] sm:$0xff]  ;;  %v980_v19 = vld [vmem:[#allocation4 + $0x1610] sm:$0xff]  ;;  %v985_v23 = vld [vmem:[#allocation4 + $0x1638] sm:$0xff] }
 0x138   :  { %4436 = vmatpush1.bf16.msra.mxu0 %v4435_v33  ;;  %3990 = vmatprep.subr.bf16.mxu1 %v3989_v34  ;;  %v962_v33 = vld [vmem:[#allocation4 + $0x1580] sm:$0xff]  ;;  %v4457_v34 = vpack.c.bf16 %v965_v27, %v963_v26  ;;  %v4011_v40 = vpack.c.bf16 %v516_v32, %v514_v31  ;;  %v88_v24 = vld [vmem:[#allocation2 + $0x30] sm:$0xff]  ;;  %v989_v37 = vld [vmem:[#allocation4 + $0x1658] sm:$0xff] }
 0x139   :  { %4438 = vmatprep.subr.bf16.mxu0 %v4437_v38  ;;  %v967_v38 = vld [vmem:[#allocation4 + $0x15a8] sm:$0xff]  ;;  %v4459_v41 = vpack.c.bf16 %v964_v35, %v962_v33  ;;  %v102_v26 = vld [vmem:[#allocation2 + $0xa0] sm:$0xff]  ;;  %v984_v33 = vld [vmem:[#allocation4 + $0x1630] sm:$0xff]  ;;  %v4481_v48 = vpack.c.bf16 %v989_v37, %v987_v36 }
 0x13a   :  { %v982_v31 = vld [vmem:[#allocation4 + $0x1620] sm:$0xff]  ;;  %v541_v35 = vld [vmem:[#allocation4 + $0x858] sm:$0xff]  ;;  %v988_v49 = vld [vmem:[#allocation4 + $0x1650] sm:$0xff] }
 0x13b   :  { %3992 = vmatpush1.bf16.msra.mxu1 %v3991_v44  ;;  %v520_v44 = vld [vmem:[#allocation4 + $0x7b0] sm:$0xff]  ;;  %v546_v8 = vld [vmem:[#allocation4 + $0x880] sm:$0xff]  ;;  %v199_v9 = vld [vmem:[#allocation2 + $0x3a8] sm:$0xff] }
 0x13c   :  { %4440 = vmatpush1.bf16.msra.mxu0 %v4439_v45  ;;  %3994 = vmatprep.subr.bf16.mxu1 %v3993_v46  ;;  %v966_v45 = vld [vmem:[#allocation4 + $0x15a0] sm:$0xff]  ;;  %v4461_v46 = vpack.c.bf16 %v969_v39, %v967_v38  ;;  %v4015_v52 = vpack.c.bf16 %v520_v44, %v518_v43  ;;  %v121_v38 = vld [vmem:[#allocation2 + $0x138] sm:$0xff]  ;;  %v4479_v43 = vpack.c.bf16 %v984_v33, %v982_v31  ;;  %v544_v61 = vld [vmem:[#allocation4 + $0x870] sm:$0xff] }
 0x13d   :  { %4442 = vmatprep.subr.bf16.mxu0 %v4441_v50  ;;  %v971_v50 = vld [vmem:[#allocation4 + $0x15c8] sm:$0xff]  ;;  %v4463_v53 = vpack.c.bf16 %v968_v47, %v966_v45  ;;  %v540_v45 = vld [vmem:[#allocation4 + $0x850] sm:$0xff]  ;;  %v134_v47 = vld [vmem:[#allocation2 + $0x1a0] sm:$0xff] }
 0x13e   :  { %v230_v31 = vld [vmem:[#allocation2 + $0x4a0] sm:$0xff]  ;;  %v1000_v33 = vld [vmem:[#allocation4 + $0x16b0] sm:$0xff]  ;;  %v1003_v36 = vld [vmem:[#allocation4 + $0x16c8] sm:$0xff] }
 0x13f   :  { %3996 = vmatpush1.bf16.msra.mxu1 %v3995_v56  ;;  %v524_v56 = vld [vmem:[#allocation4 + $0x7d0] sm:$0xff]  ;;  %v1005_v37 = vld [vmem:[#allocation4 + $0x16d8] sm:$0xff] }
 0x140   :  { %4444 = vmatpush1.bf16.msra.mxu0 %v4443_v57  ;;  %3998 = vmatprep.subr.bf16.mxu1 %v3997_v58  ;;  %v970_v57 = vld [vmem:[#allocation4 + $0x15c0] sm:$0xff]  ;;  %v4465_v58 = vpack.c.bf16 %v973_v51, %v971_v50  ;;  %v4019_v0 = vpack.c.bf16 %v524_v56, %v522_v55  ;;  %v543_v50 = vld [vmem:[#allocation4 + $0x868] sm:$0xff]  ;;  %v545_v51 = vld [vmem:[#allocation4 + $0x878] sm:$0xff] }
 0x141   :  { %4446 = vmatprep.subr.bf16.mxu0 %v4445_v62  ;;  %v975_v62 = vld [vmem:[#allocation4 + $0x15e8] sm:$0xff]  ;;  %v4467_v1 = vpack.c.bf16 %v972_v59, %v970_v57  ;;  %v542_v56 = vld [vmem:[#allocation4 + $0x860] sm:$0xff]  ;;  %v4037_v60 = vpack.c.bf16 %v545_v51, %v543_v50  ;;  %v561_v51 = vld [vmem:[#allocation4 + $0x8f8] sm:$0xff] }
 0x142   :  { %v167_v57 = vld [vmem:[#allocation2 + $0x2a8] sm:$0xff] }
 0x143   :  { %4000 = vmatpush1.bf16.msra.mxu1 %v3999_v4  ;;  %v528_v4 = vld [vmem:[#allocation4 + $0x7f0] sm:$0xff]  ;;  %v559_v50 = vld [vmem:[#allocation4 + $0x8e8] sm:$0xff] }
 0x144   :  { %4448 = vmatpush1.bf16.msra.mxu0 %v4447_v5  ;;  %4002 = vmatprep.subr.bf16.mxu1 %v4001_v6  ;;  %v974_v5 = vld [vmem:[#allocation4 + $0x15e0] sm:$0xff]  ;;  %v4469_v6 = vpack.c.bf16 %v977_v63, %v975_v62  ;;  %v4023_v12 = vpack.c.bf16 %v528_v4, %v526_v3  ;;  %v549_v3 = vld [vmem:[#allocation4 + $0x898] sm:$0xff]  ;;  %v995_v4 = vld [vmem:[#allocation4 + $0x1688] sm:$0xff] }
 0x145   :  { %4450 = vmatprep.subr.bf16.mxu0 %v4449_v10  ;;  %v979_v10 = vld [vmem:[#allocation4 + $0x1608] sm:$0xff]  ;;  %v4471_v13 = vpack.c.bf16 %v976_v7, %v974_v5  ;;  %v990_v62 = vld [vmem:[#allocation4 + $0x1660] sm:$0xff]  ;;  %v997_v5 = vld [vmem:[#allocation4 + $0x1698] sm:$0xff]  ;;  %v4039_v7 = vpack.c.bf16 %v544_v61, %v542_v56 }
 0x146   :  { %v166_v63 = vld [vmem:[#allocation2 + $0x2a0] sm:$0xff]  ;;  %v105_v56 = vld [vmem:[#allocation2 + $0xb8] sm:$0xff] }
 0x147   :  { %4004 = vmatpush1.bf16.msra.mxu1 %v4003_v16  ;;  %v532_v16 = vld [vmem:[#allocation4 + $0x810] sm:$0xff]  ;;  %v1006_v61 = vld [vmem:[#allocation4 + $0x16e0] sm:$0xff] }
 0x148   :  { %4452 = vmatpush1.bf16.msra.mxu0 %v4451_v17  ;;  %4006 = vmatprep.subr.bf16.mxu1 %v4005_v18  ;;  %v978_v17 = vld [vmem:[#allocation4 + $0x1600] sm:$0xff]  ;;  %v4473_v18 = vpack.c.bf16 %v981_v11, %v979_v10  ;;  %v4027_v25 = vpack.c.bf16 %v532_v16, %v530_v15  ;;  %v184_v10 = vld [vmem:[#allocation2 + $0x330] sm:$0xff]  ;;  %v4489_v16 = vpack.c.bf16 %v997_v5, %v995_v4 }
 0x149   :  { %4454 = vmatprep.subr.bf16.mxu0 %v4453_v22  ;;  %v983_v22 = vld [vmem:[#allocation4 + $0x1628] sm:$0xff]  ;;  %v4475_v27 = vpack.c.bf16 %v980_v19, %v978_v17  ;;  %v198_v15 = vld [vmem:[#allocation2 + $0x3a0] sm:$0xff]  ;;  %v996_v17 = vld [vmem:[#allocation4 + $0x1690] sm:$0xff] }
 0x14a   :  { %v4477_v32 = vpack.c.bf16 %v985_v23, %v983_v22  ;;  %v553_v19 = vld [vmem:[#allocation4 + $0x8b8] sm:$0xff] }
 0x14b   :  { %4008 = vmatpush1.bf16.msra.mxu1 %v4007_v28  ;;  %v4029_v28 = vpack.c.bf16 %v537_v21, %v535_v20  ;;  %v999_v20 = vld [vmem:[#allocation4 + $0x16a8] sm:$0xff]  ;;  %v1001_v21 = vld [vmem:[#allocation4 + $0x16b8] sm:$0xff] }
 0x14c   :  { %4456 = vmatpush1.bf16.msra.mxu0 %v4455_v29  ;;  %4010 = vmatprep.subr.bf16.mxu1 %v4009_v30  ;;  %v534_v29 = vld [vmem:[#allocation4 + $0x820] sm:$0xff]  ;;  %v536_v30 = vld [vmem:[#allocation4 + $0x830] sm:$0xff]  ;;  %v217_v22 = vld [vmem:[#allocation2 + $0x438] sm:$0xff] }
 0x14d   :  { %4458 = vmatprep.subr.bf16.mxu0 %v4457_v34  ;;  %v539_v34 = vld [vmem:[#allocation4 + $0x848] sm:$0xff]  ;;  %v4031_v39 = vpack.c.bf16 %v536_v30, %v534_v29  ;;  %v552_v29 = vld [vmem:[#allocation4 + $0x8b0] sm:$0xff]  ;;  %v998_v30 = vld [vmem:[#allocation4 + $0x16a0] sm:$0xff] }
 0x14e   :  { %v4033_v44 = vpack.c.bf16 %v541_v35, %v539_v34  ;;  %v555_v34 = vld [vmem:[#allocation4 + $0x8c8] sm:$0xff]  ;;  %v557_v35 = vld [vmem:[#allocation4 + $0x8d8] sm:$0xff] }
 0x14f   :  { %4012 = vmatpush1.bf16.msra.mxu1 %v4011_v40  ;;  %v538_v40 = vld [vmem:[#allocation4 + $0x840] sm:$0xff] }
 0x150   :  { %4460 = vmatpush1.bf16.msra.mxu0 %v4459_v41  ;;  %4014 = vmatprep.subr.bf16.mxu1 %v4013_v42  ;;  %v135_v41 = vld [vmem:[#allocation2 + $0x1a8] sm:$0xff]  ;;  %v120_v42 = vld [vmem:[#allocation2 + $0x130] sm:$0xff]  ;;  %v4035_v55 = vpack.c.bf16 %v540_v45, %v538_v40  ;;  %v554_v40 = vld [vmem:[#allocation4 + $0x8c0] sm:$0xff] }
 0x151   :  { %4462 = vmatprep.subr.bf16.mxu0 %v4461_v46  ;;  %v986_v46 = vld [vmem:[#allocation4 + $0x1640] sm:$0xff]  ;;  %v556_v45 = vld [vmem:[#allocation4 + $0x8d0] sm:$0xff] }
 0x152   :  { %v4483_v59 = vpack.c.bf16 %v988_v49, %v986_v46  ;;  %v1002_v46 = vld [vmem:[#allocation4 + $0x16c0] sm:$0xff]  ;;  %v1004_v49 = vld [vmem:[#allocation4 + $0x16d0] sm:$0xff] }
 0x153   :  { %4016 = vmatpush1.bf16.msra.mxu1 %v4015_v52  ;;  %v991_v52 = vld [vmem:[#allocation4 + $0x1668] sm:$0xff] }
 0x154   :  { %4464 = vmatpush1.bf16.msra.mxu0 %v4463_v53  ;;  %4018 = vmatprep.subr.bf16.mxu1 %v4017_v54  ;;  %v993_v53 = vld [vmem:[#allocation4 + $0x1678] sm:$0xff] }
 0x155   :  { %4466 = vmatprep.subr.bf16.mxu0 %v4465_v58  ;;  %v153_v54 = vld [vmem:[#allocation2 + $0x238] sm:$0xff]  ;;  %v152_v58 = vld [vmem:[#allocation2 + $0x230] sm:$0xff] }
 0x157   :  { %4020 = vmatpush1.bf16.msra.mxu1 %v4019_v0  ;;  %v4485_v0 = vpack.c.bf16 %v993_v53, %v991_v52  ;;  %v1007_v52 = vld [vmem:[#allocation4 + $0x16e8] sm:$0xff]  ;;  %v1009_v53 = vld [vmem:[#allocation4 + $0x16f8] sm:$0xff] }
 0x158   :  { %4468 = vmatpush1.bf16.msra.mxu0 %v4467_v1  ;;  %4022 = vmatprep.subr.bf16.mxu1 %v4021_v2  ;;  %v992_v1 = vld [vmem:[#allocation4 + $0x1670] sm:$0xff]  ;;  %v547_v2 = vld [vmem:[#allocation4 + $0x888] sm:$0xff] }
 0x159   :  { %4470 = vmatprep.subr.bf16.mxu0 %v4469_v6  ;;  %v185_v6 = vld [vmem:[#allocation2 + $0x338] sm:$0xff]  ;;  %v4487_v11 = vpack.c.bf16 %v992_v1, %v990_v62  ;;  %v4501_v62 = vpack.c.bf16 %v1009_v53, %v1007_v52 }
 0x15a   :  { %v565_v1 = vld [vmem:[#allocation4 + $0x918] sm:$0xff] }
 0x15b   :  { %4024 = vmatpush1.bf16.msra.mxu1 %v4023_v12  ;;  %v4041_v12 = vpack.c.bf16 %v549_v3, %v547_v2  ;;  %v1011_v2 = vld [vmem:[#allocation4 + $0x1708] sm:$0xff]  ;;  %v1013_v3 = vld [vmem:[#allocation4 + $0x1718] sm:$0xff] }
 0x15c   :  { %4472 = vmatpush1.bf16.msra.mxu0 %v4471_v13  ;;  %4026 = vmatprep.subr.bf16.mxu1 %v4025_v14  ;;  %v548_v13 = vld [vmem:[#allocation4 + $0x890] sm:$0xff]  ;;  %v994_v14 = vld [vmem:[#allocation4 + $0x1680] sm:$0xff] }
 0x15d   :  { %4474 = vmatprep.subr.bf16.mxu0 %v4473_v18  ;;  %v551_v18 = vld [vmem:[#allocation4 + $0x8a8] sm:$0xff]  ;;  %v4043_v23 = vpack.c.bf16 %v548_v13, %v546_v8  ;;  %v564_v8 = vld [vmem:[#allocation4 + $0x910] sm:$0xff]  ;;  %v569_v13 = vld [vmem:[#allocation4 + $0x938] sm:$0xff] }
 0x15e   :  { %1678 = vmatmul.mubr.f32.vlgmr.msra.gmra.mrb[0].mxu1 %v88_v24  ;;  %v550_v24 = vld [vmem:[#allocation4 + $0x8a0] sm:$0xff] }
 0x15f   :  { %4028 = vmatpush1.bf16.msra.mxu1 %v4027_v25  ;;  %2385 = vmatmul.mubr.f32.vlgmr.msra.gmra.mrb[0].mxu0 %v102_v26  ;;  %v231_v25 = vld [vmem:[#allocation2 + $0x4a8] sm:$0xff]  ;;  %v216_v26 = vld [vmem:[#allocation2 + $0x430] sm:$0xff] }
 0x160   :  { %4476 = vmatpush1.bf16.msra.mxu0 %v4475_v27  ;;  %4030 = vmatprep.subr.bf16.mxu1 %v4029_v28  ;;  %v4491_v27 = vpack.c.bf16 %v996_v17, %v994_v14  ;;  %v4045_v28 = vpack.c.bf16 %v553_v19, %v551_v18  ;;  %v1015_v14 = vld [vmem:[#allocation4 + $0x1728] sm:$0xff]  ;;  %v566_v19 = vld [vmem:[#allocation4 + $0x920] sm:$0xff] }
 0x161   :  { %4478 = vmatprep.subr.bf16.mxu0 %v4477_v32  ;;  %1683 = vmatprep.mubr.f32.mxu1 %v121_v38  ;;  %v4493_v32 = vpack.c.bf16 %v1001_v21, %v999_v20  ;;  %v249_v38 = vld [vmem:[#allocation2 + $0x538] sm:$0xff]  ;;  %v568_v20 = vld [vmem:[#allocation4 + $0x930] sm:$0xff]  ;;  %v1014_v21 = vld [vmem:[#allocation4 + $0x1720] sm:$0xff] }
 0x162   :  { %2390 = vmatprep.mubr.f32.mxu0 %v135_v41  ;;  %1684 = vmatmul.mubr.f32.gmra.mrb[2].mxu1 %v120_v42  ;;  %v263_v41 = vld [vmem:[#allocation2 + $0x5a8] sm:$0xff]  ;;  %v248_v42 = vld [vmem:[#allocation2 + $0x530] sm:$0xff] }
 0x163   :  { %4032 = vmatpush1.bf16.msra.mxu1 %v4031_v39  ;;  %2391 = vmatmul.mubr.f32.gmra.mrb[2].mxu0 %v134_v47  ;;  %v4047_v39 = vpack.c.bf16 %v552_v29, %v550_v24  ;;  %v262_v47 = vld [vmem:[#allocation2 + $0x5a0] sm:$0xff]  ;;  %v571_v24 = vld [vmem:[#allocation4 + $0x948] sm:$0xff] }
 0x164   :  { %4480 = vmatpush1.bf16.msra.mxu0 %v4479_v43  ;;  %4034 = vmatprep.subr.bf16.mxu1 %v4033_v44  ;;  %v4495_v43 = vpack.c.bf16 %v1000_v33, %v998_v30  ;;  %v4049_v44 = vpack.c.bf16 %v557_v35, %v555_v34  ;;  %v1018_v33 = vld [vmem:[#allocation4 + $0x1740] sm:$0xff]  ;;  %v1020_v35 = vld [vmem:[#allocation4 + $0x1750] sm:$0xff] }
 0x165   :  { %4482 = vmatprep.subr.bf16.mxu0 %v4481_v48  ;;  %1689 = vmatprep.mubr.f32.mxu1 %v153_v54  ;;  %v4497_v48 = vpack.c.bf16 %v1005_v37, %v1003_v36  ;;  %v91_v54 = vld [vmem:[#allocation2 + $0x48] sm:$0xff]  ;;  %v577_v37 = vld [vmem:[#allocation4 + $0x978] sm:$0xff] }
 0x166   :  { %2396 = vmatprep.mubr.f32.mxu0 %v167_v57  ;;  %1690 = vmatmul.mubr.f32.gmra.mrb[4].mxu1 %v152_v58  ;;  %v4499_v57 = vpack.c.bf16 %v1004_v49, %v1002_v46  ;;  %v4053_v58 = vpack.c.bf16 %v561_v51, %v559_v50  ;;  %v575_v36 = vld [vmem:[#allocation4 + $0x968] sm:$0xff]  ;;  %v581_v49 = vld [vmem:[#allocation4 + $0x998] sm:$0xff] }
 0x167   :  { %4036 = vmatpush1.bf16.msra.mxu1 %v4035_v55  ;;  %2397 = vmatmul.mubr.f32.gmra.mrb[4].mxu0 %v166_v63  ;;  %v4051_v55 = vpack.c.bf16 %v556_v45, %v554_v40  ;;  %v1008_v63 = vld [vmem:[#allocation4 + $0x16f0] sm:$0xff]  ;;  %v1022_v45 = vld [vmem:[#allocation4 + $0x1760] sm:$0xff]  ;;  %v1027_v50 = vld [vmem:[#allocation4 + $0x1788] sm:$0xff] }
 0x168   :  { %4484 = vmatpush1.bf16.msra.mxu0 %v4483_v59  ;;  %4038 = vmatprep.subr.bf16.mxu1 %v4037_v60  ;;  %v558_v59 = vld [vmem:[#allocation4 + $0x8e0] sm:$0xff]  ;;  %v560_v60 = vld [vmem:[#allocation4 + $0x8f0] sm:$0xff]  ;;  %v4503_v5 = vpack.c.bf16 %v1008_v63, %v1006_v61  ;;  %v1029_v51 = vld [vmem:[#allocation4 + $0x1798] sm:$0xff] }
 0x169   :  { %4486 = vmatprep.subr.bf16.mxu0 %v4485_v0  ;;  %1695 = vmatprep.mubr.f32.mxu1 %v185_v6  ;;  %v563_v0 = vld [vmem:[#allocation4 + $0x908] sm:$0xff]  ;;  %v4055_v4 = vpack.c.bf16 %v560_v60, %v558_v59  ;;  %v1028_v59 = vld [vmem:[#allocation4 + $0x1790] sm:$0xff]  ;;  %v585_v61 = vld [vmem:[#allocation4 + $0x9b8] sm:$0xff] }
 0x16a   :  { %2402 = vmatprep.mubr.f32.mxu0 %v199_v9  ;;  %1696 = vmatmul.mubr.f32.gmra.mrb[6].mxu1 %v184_v10  ;;  %v4057_v6 = vpack.c.bf16 %v565_v1, %v563_v0  ;;  %v1010_v9 = vld [vmem:[#allocation4 + $0x1700] sm:$0xff]  ;;  %v4505_v10 = vpack.c.bf16 %v1013_v3, %v1011_v2  ;;  %v583_v60 = vld [vmem:[#allocation4 + $0x9a8] sm:$0xff]  ;;  %v1033_v63 = vld [vmem:[#allocation4 + $0x17b8] sm:$0xff] }
 0x16b   :  { %4040 = vmatpush1.bf16.msra.mxu1 %v4039_v7  ;;  %2403 = vmatmul.mubr.f32.gmra.mrb[6].mxu0 %v198_v15  ;;  %v562_v7 = vld [vmem:[#allocation4 + $0x900] sm:$0xff]  ;;  %v1017_v15 = vld [vmem:[#allocation4 + $0x1738] sm:$0xff]  ;;  %v4077_v2 = vpack.c.bf16 %v585_v61, %v583_v60  ;;  %v1051_v60 = vld [vmem:[#allocation4 + $0x1848] sm:$0xff] }
 0x16c   :  { %4488 = vmatpush1.bf16.msra.mxu0 %v4487_v11  ;;  %4042 = vmatprep.subr.bf16.mxu1 %v4041_v12  ;;  %v1012_v11 = vld [vmem:[#allocation4 + $0x1710] sm:$0xff]  ;;  %v567_v12 = vld [vmem:[#allocation4 + $0x928] sm:$0xff]  ;;  %v582_v3 = vld [vmem:[#allocation4 + $0x9a0] sm:$0xff] }
 0x16d   :  { %4490 = vmatprep.subr.bf16.mxu0 %v4489_v16  ;;  %1701 = vmatprep.mubr.f32.mxu1 %v217_v22  ;;  %v4059_v16 = vpack.c.bf16 %v564_v8, %v562_v7  ;;  %v4507_v17 = vpack.c.bf16 %v1012_v11, %v1010_v9  ;;  %v4061_v18 = vpack.c.bf16 %v569_v13, %v567_v12  ;;  %v1032_v7 = vld [vmem:[#allocation4 + $0x17b0] sm:$0xff]  ;;  %v587_v8 = vld [vmem:[#allocation4 + $0x9c8] sm:$0xff]  ;;  %v589_v9 = vld [vmem:[#allocation4 + $0x9d8] sm:$0xff] }
 0x16e   :  { %2408 = vmatprep.mubr.f32.mxu0 %v231_v25  ;;  %1702 = vmatmul.mubr.f32.gmra.mrb[8].mxu1 %v216_v26  ;;  %v4509_v22 = vpack.c.bf16 %v1017_v15, %v1015_v14  ;;  %v573_v25 = vld [vmem:[#allocation4 + $0x958] sm:$0xff]  ;;  %v1019_v26 = vld [vmem:[#allocation4 + $0x1748] sm:$0xff]  ;;  %v4081_v14 = vpack.c.bf16 %v589_v9, %v587_v8  ;;  %v586_v15 = vld [vmem:[#allocation4 + $0x9c0] sm:$0xff] }
 0x16f   :  { %4044 = vmatpush1.bf16.msra.mxu1 %v4043_v23  ;;  %2409 = vmatmul.mubr.f32.gmra.mrb[8].mxu0 %v230_v31  ;;  %v1016_v23 = vld [vmem:[#allocation4 + $0x1730] sm:$0xff]  ;;  %v4065_v30 = vpack.c.bf16 %v573_v25, %v571_v24  ;;  %v570_v31 = vld [vmem:[#allocation4 + $0x940] sm:$0xff]  ;;  %v1037_v11 = vld [vmem:[#allocation4 + $0x17d8] sm:$0xff] }
 0x170   :  { %4492 = vmatpush1.bf16.msra.mxu0 %v4491_v27  ;;  %4046 = vmatprep.subr.bf16.mxu1 %v4045_v28  ;;  %v1021_v27 = vld [vmem:[#allocation4 + $0x1758] sm:$0xff]  ;;  %v4063_v28 = vpack.c.bf16 %v568_v20, %v566_v19  ;;  %v4511_v29 = vpack.c.bf16 %v1016_v23, %v1014_v21  ;;  %v1036_v19 = vld [vmem:[#allocation4 + $0x17d0] sm:$0xff]  ;;  %v591_v20 = vld [vmem:[#allocation4 + $0x9e8] sm:$0xff] }
 0x171   :  { %4494 = vmatprep.subr.bf16.mxu0 %v4493_v32  ;;  %1707 = vmatprep.mubr.f32.mxu1 %v249_v38  ;;  %v572_v32 = vld [vmem:[#allocation4 + $0x950] sm:$0xff]  ;;  %v4513_v34 = vpack.c.bf16 %v1021_v27, %v1019_v26  ;;  %v1023_v38 = vld [vmem:[#allocation4 + $0x1768] sm:$0xff]  ;;  %v593_v21 = vld [vmem:[#allocation4 + $0x9f8] sm:$0xff] }
 0x172   :  { %2414 = vmatprep.mubr.f32.mxu0 %v263_v41  ;;  %1708 = vmatmul.mubr.f32.gmra.mrb[10].mxu1 %v248_v42  ;;  %v4067_v40 = vpack.c.bf16 %v572_v32, %v570_v31  ;;  %v4515_v41 = vpack.c.bf16 %v1020_v35, %v1018_v33  ;;  %v4069_v42 = vpack.c.bf16 %v577_v37, %v575_v36  ;;  %v1041_v23 = vld [vmem:[#allocation4 + $0x17f8] sm:$0xff]  ;;  %v590_v27 = vld [vmem:[#allocation4 + $0x9e0] sm:$0xff]  ;;  %v1040_v31 = vld [vmem:[#allocation4 + $0x17f0] sm:$0xff] }
 0x173   :  { %4048 = vmatpush1.bf16.msra.mxu1 %v4047_v39  ;;  %2415 = vmatmul.mubr.f32.gmra.mrb[10].mxu0 %v262_v47  ;;  %v1025_v39 = vld [vmem:[#allocation4 + $0x1778] sm:$0xff]  ;;  %v1024_v47 = vld [vmem:[#allocation4 + $0x1770] sm:$0xff]  ;;  %v4085_v26 = vpack.c.bf16 %v593_v21, %v591_v20  ;;  %v595_v32 = vld [vmem:[#allocation4 + $0xa08] sm:$0xff] }
 0x174   :  { %4496 = vmatpush1.bf16.msra.mxu0 %v4495_v43  ;;  %4050 = vmatprep.subr.bf16.mxu1 %v4049_v44  ;;  %v574_v43 = vld [vmem:[#allocation4 + $0x960] sm:$0xff]  ;;  %v576_v44 = vld [vmem:[#allocation4 + $0x970] sm:$0xff]  ;;  %v4517_v46 = vpack.c.bf16 %v1025_v39, %v1023_v38  ;;  %v4519_v53 = vpack.c.bf16 %v1024_v47, %v1022_v45  ;;  %v597_v33 = vld [vmem:[#allocation4 + $0xa18] sm:$0xff] }
 0x175   :  { %4498 = vmatprep.subr.bf16.mxu0 %v4497_v48  ;;  %1778 = vmatprep.mubr.f32.mxu1 %v91_v54  ;;  %v579_v48 = vld [vmem:[#allocation4 + $0x988] sm:$0xff]  ;;  %v4071_v52 = vpack.c.bf16 %v576_v44, %v574_v43  ;;  %v1045_v35 = vld [vmem:[#allocation4 + $0x1818] sm:$0xff]  ;;  %v4089_v38 = vpack.c.bf16 %v597_v33, %v595_v32  ;;  %v594_v39 = vld [vmem:[#allocation4 + $0xa00] sm:$0xff] }
 0x176   :  { %2485 = vmatprep.mubr.f32.mxu0 %v105_v56  ;;  %v4073_v54 = vpack.c.bf16 %v581_v49, %v579_v48  ;;  %v580_v56 = vld [vmem:[#allocation4 + $0x990] sm:$0xff]  ;;  %v599_v44 = vld [vmem:[#allocation4 + $0xa28] sm:$0xff]  ;;  %v601_v45 = vld [vmem:[#allocation4 + $0xa38] sm:$0xff] }
 0x177   :  { %4052 = vmatpush1.bf16.msra.mxu1 %v4051_v55  ;;  %v578_v55 = vld [vmem:[#allocation4 + $0x980] sm:$0xff]  ;;  %v1044_v43 = vld [vmem:[#allocation4 + $0x1810] sm:$0xff]  ;;  %v1049_v47 = vld [vmem:[#allocation4 + $0x1838] sm:$0xff] }
 0x178   :  { %4500 = vmatpush1.bf16.msra.mxu0 %v4499_v57  ;;  %4054 = vmatprep.subr.bf16.mxu1 %v4053_v58  ;;  %v1026_v57 = vld [vmem:[#allocation4 + $0x1780] sm:$0xff]  ;;  %v4521_v58 = vpack.c.bf16 %v1029_v51, %v1027_v50  ;;  %v4075_v0 = vpack.c.bf16 %v580_v56, %v578_v55  ;;  %v104_v50 = vld [vmem:[#allocation2 + $0xb0] sm:$0xff]  ;;  %v1053_v61 = vld [vmem:[#allocation4 + $0x1858] sm:$0xff] }
 0x179   :  { %4502 = vmatprep.subr.bf16.mxu0 %v4501_v62  ;;  %v1031_v62 = vld [vmem:[#allocation4 + $0x17a8] sm:$0xff]  ;;  %v4523_v1 = vpack.c.bf16 %v1028_v59, %v1026_v57  ;;  %v90_v48 = vld [vmem:[#allocation2 + $0x40] sm:$0xff]  ;;  %v1048_v57 = vld [vmem:[#allocation4 + $0x1830] sm:$0xff]  ;;  %v4545_v8 = vpack.c.bf16 %v1053_v61, %v1051_v60 }
 0x17a   :  { %v1046_v55 = vld [vmem:[#allocation4 + $0x1820] sm:$0xff]  ;;  %v605_v59 = vld [vmem:[#allocation4 + $0xa58] sm:$0xff]  ;;  %v1052_v9 = vld [vmem:[#allocation4 + $0x1850] sm:$0xff] }
 0x17b   :  { %4056 = vmatpush1.bf16.msra.mxu1 %v4055_v4  ;;  %v584_v4 = vld [vmem:[#allocation4 + $0x9b0] sm:$0xff]  ;;  %v610_v32 = vld [vmem:[#allocation4 + $0xa80] sm:$0xff]  ;;  %v201_v33 = vld [vmem:[#allocation2 + $0x3b8] sm:$0xff] }
 0x17c   :  { %4504 = vmatpush1.bf16.msra.mxu0 %v4503_v5  ;;  %4058 = vmatprep.subr.bf16.mxu1 %v4057_v6  ;;  %v1030_v5 = vld [vmem:[#allocation4 + $0x17a0] sm:$0xff]  ;;  %v4525_v6 = vpack.c.bf16 %v1033_v63, %v1031_v62  ;;  %v4079_v12 = vpack.c.bf16 %v584_v4, %v582_v3  ;;  %v123_v62 = vld [vmem:[#allocation2 + $0x148] sm:$0xff]  ;;  %v4543_v3 = vpack.c.bf16 %v1048_v57, %v1046_v55  ;;  %v608_v21 = vld [vmem:[#allocation4 + $0xa70] sm:$0xff] }
 0x17d   :  { %4506 = vmatprep.subr.bf16.mxu0 %v4505_v10  ;;  %v1035_v10 = vld [vmem:[#allocation4 + $0x17c8] sm:$0xff]  ;;  %v4527_v13 = vpack.c.bf16 %v1032_v7, %v1030_v5  ;;  %v604_v5 = vld [vmem:[#allocation4 + $0xa50] sm:$0xff]  ;;  %v1069_v61 = vld [vmem:[#allocation4 + $0x18d8] sm:$0xff] }
 0x17e   :  { %v136_v7 = vld [vmem:[#allocation2 + $0x1b0] sm:$0xff]  ;;  %v1067_v60 = vld [vmem:[#allocation4 + $0x18c8] sm:$0xff] }
 0x17f   :  { %4060 = vmatpush1.bf16.msra.mxu1 %v4059_v16  ;;  %v588_v16 = vld [vmem:[#allocation4 + $0x9d0] sm:$0xff] }
 0x180   :  { %4508 = vmatpush1.bf16.msra.mxu0 %v4507_v17  ;;  %4062 = vmatprep.subr.bf16.mxu1 %v4061_v18  ;;  %v1034_v17 = vld [vmem:[#allocation4 + $0x17c0] sm:$0xff]  ;;  %v4529_v18 = vpack.c.bf16 %v1037_v11, %v1035_v10  ;;  %v4083_v24 = vpack.c.bf16 %v588_v16, %v586_v15  ;;  %v607_v10 = vld [vmem:[#allocation4 + $0xa68] sm:$0xff]  ;;  %v609_v11 = vld [vmem:[#allocation4 + $0xa78] sm:$0xff] }
 0x181   :  { %4510 = vmatprep.subr.bf16.mxu0 %v4509_v22  ;;  %v1039_v22 = vld [vmem:[#allocation4 + $0x17e8] sm:$0xff]  ;;  %v4531_v25 = vpack.c.bf16 %v1036_v19, %v1034_v17  ;;  %v606_v16 = vld [vmem:[#allocation4 + $0xa60] sm:$0xff]  ;;  %v169_v17 = vld [vmem:[#allocation2 + $0x2b8] sm:$0xff]  ;;  %v4101_v20 = vpack.c.bf16 %v609_v11, %v607_v10 }
 0x182   :  { %v232_v55 = vld [vmem:[#allocation2 + $0x4b0] sm:$0xff]  ;;  %v623_v10 = vld [vmem:[#allocation4 + $0xae8] sm:$0xff]  ;;  %v625_v11 = vld [vmem:[#allocation4 + $0xaf8] sm:$0xff] }
 0x183   :  { %4064 = vmatpush1.bf16.msra.mxu1 %v4063_v28  ;;  %v592_v28 = vld [vmem:[#allocation4 + $0x9f0] sm:$0xff] }
 0x184   :  { %4512 = vmatpush1.bf16.msra.mxu0 %v4511_v29  ;;  %4066 = vmatprep.subr.bf16.mxu1 %v4065_v30  ;;  %v1038_v29 = vld [vmem:[#allocation4 + $0x17e0] sm:$0xff]  ;;  %v4533_v30 = vpack.c.bf16 %v1041_v23, %v1039_v22  ;;  %v4087_v36 = vpack.c.bf16 %v592_v28, %v590_v27  ;;  %v168_v23 = vld [vmem:[#allocation2 + $0x2b0] sm:$0xff]  ;;  %v613_v27 = vld [vmem:[#allocation4 + $0xa98] sm:$0xff] }
 0x185   :  { %4514 = vmatprep.subr.bf16.mxu0 %v4513_v34  ;;  %v1043_v34 = vld [vmem:[#allocation4 + $0x1808] sm:$0xff]  ;;  %v4535_v37 = vpack.c.bf16 %v1040_v31, %v1038_v29  ;;  %v1054_v22 = vld [vmem:[#allocation4 + $0x1860] sm:$0xff]  ;;  %v1061_v29 = vld [vmem:[#allocation4 + $0x1898] sm:$0xff]  ;;  %v4103_v31 = vpack.c.bf16 %v608_v21, %v606_v16 }
 0x186   :  { %v1059_v28 = vld [vmem:[#allocation4 + $0x1888] sm:$0xff]  ;;  %v1064_v57 = vld [vmem:[#allocation4 + $0x18b0] sm:$0xff]  ;;  %v1070_v21 = vld [vmem:[#allocation4 + $0x18e0] sm:$0xff] }
 0x187   :  { %4068 = vmatpush1.bf16.msra.mxu1 %v4067_v40  ;;  %v596_v40 = vld [vmem:[#allocation4 + $0xa10] sm:$0xff]  ;;  %v107_v16 = vld [vmem:[#allocation2 + $0xc8] sm:$0xff] }
 0x188   :  { %4516 = vmatpush1.bf16.msra.mxu0 %v4515_v41  ;;  %4070 = vmatprep.subr.bf16.mxu1 %v4069_v42  ;;  %v1042_v41 = vld [vmem:[#allocation4 + $0x1800] sm:$0xff]  ;;  %v4537_v42 = vpack.c.bf16 %v1045_v35, %v1043_v34  ;;  %v4091_v49 = vpack.c.bf16 %v596_v40, %v594_v39  ;;  %v200_v39 = vld [vmem:[#allocation2 + $0x3b0] sm:$0xff]  ;;  %v4553_v40 = vpack.c.bf16 %v1061_v29, %v1059_v28 }
 0x189   :  { %4518 = vmatprep.subr.bf16.mxu0 %v4517_v46  ;;  %v1047_v46 = vld [vmem:[#allocation4 + $0x1828] sm:$0xff]  ;;  %v4539_v51 = vpack.c.bf16 %v1044_v43, %v1042_v41  ;;  %v186_v34 = vld [vmem:[#allocation2 + $0x340] sm:$0xff]  ;;  %v1060_v41 = vld [vmem:[#allocation4 + $0x1890] sm:$0xff] }
 0x18a   :  { %v4541_v56 = vpack.c.bf16 %v1049_v47, %v1047_v46  ;;  %v617_v43 = vld [vmem:[#allocation4 + $0xab8] sm:$0xff]  ;;  %v219_v46 = vld [vmem:[#allocation2 + $0x448] sm:$0xff] }
 0x18b   :  { %4072 = vmatpush1.bf16.msra.mxu1 %v4071_v52  ;;  %v4093_v52 = vpack.c.bf16 %v601_v45, %v599_v44  ;;  %v1063_v44 = vld [vmem:[#allocation4 + $0x18a8] sm:$0xff]  ;;  %v1065_v45 = vld [vmem:[#allocation4 + $0x18b8] sm:$0xff] }
 0x18c   :  { %4520 = vmatpush1.bf16.msra.mxu0 %v4519_v53  ;;  %4074 = vmatprep.subr.bf16.mxu1 %v4073_v54  ;;  %v598_v53 = vld [vmem:[#allocation4 + $0xa20] sm:$0xff]  ;;  %v600_v54 = vld [vmem:[#allocation4 + $0xa30] sm:$0xff] }
 0x18d   :  { %4522 = vmatprep.subr.bf16.mxu0 %v4521_v58  ;;  %v603_v58 = vld [vmem:[#allocation4 + $0xa48] sm:$0xff]  ;;  %v4095_v63 = vpack.c.bf16 %v600_v54, %v598_v53  ;;  %v616_v53 = vld [vmem:[#allocation4 + $0xab0] sm:$0xff]  ;;  %v1062_v54 = vld [vmem:[#allocation4 + $0x18a0] sm:$0xff] }
 0x18e   :  { %v4097_v4 = vpack.c.bf16 %v605_v59, %v603_v58  ;;  %v619_v58 = vld [vmem:[#allocation4 + $0xac8] sm:$0xff]  ;;  %v621_v59 = vld [vmem:[#allocation4 + $0xad8] sm:$0xff] }
 0x18f   :  { %4076 = vmatpush1.bf16.msra.mxu1 %v4075_v0  ;;  %v602_v0 = vld [vmem:[#allocation4 + $0xa40] sm:$0xff] }
 0x190   :  { %4524 = vmatpush1.bf16.msra.mxu0 %v4523_v1  ;;  %4078 = vmatprep.subr.bf16.mxu1 %v4077_v2  ;;  %v137_v1 = vld [vmem:[#allocation2 + $0x1b8] sm:$0xff]  ;;  %v122_v2 = vld [vmem:[#allocation2 + $0x140] sm:$0xff]  ;;  %v4099_v15 = vpack.c.bf16 %v604_v5, %v602_v0  ;;  %v620_v5 = vld [vmem:[#allocation4 + $0xad0] sm:$0xff] }
 0x191   :  { %4526 = vmatprep.subr.bf16.mxu0 %v4525_v6  ;;  %v1050_v6 = vld [vmem:[#allocation4 + $0x1840] sm:$0xff] }
 0x192   :  { %v4547_v19 = vpack.c.bf16 %v1052_v9, %v1050_v6  ;;  %v618_v0 = vld [vmem:[#allocation4 + $0xac0] sm:$0xff]  ;;  %v1068_v9 = vld [vmem:[#allocation4 + $0x18d0] sm:$0xff] }
 0x193   :  { %4080 = vmatpush1.bf16.msra.mxu1 %v4079_v12  ;;  %v1055_v12 = vld [vmem:[#allocation4 + $0x1868] sm:$0xff]  ;;  %v1066_v6 = vld [vmem:[#allocation4 + $0x18c0] sm:$0xff] }
 0x194   :  { %4528 = vmatpush1.bf16.msra.mxu0 %v4527_v13  ;;  %4082 = vmatprep.subr.bf16.mxu1 %v4081_v14  ;;  %v1057_v13 = vld [vmem:[#allocation4 + $0x1878] sm:$0xff]  ;;  %v155_v14 = vld [vmem:[#allocation2 + $0x248] sm:$0xff] }
 0x195   :  { %4530 = vmatprep.subr.bf16.mxu0 %v4529_v18  ;;  %v154_v18 = vld [vmem:[#allocation2 + $0x240] sm:$0xff] }
 0x197   :  { %4084 = vmatpush1.bf16.msra.mxu1 %v4083_v24  ;;  %v4549_v24 = vpack.c.bf16 %v1057_v13, %v1055_v12  ;;  %v1071_v12 = vld [vmem:[#allocation4 + $0x18e8] sm:$0xff]  ;;  %v1073_v13 = vld [vmem:[#allocation4 + $0x18f8] sm:$0xff] }
 0x198   :  { %4532 = vmatpush1.bf16.msra.mxu0 %v4531_v25  ;;  %4086 = vmatprep.subr.bf16.mxu1 %v4085_v26  ;;  %v1056_v25 = vld [vmem:[#allocation4 + $0x1870] sm:$0xff]  ;;  %v611_v26 = vld [vmem:[#allocation4 + $0xa88] sm:$0xff] }
 0x199   :  { %4534 = vmatprep.subr.bf16.mxu0 %v4533_v30  ;;  %v187_v30 = vld [vmem:[#allocation2 + $0x348] sm:$0xff]  ;;  %v4551_v35 = vpack.c.bf16 %v1056_v25, %v1054_v22  ;;  %v4565_v22 = vpack.c.bf16 %v1073_v13, %v1071_v12  ;;  %v629_v25 = vld [vmem:[#allocation4 + $0xb18] sm:$0xff] }
 0x19b   :  { %4088 = vmatpush1.bf16.msra.mxu1 %v4087_v36  ;;  %v4105_v36 = vpack.c.bf16 %v613_v27, %v611_v26  ;;  %v1075_v26 = vld [vmem:[#allocation4 + $0x1908] sm:$0xff]  ;;  %v1077_v27 = vld [vmem:[#allocation4 + $0x1918] sm:$0xff] }
 0x19c   :  { %4536 = vmatpush1.bf16.msra.mxu0 %v4535_v37  ;;  %4090 = vmatprep.subr.bf16.mxu1 %v4089_v38  ;;  %v612_v37 = vld [vmem:[#allocation4 + $0xa90] sm:$0xff]  ;;  %v1058_v38 = vld [vmem:[#allocation4 + $0x1880] sm:$0xff] }
 0x19d   :  { %4538 = vmatprep.subr.bf16.mxu0 %v4537_v42  ;;  %v615_v42 = vld [vmem:[#allocation4 + $0xaa8] sm:$0xff]  ;;  %v4107_v47 = vpack.c.bf16 %v612_v37, %v610_v32  ;;  %v628_v32 = vld [vmem:[#allocation4 + $0xb10] sm:$0xff]  ;;  %v633_v37 = vld [vmem:[#allocation4 + $0xb38] sm:$0xff] }
 0x19e   :  { %1779 = vmatmul.mubr.f32.vlgmr.msra.gmra.mrb[0].mxu1 %v90_v48  ;;  %v614_v48 = vld [vmem:[#allocation4 + $0xaa0] sm:$0xff] }
 0x19f   :  { %4092 = vmatpush1.bf16.msra.mxu1 %v4091_v49  ;;  %2486 = vmatmul.mubr.f32.vlgmr.msra.gmra.mrb[0].mxu0 %v104_v50  ;;  %v233_v49 = vld [vmem:[#allocation2 + $0x4b8] sm:$0xff]  ;;  %v218_v50 = vld [vmem:[#allocation2 + $0x440] sm:$0xff] }
 0x1a0   :  { %4540 = vmatpush1.bf16.msra.mxu0 %v4539_v51  ;;  %4094 = vmatprep.subr.bf16.mxu1 %v4093_v52  ;;  %v4555_v51 = vpack.c.bf16 %v1060_v41, %v1058_v38  ;;  %v4109_v52 = vpack.c.bf16 %v617_v43, %v615_v42  ;;  %v1079_v38 = vld [vmem:[#allocation4 + $0x1928] sm:$0xff]  ;;  %v630_v43 = vld [vmem:[#allocation4 + $0xb20] sm:$0xff] }
 0x1a1   :  { %4542 = vmatprep.subr.bf16.mxu0 %v4541_v56  ;;  %1784 = vmatprep.mubr.f32.mxu1 %v123_v62  ;;  %v4557_v56 = vpack.c.bf16 %v1065_v45, %v1063_v44  ;;  %v251_v62 = vld [vmem:[#allocation2 + $0x548] sm:$0xff]  ;;  %v632_v44 = vld [vmem:[#allocation4 + $0xb30] sm:$0xff]  ;;  %v1078_v45 = vld [vmem:[#allocation4 + $0x1920] sm:$0xff] }
 0x1a2   :  { %2491 = vmatprep.mubr.f32.mxu0 %v137_v1  ;;  %1785 = vmatmul.mubr.f32.gmra.mrb[2].mxu1 %v122_v2  ;;  %v265_v1 = vld [vmem:[#allocation2 + $0x5b8] sm:$0xff]  ;;  %v250_v2 = vld [vmem:[#allocation2 + $0x540] sm:$0xff] }
 0x1a3   :  { %4096 = vmatpush1.bf16.msra.mxu1 %v4095_v63  ;;  %2492 = vmatmul.mubr.f32.gmra.mrb[2].mxu0 %v136_v7  ;;  %v4111_v63 = vpack.c.bf16 %v616_v53, %v614_v48  ;;  %v264_v7 = vld [vmem:[#allocation2 + $0x5b0] sm:$0xff]  ;;  %v635_v48 = vld [vmem:[#allocation4 + $0xb48] sm:$0xff] }
 0x1a4   :  { %4544 = vmatpush1.bf16.msra.mxu0 %v4543_v3  ;;  %4098 = vmatprep.subr.bf16.mxu1 %v4097_v4  ;;  %v4559_v3 = vpack.c.bf16 %v1064_v57, %v1062_v54  ;;  %v4113_v4 = vpack.c.bf16 %v621_v59, %v619_v58  ;;  %v1082_v57 = vld [vmem:[#allocation4 + $0x1940] sm:$0xff]  ;;  %v1084_v59 = vld [vmem:[#allocation4 + $0x1950] sm:$0xff] }
 0x1a5   :  { %4546 = vmatprep.subr.bf16.mxu0 %v4545_v8  ;;  %1790 = vmatprep.mubr.f32.mxu1 %v155_v14  ;;  %v4561_v8 = vpack.c.bf16 %v1069_v61, %v1067_v60  ;;  %v93_v14 = vld [vmem:[#allocation2 + $0x58] sm:$0xff]  ;;  %v639_v60 = vld [vmem:[#allocation4 + $0xb68] sm:$0xff] }
 0x1a6   :  { %2497 = vmatprep.mubr.f32.mxu0 %v169_v17  ;;  %1791 = vmatmul.mubr.f32.gmra.mrb[4].mxu1 %v154_v18  ;;  %v4563_v17 = vpack.c.bf16 %v1068_v9, %v1066_v6  ;;  %v4117_v18 = vpack.c.bf16 %v625_v11, %v623_v10  ;;  %v641_v61 = vld [vmem:[#allocation4 + $0xb78] sm:$0xff]  ;;  %v1091_v10 = vld [vmem:[#allocation4 + $0x1988] sm:$0xff] }
 0x1a7   :  { %4100 = vmatpush1.bf16.msra.mxu1 %v4099_v15  ;;  %2498 = vmatmul.mubr.f32.gmra.mrb[4].mxu0 %v168_v23  ;;  %v4115_v15 = vpack.c.bf16 %v620_v5, %v618_v0  ;;  %v1072_v23 = vld [vmem:[#allocation4 + $0x18f0] sm:$0xff]  ;;  %v1086_v5 = vld [vmem:[#allocation4 + $0x1960] sm:$0xff]  ;;  %v645_v9 = vld [vmem:[#allocation4 + $0xb98] sm:$0xff] }
 0x1a8   :  { %4548 = vmatpush1.bf16.msra.mxu0 %v4547_v19  ;;  %4102 = vmatprep.subr.bf16.mxu1 %v4101_v20  ;;  %v622_v19 = vld [vmem:[#allocation4 + $0xae0] sm:$0xff]  ;;  %v624_v20 = vld [vmem:[#allocation4 + $0xaf0] sm:$0xff]  ;;  %v4567_v29 = vpack.c.bf16 %v1072_v23, %v1070_v21  ;;  %v1093_v11 = vld [vmem:[#allocation4 + $0x1998] sm:$0xff] }
 0x1a9   :  { %4550 = vmatprep.subr.bf16.mxu0 %v4549_v24  ;;  %1796 = vmatprep.mubr.f32.mxu1 %v187_v30  ;;  %v627_v24 = vld [vmem:[#allocation4 + $0xb08] sm:$0xff]  ;;  %v4119_v28 = vpack.c.bf16 %v624_v20, %v622_v19  ;;  %v1092_v19 = vld [vmem:[#allocation4 + $0x1990] sm:$0xff]  ;;  %v649_v21 = vld [vmem:[#allocation4 + $0xbb8] sm:$0xff] }
 0x1aa   :  { %2503 = vmatprep.mubr.f32.mxu0 %v201_v33  ;;  %1797 = vmatmul.mubr.f32.gmra.mrb[6].mxu1 %v186_v34  ;;  %v4121_v30 = vpack.c.bf16 %v629_v25, %v627_v24  ;;  %v1074_v33 = vld [vmem:[#allocation4 + $0x1900] sm:$0xff]  ;;  %v4569_v34 = vpack.c.bf16 %v1077_v27, %v1075_v26  ;;  %v647_v20 = vld [vmem:[#allocation4 + $0xba8] sm:$0xff]  ;;  %v1097_v23 = vld [vmem:[#allocation4 + $0x19b8] sm:$0xff] }
 0x1ab   :  { %4104 = vmatpush1.bf16.msra.mxu1 %v4103_v31  ;;  %2504 = vmatmul.mubr.f32.gmra.mrb[6].mxu0 %v200_v39  ;;  %v626_v31 = vld [vmem:[#allocation4 + $0xb00] sm:$0xff]  ;;  %v1081_v39 = vld [vmem:[#allocation4 + $0x1938] sm:$0xff]  ;;  %v4141_v26 = vpack.c.bf16 %v649_v21, %v647_v20  ;;  %v1115_v20 = vld [vmem:[#allocation4 + $0x1a48] sm:$0xff] }
 0x1ac   :  { %4552 = vmatpush1.bf16.msra.mxu0 %v4551_v35  ;;  %4106 = vmatprep.subr.bf16.mxu1 %v4105_v36  ;;  %v1076_v35 = vld [vmem:[#allocation4 + $0x1910] sm:$0xff]  ;;  %v631_v36 = vld [vmem:[#allocation4 + $0xb28] sm:$0xff]  ;;  %v646_v27 = vld [vmem:[#allocation4 + $0xba0] sm:$0xff] }
 0x1ad   :  { %4554 = vmatprep.subr.bf16.mxu0 %v4553_v40  ;;  %1802 = vmatprep.mubr.f32.mxu1 %v219_v46  ;;  %v4123_v40 = vpack.c.bf16 %v628_v32, %v626_v31  ;;  %v4571_v41 = vpack.c.bf16 %v1076_v35, %v1074_v33  ;;  %v4125_v42 = vpack.c.bf16 %v633_v37, %v631_v36  ;;  %v1096_v31 = vld [vmem:[#allocation4 + $0x19b0] sm:$0xff]  ;;  %v651_v32 = vld [vmem:[#allocation4 + $0xbc8] sm:$0xff]  ;;  %v653_v33 = vld [vmem:[#allocation4 + $0xbd8] sm:$0xff] }
 0x1ae   :  { %2509 = vmatprep.mubr.f32.mxu0 %v233_v49  ;;  %1803 = vmatmul.mubr.f32.gmra.mrb[8].mxu1 %v218_v50  ;;  %v4573_v46 = vpack.c.bf16 %v1081_v39, %v1079_v38  ;;  %v637_v49 = vld [vmem:[#allocation4 + $0xb58] sm:$0xff]  ;;  %v1083_v50 = vld [vmem:[#allocation4 + $0x1948] sm:$0xff]  ;;  %v4145_v38 = vpack.c.bf16 %v653_v33, %v651_v32  ;;  %v650_v39 = vld [vmem:[#allocation4 + $0xbc0] sm:$0xff] }
 0x1af   :  { %4108 = vmatpush1.bf16.msra.mxu1 %v4107_v47  ;;  %2510 = vmatmul.mubr.f32.gmra.mrb[8].mxu0 %v232_v55  ;;  %v1080_v47 = vld [vmem:[#allocation4 + $0x1930] sm:$0xff]  ;;  %v4129_v54 = vpack.c.bf16 %v637_v49, %v635_v48  ;;  %v634_v55 = vld [vmem:[#allocation4 + $0xb40] sm:$0xff]  ;;  %v1101_v35 = vld [vmem:[#allocation4 + $0x19d8] sm:$0xff] }
 0x1b0   :  { %4556 = vmatpush1.bf16.msra.mxu0 %v4555_v51  ;;  %4110 = vmatprep.subr.bf16.mxu1 %v4109_v52  ;;  %v1085_v51 = vld [vmem:[#allocation4 + $0x1958] sm:$0xff]  ;;  %v4127_v52 = vpack.c.bf16 %v632_v44, %v630_v43  ;;  %v4575_v53 = vpack.c.bf16 %v1080_v47, %v1078_v45  ;;  %v1100_v43 = vld [vmem:[#allocation4 + $0x19d0] sm:$0xff]  ;;  %v655_v44 = vld [vmem:[#allocation4 + $0xbe8] sm:$0xff] }
 0x1b1   :  { %4558 = vmatprep.subr.bf16.mxu0 %v4557_v56  ;;  %1808 = vmatprep.mubr.f32.mxu1 %v251_v62  ;;  %v636_v56 = vld [vmem:[#allocation4 + $0xb50] sm:$0xff]  ;;  %v4577_v58 = vpack.c.bf16 %v1085_v51, %v1083_v50  ;;  %v1087_v62 = vld [vmem:[#allocation4 + $0x1968] sm:$0xff]  ;;  %v657_v45 = vld [vmem:[#allocation4 + $0xbf8] sm:$0xff] }
 0x1b2   :  { %2515 = vmatprep.mubr.f32.mxu0 %v265_v1  ;;  %1809 = vmatmul.mubr.f32.gmra.mrb[10].mxu1 %v250_v2  ;;  %v4131_v0 = vpack.c.bf16 %v636_v56, %v634_v55  ;;  %v4579_v1 = vpack.c.bf16 %v1084_v59, %v1082_v57  ;;  %v4133_v2 = vpack.c.bf16 %v641_v61, %v639_v60  ;;  %v1105_v47 = vld [vmem:[#allocation4 + $0x19f8] sm:$0xff]  ;;  %v654_v51 = vld [vmem:[#allocation4 + $0xbe0] sm:$0xff]  ;;  %v1104_v55 = vld [vmem:[#allocation4 + $0x19f0] sm:$0xff] }
 0x1b3   :  { %4112 = vmatpush1.bf16.msra.mxu1 %v4111_v63  ;;  %2516 = vmatmul.mubr.f32.gmra.mrb[10].mxu0 %v264_v7  ;;  %v1089_v63 = vld [vmem:[#allocation4 + $0x1978] sm:$0xff]  ;;  %v1088_v7 = vld [vmem:[#allocation4 + $0x1970] sm:$0xff]  ;;  %v4149_v50 = vpack.c.bf16 %v657_v45, %v655_v44  ;;  %v659_v56 = vld [vmem:[#allocation4 + $0xc08] sm:$0xff] }
 0x1b4   :  { %4560 = vmatpush1.bf16.msra.mxu0 %v4559_v3  ;;  %4114 = vmatprep.subr.bf16.mxu1 %v4113_v4  ;;  %v638_v3 = vld [vmem:[#allocation4 + $0xb60] sm:$0xff]  ;;  %v640_v4 = vld [vmem:[#allocation4 + $0xb70] sm:$0xff]  ;;  %v4581_v6 = vpack.c.bf16 %v1089_v63, %v1087_v62  ;;  %v4583_v13 = vpack.c.bf16 %v1088_v7, %v1086_v5  ;;  %v661_v57 = vld [vmem:[#allocation4 + $0xc18] sm:$0xff] }
 0x1b5   :  { %4562 = vmatprep.subr.bf16.mxu0 %v4561_v8  ;;  %1879 = vmatprep.mubr.f32.mxu1 %v93_v14  ;;  %v643_v8 = vld [vmem:[#allocation4 + $0xb88] sm:$0xff]  ;;  %v4135_v12 = vpack.c.bf16 %v640_v4, %v638_v3  ;;  %v1109_v59 = vld [vmem:[#allocation4 + $0x1a18] sm:$0xff]  ;;  %v4153_v62 = vpack.c.bf16 %v661_v57, %v659_v56  ;;  %v658_v63 = vld [vmem:[#allocation4 + $0xc00] sm:$0xff] }
 0x1b6   :  { %2586 = vmatprep.mubr.f32.mxu0 %v107_v16  ;;  %v4137_v14 = vpack.c.bf16 %v645_v9, %v643_v8  ;;  %v644_v16 = vld [vmem:[#allocation4 + $0xb90] sm:$0xff]  ;;  %v663_v4 = vld [vmem:[#allocation4 + $0xc28] sm:$0xff]  ;;  %v665_v5 = vld [vmem:[#allocation4 + $0xc38] sm:$0xff] }
 0x1b7   :  { %4116 = vmatpush1.bf16.msra.mxu1 %v4115_v15  ;;  %v642_v15 = vld [vmem:[#allocation4 + $0xb80] sm:$0xff]  ;;  %v1108_v3 = vld [vmem:[#allocation4 + $0x1a10] sm:$0xff]  ;;  %v1113_v7 = vld [vmem:[#allocation4 + $0x1a38] sm:$0xff] }
 0x1b8   :  { %4564 = vmatpush1.bf16.msra.mxu0 %v4563_v17  ;;  %4118 = vmatprep.subr.bf16.mxu1 %v4117_v18  ;;  %v1090_v17 = vld [vmem:[#allocation4 + $0x1980] sm:$0xff]  ;;  %v4585_v18 = vpack.c.bf16 %v1093_v11, %v1091_v10  ;;  %v4139_v24 = vpack.c.bf16 %v644_v16, %v642_v15  ;;  %v92_v8 = vld [vmem:[#allocation2 + $0x50] sm:$0xff]  ;;  %v1117_v21 = vld [vmem:[#allocation4 + $0x1a58] sm:$0xff] }
 0x1b9   :  { %4566 = vmatprep.subr.bf16.mxu0 %v4565_v22  ;;  %v1095_v22 = vld [vmem:[#allocation4 + $0x19a8] sm:$0xff]  ;;  %v4587_v25 = vpack.c.bf16 %v1092_v19, %v1090_v17  ;;  %v106_v10 = vld [vmem:[#allocation2 + $0xc0] sm:$0xff]  ;;  %v1112_v17 = vld [vmem:[#allocation4 + $0x1a30] sm:$0xff]  ;;  %v4609_v32 = vpack.c.bf16 %v1117_v21, %v1115_v20 }
 0x1ba   :  { %v1110_v15 = vld [vmem:[#allocation4 + $0x1a20] sm:$0xff]  ;;  %v669_v19 = vld [vmem:[#allocation4 + $0xc58] sm:$0xff]  ;;  %v1116_v33 = vld [vmem:[#allocation4 + $0x1a50] sm:$0xff] }
 0x1bb   :  { %4120 = vmatpush1.bf16.msra.mxu1 %v4119_v28  ;;  %v648_v28 = vld [vmem:[#allocation4 + $0xbb0] sm:$0xff]  ;;  %v674_v56 = vld [vmem:[#allocation4 + $0xc80] sm:$0xff]  ;;  %v1131_v20 = vld [vmem:[#allocation4 + $0x1ac8] sm:$0xff] }
 0x1bc   :  { %4568 = vmatpush1.bf16.msra.mxu0 %v4567_v29  ;;  %4122 = vmatprep.subr.bf16.mxu1 %v4121_v30  ;;  %v1094_v29 = vld [vmem:[#allocation4 + $0x19a0] sm:$0xff]  ;;  %v4589_v30 = vpack.c.bf16 %v1097_v23, %v1095_v22  ;;  %v4143_v36 = vpack.c.bf16 %v648_v28, %v646_v27  ;;  %v125_v22 = vld [vmem:[#allocation2 + $0x158] sm:$0xff]  ;;  %v4607_v27 = vpack.c.bf16 %v1112_v17, %v1110_v15  ;;  %v672_v45 = vld [vmem:[#allocation4 + $0xc70] sm:$0xff] }
 0x1bd   :  { %4570 = vmatprep.subr.bf16.mxu0 %v4569_v34  ;;  %v1099_v34 = vld [vmem:[#allocation4 + $0x19c8] sm:$0xff]  ;;  %v4591_v37 = vpack.c.bf16 %v1096_v31, %v1094_v29  ;;  %v668_v29 = vld [vmem:[#allocation4 + $0xc50] sm:$0xff]  ;;  %v138_v31 = vld [vmem:[#allocation2 + $0x1c0] sm:$0xff] }
 0x1be   :  { %v188_v57 = vld [vmem:[#allocation2 + $0x350] sm:$0xff]  ;;  %v234_v15 = vld [vmem:[#allocation2 + $0x4c0] sm:$0xff]  ;;  %v1133_v21 = vld [vmem:[#allocation4 + $0x1ad8] sm:$0xff] }
 0x1bf   :  { %4124 = vmatpush1.bf16.msra.mxu1 %v4123_v40  ;;  %v652_v40 = vld [vmem:[#allocation4 + $0xbd0] sm:$0xff] }
 0x1c0   :  { %4572 = vmatpush1.bf16.msra.mxu0 %v4571_v41  ;;  %4126 = vmatprep.subr.bf16.mxu1 %v4125_v42  ;;  %v1098_v41 = vld [vmem:[#allocation4 + $0x19c0] sm:$0xff]  ;;  %v4593_v42 = vpack.c.bf16 %v1101_v35, %v1099_v34  ;;  %v4147_v48 = vpack.c.bf16 %v652_v40, %v650_v39  ;;  %v671_v34 = vld [vmem:[#allocation4 + $0xc68] sm:$0xff]  ;;  %v673_v35 = vld [vmem:[#allocation4 + $0xc78] sm:$0xff] }
 0x1c1   :  { %4574 = vmatprep.subr.bf16.mxu0 %v4573_v46  ;;  %v1103_v46 = vld [vmem:[#allocation4 + $0x19e8] sm:$0xff]  ;;  %v4595_v49 = vpack.c.bf16 %v1100_v43, %v1098_v41  ;;  %v670_v40 = vld [vmem:[#allocation4 + $0xc60] sm:$0xff]  ;;  %v156_v41 = vld [vmem:[#allocation2 + $0x250] sm:$0xff]  ;;  %v4165_v44 = vpack.c.bf16 %v673_v35, %v671_v34 }
 0x1c2   :  { %v1128_v17 = vld [vmem:[#allocation4 + $0x1ab0] sm:$0xff]  ;;  %v687_v34 = vld [vmem:[#allocation4 + $0xce8] sm:$0xff]  ;;  %v689_v35 = vld [vmem:[#allocation4 + $0xcf8] sm:$0xff] }
 0x1c3   :  { %4128 = vmatpush1.bf16.msra.mxu1 %v4127_v52  ;;  %v656_v52 = vld [vmem:[#allocation4 + $0xbf0] sm:$0xff] }
 0x1c4   :  { %4576 = vmatpush1.bf16.msra.mxu0 %v4575_v53  ;;  %4130 = vmatprep.subr.bf16.mxu1 %v4129_v54  ;;  %v1102_v53 = vld [vmem:[#allocation4 + $0x19e0] sm:$0xff]  ;;  %v4597_v54 = vpack.c.bf16 %v1105_v47, %v1103_v46  ;;  %v4151_v60 = vpack.c.bf16 %v656_v52, %v654_v51  ;;  %v677_v51 = vld [vmem:[#allocation4 + $0xc98] sm:$0xff]  ;;  %v1123_v52 = vld [vmem:[#allocation4 + $0x1a88] sm:$0xff] }
 0x1c5   :  { %4578 = vmatprep.subr.bf16.mxu0 %v4577_v58  ;;  %v1107_v58 = vld [vmem:[#allocation4 + $0x1a08] sm:$0xff]  ;;  %v4599_v61 = vpack.c.bf16 %v1104_v55, %v1102_v53  ;;  %v1118_v46 = vld [vmem:[#allocation4 + $0x1a60] sm:$0xff]  ;;  %v1125_v53 = vld [vmem:[#allocation4 + $0x1a98] sm:$0xff]  ;;  %v4167_v55 = vpack.c.bf16 %v672_v45, %v670_v40 }
 0x1c6   :  { %v170_v47 = vld [vmem:[#allocation2 + $0x2c0] sm:$0xff]  ;;  %v109_v40 = vld [vmem:[#allocation2 + $0xd8] sm:$0xff] }
 0x1c7   :  { %4132 = vmatpush1.bf16.msra.mxu1 %v4131_v0  ;;  %v660_v0 = vld [vmem:[#allocation4 + $0xc10] sm:$0xff]  ;;  %v1134_v45 = vld [vmem:[#allocation4 + $0x1ae0] sm:$0xff] }
 0x1c8   :  { %4580 = vmatpush1.bf16.msra.mxu0 %v4579_v1  ;;  %4134 = vmatprep.subr.bf16.mxu1 %v4133_v2  ;;  %v1106_v1 = vld [vmem:[#allocation4 + $0x1a00] sm:$0xff]  ;;  %v4601_v2 = vpack.c.bf16 %v1109_v59, %v1107_v58  ;;  %v4155_v9 = vpack.c.bf16 %v660_v0, %v658_v63  ;;  %v203_v58 = vld [vmem:[#allocation2 + $0x3c8] sm:$0xff]  ;;  %v4617_v0 = vpack.c.bf16 %v1125_v53, %v1123_v52 }
 0x1c9   :  { %4582 = vmatprep.subr.bf16.mxu0 %v4581_v6  ;;  %v1111_v6 = vld [vmem:[#allocation4 + $0x1a28] sm:$0xff]  ;;  %v4603_v11 = vpack.c.bf16 %v1108_v3, %v1106_v1  ;;  %v202_v63 = vld [vmem:[#allocation2 + $0x3c0] sm:$0xff]  ;;  %v1124_v1 = vld [vmem:[#allocation4 + $0x1a90] sm:$0xff] }
 0x1ca   :  { %v4605_v16 = vpack.c.bf16 %v1113_v7, %v1111_v6  ;;  %v681_v3 = vld [vmem:[#allocation4 + $0xcb8] sm:$0xff] }
 0x1cb   :  { %4136 = vmatpush1.bf16.msra.mxu1 %v4135_v12  ;;  %v4157_v12 = vpack.c.bf16 %v665_v5, %v663_v4  ;;  %v1127_v4 = vld [vmem:[#allocation4 + $0x1aa8] sm:$0xff]  ;;  %v1129_v5 = vld [vmem:[#allocation4 + $0x1ab8] sm:$0xff] }
 0x1cc   :  { %4584 = vmatpush1.bf16.msra.mxu0 %v4583_v13  ;;  %4138 = vmatprep.subr.bf16.mxu1 %v4137_v14  ;;  %v662_v13 = vld [vmem:[#allocation4 + $0xc20] sm:$0xff]  ;;  %v664_v14 = vld [vmem:[#allocation4 + $0xc30] sm:$0xff]  ;;  %v221_v6 = vld [vmem:[#allocation2 + $0x458] sm:$0xff] }
 0x1cd   :  { %4586 = vmatprep.subr.bf16.mxu0 %v4585_v18  ;;  %v667_v18 = vld [vmem:[#allocation4 + $0xc48] sm:$0xff]  ;;  %v4159_v23 = vpack.c.bf16 %v664_v14, %v662_v13  ;;  %v680_v13 = vld [vmem:[#allocation4 + $0xcb0] sm:$0xff]  ;;  %v1126_v14 = vld [vmem:[#allocation4 + $0x1aa0] sm:$0xff] }
 0x1ce   :  { %v4161_v28 = vpack.c.bf16 %v669_v19, %v667_v18  ;;  %v683_v18 = vld [vmem:[#allocation4 + $0xcc8] sm:$0xff]  ;;  %v685_v19 = vld [vmem:[#allocation4 + $0xcd8] sm:$0xff] }
 0x1cf   :  { %4140 = vmatpush1.bf16.msra.mxu1 %v4139_v24  ;;  %v666_v24 = vld [vmem:[#allocation4 + $0xc40] sm:$0xff] }
 0x1d0   :  { %4588 = vmatpush1.bf16.msra.mxu0 %v4587_v25  ;;  %4142 = vmatprep.subr.bf16.mxu1 %v4141_v26  ;;  %v124_v25 = vld [vmem:[#allocation2 + $0x150] sm:$0xff]  ;;  %v139_v26 = vld [vmem:[#allocation2 + $0x1c8] sm:$0xff]  ;;  %v4163_v39 = vpack.c.bf16 %v668_v29, %v666_v24  ;;  %v682_v24 = vld [vmem:[#allocation4 + $0xcc0] sm:$0xff] }
 0x1d1   :  { %4590 = vmatprep.subr.bf16.mxu0 %v4589_v30  ;;  %v1114_v30 = vld [vmem:[#allocation4 + $0x1a40] sm:$0xff]  ;;  %v684_v29 = vld [vmem:[#allocation4 + $0xcd0] sm:$0xff] }
 0x1d2   :  { %v4611_v43 = vpack.c.bf16 %v1116_v33, %v1114_v30  ;;  %v1130_v30 = vld [vmem:[#allocation4 + $0x1ac0] sm:$0xff]  ;;  %v1132_v33 = vld [vmem:[#allocation4 + $0x1ad0] sm:$0xff] }
 0x1d3   :  { %4144 = vmatpush1.bf16.msra.mxu1 %v4143_v36  ;;  %v1119_v36 = vld [vmem:[#allocation4 + $0x1a68] sm:$0xff] }
 0x1d4   :  { %4592 = vmatpush1.bf16.msra.mxu0 %v4591_v37  ;;  %4146 = vmatprep.subr.bf16.mxu1 %v4145_v38  ;;  %v1121_v37 = vld [vmem:[#allocation4 + $0x1a78] sm:$0xff] }
 0x1d5   :  { %4594 = vmatprep.subr.bf16.mxu0 %v4593_v42  ;;  %v157_v38 = vld [vmem:[#allocation2 + $0x258] sm:$0xff]  ;;  %v171_v42 = vld [vmem:[#allocation2 + $0x2c8] sm:$0xff] }
 0x1d7   :  { %4148 = vmatpush1.bf16.msra.mxu1 %v4147_v48  ;;  %v4613_v48 = vpack.c.bf16 %v1121_v37, %v1119_v36  ;;  %v1135_v36 = vld [vmem:[#allocation4 + $0x1ae8] sm:$0xff]  ;;  %v1137_v37 = vld [vmem:[#allocation4 + $0x1af8] sm:$0xff] }
 0x1d8   :  { %4596 = vmatpush1.bf16.msra.mxu0 %v4595_v49  ;;  %4150 = vmatprep.subr.bf16.mxu1 %v4149_v50  ;;  %v1120_v49 = vld [vmem:[#allocation4 + $0x1a70] sm:$0xff]  ;;  %v675_v50 = vld [vmem:[#allocation4 + $0xc88] sm:$0xff] }
 0x1d9   :  { %4598 = vmatprep.subr.bf16.mxu0 %v4597_v54  ;;  %v189_v54 = vld [vmem:[#allocation2 + $0x358] sm:$0xff]  ;;  %v4615_v59 = vpack.c.bf16 %v1120_v49, %v1118_v46  ;;  %v4629_v46 = vpack.c.bf16 %v1137_v37, %v1135_v36 }
 0x1da   :  { %v693_v49 = vld [vmem:[#allocation4 + $0xd18] sm:$0xff] }
 0x1db   :  { %4152 = vmatpush1.bf16.msra.mxu1 %v4151_v60  ;;  %v4169_v60 = vpack.c.bf16 %v677_v51, %v675_v50  ;;  %v1139_v50 = vld [vmem:[#allocation4 + $0x1b08] sm:$0xff]  ;;  %v1141_v51 = vld [vmem:[#allocation4 + $0x1b18] sm:$0xff] }
 0x1dc   :  { %4600 = vmatpush1.bf16.msra.mxu0 %v4599_v61  ;;  %4154 = vmatprep.subr.bf16.mxu1 %v4153_v62  ;;  %v676_v61 = vld [vmem:[#allocation4 + $0xc90] sm:$0xff]  ;;  %v1122_v62 = vld [vmem:[#allocation4 + $0x1a80] sm:$0xff] }
 0x1dd   :  { %4602 = vmatprep.subr.bf16.mxu0 %v4601_v2  ;;  %v679_v2 = vld [vmem:[#allocation4 + $0xca8] sm:$0xff]  ;;  %v4171_v7 = vpack.c.bf16 %v676_v61, %v674_v56  ;;  %v692_v56 = vld [vmem:[#allocation4 + $0xd10] sm:$0xff]  ;;  %v697_v61 = vld [vmem:[#allocation4 + $0xd38] sm:$0xff] }
 0x1de   :  { %1880 = vmatmul.mubr.f32.vlgmr.msra.gmra.mrb[0].mxu1 %v92_v8  ;;  %v678_v8 = vld [vmem:[#allocation4 + $0xca0] sm:$0xff] }
 0x1df   :  { %4156 = vmatpush1.bf16.msra.mxu1 %v4155_v9  ;;  %2587 = vmatmul.mubr.f32.vlgmr.msra.gmra.mrb[0].mxu0 %v106_v10  ;;  %v220_v9 = vld [vmem:[#allocation2 + $0x450] sm:$0xff]  ;;  %v235_v10 = vld [vmem:[#allocation2 + $0x4c8] sm:$0xff] }
 0x1e0   :  { %4604 = vmatpush1.bf16.msra.mxu0 %v4603_v11  ;;  %4158 = vmatprep.subr.bf16.mxu1 %v4157_v12  ;;  %v4619_v11 = vpack.c.bf16 %v1124_v1, %v1122_v62  ;;  %v4173_v12 = vpack.c.bf16 %v681_v3, %v679_v2  ;;  %v1143_v62 = vld [vmem:[#allocation4 + $0x1b28] sm:$0xff]  ;;  %v694_v3 = vld [vmem:[#allocation4 + $0xd20] sm:$0xff] }
 0x1e1   :  { %4606 = vmatprep.subr.bf16.mxu0 %v4605_v16  ;;  %1885 = vmatprep.mubr.f32.mxu1 %v125_v22  ;;  %v4621_v16 = vpack.c.bf16 %v1129_v5, %v1127_v4  ;;  %v253_v22 = vld [vmem:[#allocation2 + $0x558] sm:$0xff]  ;;  %v696_v4 = vld [vmem:[#allocation4 + $0xd30] sm:$0xff]  ;;  %v1142_v5 = vld [vmem:[#allocation4 + $0x1b20] sm:$0xff] }
 0x1e2   :  { %1886 = vmatmul.mubr.f32.gmra.mrb[2].mxu1 %v124_v25  ;;  %2592 = vmatprep.mubr.f32.mxu0 %v139_v26  ;;  %v252_v25 = vld [vmem:[#allocation2 + $0x550] sm:$0xff]  ;;  %v267_v26 = vld [vmem:[#allocation2 + $0x5c8] sm:$0xff] }
 0x1e3   :  { %4160 = vmatpush1.bf16.msra.mxu1 %v4159_v23  ;;  %2593 = vmatmul.mubr.f32.gmra.mrb[2].mxu0 %v138_v31  ;;  %v4175_v23 = vpack.c.bf16 %v680_v13, %v678_v8  ;;  %v266_v31 = vld [vmem:[#allocation2 + $0x5c0] sm:$0xff]  ;;  %v699_v8 = vld [vmem:[#allocation4 + $0xd48] sm:$0xff] }
 0x1e4   :  { %4608 = vmatpush1.bf16.msra.mxu0 %v4607_v27  ;;  %4162 = vmatprep.subr.bf16.mxu1 %v4161_v28  ;;  %v4623_v27 = vpack.c.bf16 %v1128_v17, %v1126_v14  ;;  %v4177_v28 = vpack.c.bf16 %v685_v19, %v683_v18  ;;  %v1146_v17 = vld [vmem:[#allocation4 + $0x1b40] sm:$0xff]  ;;  %v1148_v19 = vld [vmem:[#allocation4 + $0x1b50] sm:$0xff] }
 0x1e5   :  { %4610 = vmatprep.subr.bf16.mxu0 %v4609_v32  ;;  %1891 = vmatprep.mubr.f32.mxu1 %v157_v38  ;;  %v4625_v32 = vpack.c.bf16 %v1133_v21, %v1131_v20  ;;  %v95_v38 = vld [vmem:[#allocation2 + $0x68] sm:$0xff]  ;;  %v705_v21 = vld [vmem:[#allocation4 + $0xd78] sm:$0xff] }
 0x1e6   :  { %1892 = vmatmul.mubr.f32.gmra.mrb[4].mxu1 %v156_v41  ;;  %2598 = vmatprep.mubr.f32.mxu0 %v171_v42  ;;  %v4627_v41 = vpack.c.bf16 %v1132_v33, %v1130_v30  ;;  %v4181_v42 = vpack.c.bf16 %v689_v35, %v687_v34  ;;  %v703_v20 = vld [vmem:[#allocation4 + $0xd68] sm:$0xff]  ;;  %v709_v33 = vld [vmem:[#allocation4 + $0xd98] sm:$0xff] }
 0x1e7   :  { %4164 = vmatpush1.bf16.msra.mxu1 %v4163_v39  ;;  %2599 = vmatmul.mubr.f32.gmra.mrb[4].mxu0 %v170_v47  ;;  %v4179_v39 = vpack.c.bf16 %v684_v29, %v682_v24  ;;  %v1136_v47 = vld [vmem:[#allocation4 + $0x1af0] sm:$0xff]  ;;  %v1150_v29 = vld [vmem:[#allocation4 + $0x1b60] sm:$0xff]  ;;  %v1155_v34 = vld [vmem:[#allocation4 + $0x1b88] sm:$0xff] }
 0x1e8   :  { %4612 = vmatpush1.bf16.msra.mxu0 %v4611_v43  ;;  %4166 = vmatprep.subr.bf16.mxu1 %v4165_v44  ;;  %v686_v43 = vld [vmem:[#allocation4 + $0xce0] sm:$0xff]  ;;  %v688_v44 = vld [vmem:[#allocation4 + $0xcf0] sm:$0xff]  ;;  %v4631_v53 = vpack.c.bf16 %v1136_v47, %v1134_v45  ;;  %v1157_v35 = vld [vmem:[#allocation4 + $0x1b98] sm:$0xff] }
 0x1e9   :  { %4614 = vmatprep.subr.bf16.mxu0 %v4613_v48  ;;  %1897 = vmatprep.mubr.f32.mxu1 %v189_v54  ;;  %v691_v48 = vld [vmem:[#allocation4 + $0xd08] sm:$0xff]  ;;  %v4183_v52 = vpack.c.bf16 %v688_v44, %v686_v43  ;;  %v1156_v43 = vld [vmem:[#allocation4 + $0x1b90] sm:$0xff]  ;;  %v713_v45 = vld [vmem:[#allocation4 + $0xdb8] sm:$0xff] }
 0x1ea   :  { %1898 = vmatmul.mubr.f32.gmra.mrb[6].mxu1 %v188_v57  ;;  %2604 = vmatprep.mubr.f32.mxu0 %v203_v58  ;;  %v4185_v54 = vpack.c.bf16 %v693_v49, %v691_v48  ;;  %v1138_v57 = vld [vmem:[#allocation4 + $0x1b00] sm:$0xff]  ;;  %v4633_v58 = vpack.c.bf16 %v1141_v51, %v1139_v50  ;;  %v711_v44 = vld [vmem:[#allocation4 + $0xda8] sm:$0xff]  ;;  %v1161_v47 = vld [vmem:[#allocation4 + $0x1bb8] sm:$0xff] }
 0x1eb   :  { %4168 = vmatpush1.bf16.msra.mxu1 %v4167_v55  ;;  %2605 = vmatmul.mubr.f32.gmra.mrb[6].mxu0 %v202_v63  ;;  %v690_v55 = vld [vmem:[#allocation4 + $0xd00] sm:$0xff]  ;;  %v1145_v63 = vld [vmem:[#allocation4 + $0x1b38] sm:$0xff]  ;;  %v4205_v50 = vpack.c.bf16 %v713_v45, %v711_v44  ;;  %v1243_v45 = vld [vmem:[#allocation4 + $0x1e48] sm:$0xff] }
 0x1ec   :  { %4616 = vmatpush1.bf16.msra.mxu0 %v4615_v59  ;;  %4170 = vmatprep.subr.bf16.mxu1 %v4169_v60  ;;  %v1140_v59 = vld [vmem:[#allocation4 + $0x1b10] sm:$0xff]  ;;  %v695_v60 = vld [vmem:[#allocation4 + $0xd28] sm:$0xff]  ;;  %v710_v51 = vld [vmem:[#allocation4 + $0xda0] sm:$0xff] }
 0x1ed   :  { %4618 = vmatprep.subr.bf16.mxu0 %v4617_v0  ;;  %1903 = vmatprep.mubr.f32.mxu1 %v221_v6  ;;  %v4187_v0 = vpack.c.bf16 %v692_v56, %v690_v55  ;;  %v4635_v1 = vpack.c.bf16 %v1140_v59, %v1138_v57  ;;  %v4189_v2 = vpack.c.bf16 %v697_v61, %v695_v60  ;;  %v1160_v55 = vld [vmem:[#allocation4 + $0x1bb0] sm:$0xff]  ;;  %v715_v56 = vld [vmem:[#allocation4 + $0xdc8] sm:$0xff]  ;;  %v717_v57 = vld [vmem:[#allocation4 + $0xdd8] sm:$0xff] }
 0x1ee   :  { %1904 = vmatmul.mubr.f32.gmra.mrb[8].mxu1 %v220_v9  ;;  %2610 = vmatprep.mubr.f32.mxu0 %v235_v10  ;;  %v4637_v6 = vpack.c.bf16 %v1145_v63, %v1143_v62  ;;  %v701_v9 = vld [vmem:[#allocation4 + $0xd58] sm:$0xff]  ;;  %v1147_v10 = vld [vmem:[#allocation4 + $0x1b48] sm:$0xff]  ;;  %v4209_v62 = vpack.c.bf16 %v717_v57, %v715_v56  ;;  %v714_v63 = vld [vmem:[#allocation4 + $0xdc0] sm:$0xff] }
 0x1ef   :  { %4172 = vmatpush1.bf16.msra.mxu1 %v4171_v7  ;;  %2611 = vmatmul.mubr.f32.gmra.mrb[8].mxu0 %v234_v15  ;;  %v1144_v7 = vld [vmem:[#allocation4 + $0x1b30] sm:$0xff]  ;;  %v4193_v14 = vpack.c.bf16 %v701_v9, %v699_v8  ;;  %v698_v15 = vld [vmem:[#allocation4 + $0xd40] sm:$0xff]  ;;  %v1165_v59 = vld [vmem:[#allocation4 + $0x1bd8] sm:$0xff] }
 0x1f0   :  { %4620 = vmatpush1.bf16.msra.mxu0 %v4619_v11  ;;  %4174 = vmatprep.subr.bf16.mxu1 %v4173_v12  ;;  %v1149_v11 = vld [vmem:[#allocation4 + $0x1b58] sm:$0xff]  ;;  %v4191_v12 = vpack.c.bf16 %v696_v4, %v694_v3  ;;  %v4639_v13 = vpack.c.bf16 %v1144_v7, %v1142_v5  ;;  %v1164_v3 = vld [vmem:[#allocation4 + $0x1bd0] sm:$0xff]  ;;  %v719_v4 = vld [vmem:[#allocation4 + $0xde8] sm:$0xff] }
 0x1f1   :  { %4622 = vmatprep.subr.bf16.mxu0 %v4621_v16  ;;  %1909 = vmatprep.mubr.f32.mxu1 %v253_v22  ;;  %v700_v16 = vld [vmem:[#allocation4 + $0xd50] sm:$0xff]  ;;  %v4641_v18 = vpack.c.bf16 %v1149_v11, %v1147_v10  ;;  %v1151_v22 = vld [vmem:[#allocation4 + $0x1b68] sm:$0xff]  ;;  %v721_v5 = vld [vmem:[#allocation4 + $0xdf8] sm:$0xff] }
 0x1f2   :  { %1910 = vmatmul.mubr.f32.gmra.mrb[10].mxu1 %v252_v25  ;;  %2616 = vmatprep.mubr.f32.mxu0 %v267_v26  ;;  %v4195_v24 = vpack.c.bf16 %v700_v16, %v698_v15  ;;  %v4643_v25 = vpack.c.bf16 %v1148_v19, %v1146_v17  ;;  %v4197_v26 = vpack.c.bf16 %v705_v21, %v703_v20  ;;  %v1169_v7 = vld [vmem:[#allocation4 + $0x1bf8] sm:$0xff]  ;;  %v718_v11 = vld [vmem:[#allocation4 + $0xde0] sm:$0xff]  ;;  %v1168_v15 = vld [vmem:[#allocation4 + $0x1bf0] sm:$0xff] }
 0x1f3   :  { %4176 = vmatpush1.bf16.msra.mxu1 %v4175_v23  ;;  %2617 = vmatmul.mubr.f32.gmra.mrb[10].mxu0 %v266_v31  ;;  %v1153_v23 = vld [vmem:[#allocation4 + $0x1b78] sm:$0xff]  ;;  %v1152_v31 = vld [vmem:[#allocation4 + $0x1b70] sm:$0xff]  ;;  %v4213_v10 = vpack.c.bf16 %v721_v5, %v719_v4  ;;  %v1235_v16 = vld [vmem:[#allocation4 + $0x1e08] sm:$0xff] }
 0x1f4   :  { %4624 = vmatpush1.bf16.msra.mxu0 %v4623_v27  ;;  %4178 = vmatprep.subr.bf16.mxu1 %v4177_v28  ;;  %v702_v27 = vld [vmem:[#allocation4 + $0xd60] sm:$0xff]  ;;  %v704_v28 = vld [vmem:[#allocation4 + $0xd70] sm:$0xff]  ;;  %v4645_v30 = vpack.c.bf16 %v1153_v23, %v1151_v22  ;;  %v4647_v37 = vpack.c.bf16 %v1152_v31, %v1150_v29  ;;  %v1237_v17 = vld [vmem:[#allocation4 + $0x1e18] sm:$0xff] }
 0x1f5   :  { %4626 = vmatprep.subr.bf16.mxu0 %v4625_v32  ;;  %1980 = vmatprep.mubr.f32.mxu1 %v95_v38  ;;  %v707_v32 = vld [vmem:[#allocation4 + $0xd88] sm:$0xff]  ;;  %v4199_v36 = vpack.c.bf16 %v704_v28, %v702_v27  ;;  %v1173_v19 = vld [vmem:[#allocation4 + $0x1c18] sm:$0xff]  ;;  %v1170_v22 = vld [vmem:[#allocation4 + $0x1c00] sm:$0xff] }
 0x1f6   :  { %2687 = vmatprep.mubr.f32.mxu0 %v109_v40  ;;  %v4201_v38 = vpack.c.bf16 %v709_v33, %v707_v32  ;;  %v708_v40 = vld [vmem:[#allocation4 + $0xd90] sm:$0xff]  ;;  %v1234_v27 = vld [vmem:[#allocation4 + $0x1e00] sm:$0xff]  ;;  %v1177_v29 = vld [vmem:[#allocation4 + $0x1c38] sm:$0xff] }
 0x1f7   :  { %4180 = vmatpush1.bf16.msra.mxu1 %v4179_v39  ;;  %v706_v39 = vld [vmem:[#allocation4 + $0xd80] sm:$0xff]  ;;  %v1172_v23 = vld [vmem:[#allocation4 + $0x1c10] sm:$0xff]  ;;  %v1241_v31 = vld [vmem:[#allocation4 + $0x1e38] sm:$0xff] }
 0x1f8   :  { %4628 = vmatpush1.bf16.msra.mxu0 %v4627_v41  ;;  %4182 = vmatprep.subr.bf16.mxu1 %v4181_v42  ;;  %v1154_v41 = vld [vmem:[#allocation4 + $0x1b80] sm:$0xff]  ;;  %v4649_v42 = vpack.c.bf16 %v1157_v35, %v1155_v34  ;;  %v4203_v48 = vpack.c.bf16 %v708_v40, %v706_v39  ;;  %v1236_v28 = vld [vmem:[#allocation4 + $0x1e10] sm:$0xff]  ;;  %v4667_v34 = vpack.c.bf16 %v1172_v23, %v1170_v22  ;;  %v127_v35 = vld [vmem:[#allocation2 + $0x168] sm:$0xff] }
 0x1f9   :  { %4630 = vmatprep.subr.bf16.mxu0 %v4629_v46  ;;  %v1159_v46 = vld [vmem:[#allocation4 + $0x1ba8] sm:$0xff]  ;;  %v4651_v49 = vpack.c.bf16 %v1156_v43, %v1154_v41  ;;  %v94_v32 = vld [vmem:[#allocation2 + $0x60] sm:$0xff]  ;;  %v108_v33 = vld [vmem:[#allocation2 + $0xd0] sm:$0xff] }
 0x1fa   :  { %v1179_v40 = vld [vmem:[#allocation4 + $0x1c48] sm:$0xff]  ;;  %v1240_v43 = vld [vmem:[#allocation4 + $0x1e30] sm:$0xff]  ;;  %v1181_v44 = vld [vmem:[#allocation4 + $0x1c58] sm:$0xff] }
 0x1fb   :  { %4184 = vmatpush1.bf16.msra.mxu1 %v4183_v52  ;;  %v712_v52 = vld [vmem:[#allocation4 + $0xdb0] sm:$0xff]  ;;  %v1183_v56 = vld [vmem:[#allocation4 + $0x1c68] sm:$0xff] }
 0x1fc   :  { %4632 = vmatpush1.bf16.msra.mxu0 %v4631_v53  ;;  %4186 = vmatprep.subr.bf16.mxu1 %v4185_v54  ;;  %v1158_v53 = vld [vmem:[#allocation4 + $0x1ba0] sm:$0xff]  ;;  %v4653_v54 = vpack.c.bf16 %v1161_v47, %v1159_v46  ;;  %v4207_v60 = vpack.c.bf16 %v712_v52, %v710_v51  ;;  %v1245_v46 = vld [vmem:[#allocation4 + $0x1e58] sm:$0xff]  ;;  %v1180_v52 = vld [vmem:[#allocation4 + $0x1c50] sm:$0xff] }
 0x1fd   :  { %4634 = vmatprep.subr.bf16.mxu0 %v4633_v58  ;;  %v1163_v58 = vld [vmem:[#allocation4 + $0x1bc8] sm:$0xff]  ;;  %v4655_v61 = vpack.c.bf16 %v1160_v55, %v1158_v53  ;;  %v126_v47 = vld [vmem:[#allocation2 + $0x160] sm:$0xff]  ;;  %v4673_v55 = vpack.c.bf16 %v1181_v44, %v1179_v40  ;;  %v5321_v57 = vpack.c.bf16 %v1245_v46, %v1243_v45  ;;  %v1184_v4 = vld [vmem:[#allocation4 + $0x1c70] sm:$0xff] }
 0x1fe   :  { %v1178_v51 = vld [vmem:[#allocation4 + $0x1c40] sm:$0xff]  ;;  %v204_v22 = vld [vmem:[#allocation2 + $0x3d0] sm:$0xff] }
 0x1ff   :  { %4188 = vmatpush1.bf16.msra.mxu1 %v4187_v0  ;;  %v716_v0 = vld [vmem:[#allocation4 + $0xdd0] sm:$0xff]  ;;  %v1254_v45 = vld [vmem:[#allocation4 + $0x1ea0] sm:$0xff] }
 0x200   :  { %4636 = vmatpush1.bf16.msra.mxu0 %v4635_v1  ;;  %4190 = vmatprep.subr.bf16.mxu1 %v4189_v2  ;;  %v1162_v1 = vld [vmem:[#allocation4 + $0x1bc0] sm:$0xff]  ;;  %v4657_v2 = vpack.c.bf16 %v1165_v59, %v1163_v58  ;;  %v4211_v8 = vpack.c.bf16 %v716_v0, %v714_v63  ;;  %v1244_v59 = vld [vmem:[#allocation4 + $0x1e50] sm:$0xff]  ;;  %v191_v0 = vld [vmem:[#allocation2 + $0x368] sm:$0xff] }
 0x201   :  { %4638 = vmatprep.subr.bf16.mxu0 %v4637_v6  ;;  %v1167_v6 = vld [vmem:[#allocation4 + $0x1be8] sm:$0xff]  ;;  %v4659_v9 = vpack.c.bf16 %v1164_v3, %v1162_v1  ;;  %v1242_v58 = vld [vmem:[#allocation4 + $0x1e40] sm:$0xff]  ;;  %v173_v1 = vld [vmem:[#allocation2 + $0x2d8] sm:$0xff] }
 0x202   :  { %v158_v63 = vld [vmem:[#allocation2 + $0x260] sm:$0xff]  ;;  %v5324_v5 = vpack.c.bf16 %v1244_v59, %v1242_v58  ;;  %v236_v40 = vld [vmem:[#allocation2 + $0x4d0] sm:$0xff]  ;;  %v209_v59 = vld [vmem:[#allocation2 + $0x3f8] sm:$0xff] }
 0x203   :  { %4192 = vmatpush1.bf16.msra.mxu1 %v4191_v12  ;;  %v720_v12 = vld [vmem:[#allocation4 + $0xdf0] sm:$0xff]  ;;  %v1182_v3 = vld [vmem:[#allocation4 + $0x1c60] sm:$0xff] }
 0x204   :  { %4640 = vmatpush1.bf16.msra.mxu0 %v4639_v13  ;;  %4194 = vmatprep.subr.bf16.mxu1 %v4193_v14  ;;  %v1166_v13 = vld [vmem:[#allocation4 + $0x1be0] sm:$0xff]  ;;  %v4661_v14 = vpack.c.bf16 %v1169_v7, %v1167_v6  ;;  %v4215_v20 = vpack.c.bf16 %v720_v12, %v718_v11  ;;  %v172_v6 = vld [vmem:[#allocation2 + $0x2d0] sm:$0xff]  ;;  %v1189_v12 = vld [vmem:[#allocation4 + $0x1c98] sm:$0xff] }
 0x205   :  { %4642 = vmatprep.subr.bf16.mxu0 %v4641_v18  ;;  %v1171_v18 = vld [vmem:[#allocation4 + $0x1c08] sm:$0xff]  ;;  %v4663_v21 = vpack.c.bf16 %v1168_v15, %v1166_v13  ;;  %v1248_v11 = vld [vmem:[#allocation4 + $0x1e70] sm:$0xff]  ;;  %v190_v15 = vld [vmem:[#allocation2 + $0x360] sm:$0xff] }
 0x206   :  { %v1251_v13 = vld [vmem:[#allocation4 + $0x1e88] sm:$0xff]  ;;  %v1256_v46 = vld [vmem:[#allocation4 + $0x1eb0] sm:$0xff] }
 0x207   :  { %4196 = vmatpush1.bf16.msra.mxu1 %v4195_v24  ;;  %v5310_v24 = vpack.c.bf16 %v1237_v17, %v1235_v16  ;;  %v223_v16 = vld [vmem:[#allocation2 + $0x468] sm:$0xff]  ;;  %v205_v17 = vld [vmem:[#allocation2 + $0x3d8] sm:$0xff]  ;;  %v268_v58 = vld [vmem:[#allocation2 + $0x5d0] sm:$0xff] }
 0x208   :  { %4644 = vmatpush1.bf16.msra.mxu0 %v4643_v25  ;;  %4198 = vmatprep.subr.bf16.mxu1 %v4197_v26  ;;  %v4665_v25 = vpack.c.bf16 %v1173_v19, %v1171_v18  ;;  %v1175_v26 = vld [vmem:[#allocation4 + $0x1c28] sm:$0xff]  ;;  %v4679_v18 = vpack.c.bf16 %v1184_v4, %v1182_v3  ;;  %v1186_v19 = vld [vmem:[#allocation4 + $0x1c80] sm:$0xff]  ;;  %v1265_v3 = vld [vmem:[#allocation4 + $0x1ef8] sm:$0xff] }
 0x209   :  { %4646 = vmatprep.subr.bf16.mxu0 %v4645_v30  ;;  %v1239_v30 = vld [vmem:[#allocation4 + $0x1e28] sm:$0xff]  ;;  %v4669_v39 = vpack.c.bf16 %v1177_v29, %v1175_v26  ;;  %v1193_v29 = vld [vmem:[#allocation4 + $0x1cb8] sm:$0xff] }
 0x20a   :  { %v5315_v41 = vpack.c.bf16 %v1241_v31, %v1239_v30  ;;  %v1255_v30 = vld [vmem:[#allocation4 + $0x1ea8] sm:$0xff]  ;;  %v1257_v31 = vld [vmem:[#allocation4 + $0x1eb8] sm:$0xff] }
 0x20b   :  { %4200 = vmatpush1.bf16.msra.mxu1 %v4199_v36  ;;  %v1174_v36 = vld [vmem:[#allocation4 + $0x1c20] sm:$0xff]  ;;  %v5339_v44 = vpack.c.bf16 %v1257_v31, %v1255_v30  ;;  %v111_v4 = vld [vmem:[#allocation2 + $0xe8] sm:$0xff]  ;;  %v1268_v30 = vld [vmem:[#allocation4 + $0x1f10] sm:$0xff] }
 0x20c   :  { %4648 = vmatpush1.bf16.msra.mxu0 %v4647_v37  ;;  %4202 = vmatprep.subr.bf16.mxu1 %v4201_v38  ;;  %v1176_v37 = vld [vmem:[#allocation4 + $0x1c30] sm:$0xff]  ;;  %v5313_v38 = vpack.c.bf16 %v1236_v28, %v1234_v27  ;;  %v1250_v27 = vld [vmem:[#allocation4 + $0x1e80] sm:$0xff]  ;;  %v1209_v31 = vld [vmem:[#allocation4 + $0x1d38] sm:$0xff] }
 0x20d   :  { %4650 = vmatprep.subr.bf16.mxu0 %v4649_v42  ;;  %v1238_v42 = vld [vmem:[#allocation4 + $0x1e20] sm:$0xff]  ;;  %v1252_v28 = vld [vmem:[#allocation4 + $0x1e90] sm:$0xff] }
 0x20e   :  { %v5318_v53 = vpack.c.bf16 %v1240_v43, %v1238_v42  ;;  %v1195_v43 = vld [vmem:[#allocation4 + $0x1cc8] sm:$0xff] }
 0x20f   :  { %4204 = vmatpush1.bf16.msra.mxu1 %v4203_v48  ;;  %v159_v48 = vld [vmem:[#allocation2 + $0x268] sm:$0xff] }
 0x210   :  { %4652 = vmatpush1.bf16.msra.mxu0 %v4651_v49  ;;  %4206 = vmatprep.subr.bf16.mxu1 %v4205_v50  ;;  %v141_v49 = vld [vmem:[#allocation2 + $0x1d8] sm:$0xff]  ;;  %v4671_v50 = vpack.c.bf16 %v1176_v37, %v1174_v36  ;;  %v1190_v36 = vld [vmem:[#allocation4 + $0x1ca0] sm:$0xff]  ;;  %v1192_v37 = vld [vmem:[#allocation4 + $0x1cb0] sm:$0xff] }
 0x211   :  { %4654 = vmatprep.subr.bf16.mxu0 %v4653_v54  ;;  %v140_v54 = vld [vmem:[#allocation2 + $0x1d0] sm:$0xff] }
 0x213   :  { %4208 = vmatpush1.bf16.msra.mxu1 %v4207_v60  ;;  %v1185_v60 = vld [vmem:[#allocation4 + $0x1c78] sm:$0xff] }
 0x214   :  { %4656 = vmatpush1.bf16.msra.mxu0 %v4655_v61  ;;  %4210 = vmatprep.subr.bf16.mxu1 %v4209_v62  ;;  %v1247_v61 = vld [vmem:[#allocation4 + $0x1e68] sm:$0xff]  ;;  %v1249_v62 = vld [vmem:[#allocation4 + $0x1e78] sm:$0xff]  ;;  %v4677_v7 = vpack.c.bf16 %v1185_v60, %v1183_v56  ;;  %v5342_v56 = vpack.c.bf16 %v1256_v46, %v1254_v45  ;;  %v1270_v45 = vld [vmem:[#allocation4 + $0x1f20] sm:$0xff] }
 0x215   :  { %4658 = vmatprep.subr.bf16.mxu0 %v4657_v2  ;;  %v4675_v2 = vpack.c.bf16 %v1180_v52, %v1178_v51  ;;  %v1194_v51 = vld [vmem:[#allocation4 + $0x1cc0] sm:$0xff]  ;;  %v269_v52 = vld [vmem:[#allocation2 + $0x5d8] sm:$0xff]  ;;  %v1272_v46 = vld [vmem:[#allocation4 + $0x1f30] sm:$0xff] }
 0x217   :  { %4212 = vmatpush1.bf16.msra.mxu1 %v4211_v8  ;;  %v1187_v8 = vld [vmem:[#allocation4 + $0x1c88] sm:$0xff] }
 0x218   :  { %4660 = vmatpush1.bf16.msra.mxu0 %v4659_v9  ;;  %4214 = vmatprep.subr.bf16.mxu1 %v4213_v10  ;;  %v5327_v9 = vpack.c.bf16 %v1249_v62, %v1247_v61  ;;  %v1246_v10 = vld [vmem:[#allocation4 + $0x1e60] sm:$0xff]  ;;  %v4681_v23 = vpack.c.bf16 %v1189_v12, %v1187_v8  ;;  %v1199_v61 = vld [vmem:[#allocation4 + $0x1ce8] sm:$0xff]  ;;  %v1200_v8 = vld [vmem:[#allocation4 + $0x1cf0] sm:$0xff] }
 0x219   :  { %4662 = vmatprep.subr.bf16.mxu0 %v4661_v14  ;;  %v1253_v14 = vld [vmem:[#allocation4 + $0x1e98] sm:$0xff]  ;;  %v1203_v12 = vld [vmem:[#allocation4 + $0x1d08] sm:$0xff] }
 0x21a   :  { %v5333_v26 = vpack.c.bf16 %v1253_v14, %v1251_v13  ;;  %v1262_v14 = vld [vmem:[#allocation4 + $0x1ee0] sm:$0xff] }
 0x21b   :  { %4216 = vmatpush1.bf16.msra.mxu1 %v4215_v20  ;;  %v1188_v20 = vld [vmem:[#allocation4 + $0x1c90] sm:$0xff] }
 0x21c   :  { %4664 = vmatpush1.bf16.msra.mxu0 %v4663_v21  ;;  %4813 = vmatprep.subr.bf16.mxu1 %v5310_v24  ;;  %v5330_v21 = vpack.c.bf16 %v1248_v11, %v1246_v10 }
 0x21d   :  { %4666 = vmatprep.subr.bf16.mxu0 %v4665_v25  ;;  %v1191_v25 = vld [vmem:[#allocation4 + $0x1ca8] sm:$0xff] }
 0x21e   :  { %1981 = vmatmul.mubr.f32.vlgmr.msra.gmra.mrb[0].mxu1 %v94_v32  ;;  %v222_v32 = vld [vmem:[#allocation2 + $0x460] sm:$0xff]  ;;  %v4685_v42 = vpack.c.bf16 %v1193_v29, %v1191_v25 }
 0x21f   :  { %2688 = vmatmul.mubr.f32.vlgmr.msra.gmra.mrb[0].mxu0 %v108_v33  ;;  %1986 = vmatprep.mubr.f32.mxu1 %v127_v35  ;;  %v255_v33 = vld [vmem:[#allocation2 + $0x568] sm:$0xff]  ;;  %v4683_v35 = vpack.c.bf16 %v1188_v20, %v1186_v19  ;;  %v1202_v20 = vld [vmem:[#allocation4 + $0x1d00] sm:$0xff] }
 0x220   :  { %4668 = vmatpush1.bf16.msra.mxu0 %v4667_v34  ;;  %4829 = vmatpush1.bf16.msra.mxu1 %v5313_v38  ;;  %v237_v34 = vld [vmem:[#allocation2 + $0x4d8] sm:$0xff]  ;;  %v1266_v29 = vld [vmem:[#allocation4 + $0x1f00] sm:$0xff] }
 0x221   :  { %4670 = vmatprep.subr.bf16.mxu0 %v4669_v39  ;;  %4814 = vmatprep.subr.bf16.mxu1 %v5315_v41  ;;  %v5336_v39 = vpack.c.bf16 %v1252_v28, %v1250_v27  ;;  %v1207_v27 = vld [vmem:[#allocation4 + $0x1d28] sm:$0xff] }
 0x222   :  { %1987 = vmatmul.mubr.f32.gmra.mrb[2].mxu1 %v126_v47  ;;  %2693 = vmatprep.mubr.f32.mxu0 %v141_v49  ;;  %v1197_v47 = vld [vmem:[#allocation4 + $0x1cd8] sm:$0xff] }
 0x223   :  { %1992 = vmatprep.mubr.f32.mxu1 %v159_v48  ;;  %2694 = vmatmul.mubr.f32.gmra.mrb[2].mxu0 %v140_v54  ;;  %v1259_v48 = vld [vmem:[#allocation4 + $0x1ec8] sm:$0xff]  ;;  %v1261_v49 = vld [vmem:[#allocation4 + $0x1ed8] sm:$0xff]  ;;  %v4687_v54 = vpack.c.bf16 %v1192_v37, %v1190_v36  ;;  %v4689_v60 = vpack.c.bf16 %v1197_v47, %v1195_v43  ;;  %v1208_v36 = vld [vmem:[#allocation4 + $0x1d30] sm:$0xff]  ;;  %v5360_v37 = vpack.c.bf16 %v1268_v30, %v1266_v29 }
 0x224   :  { %4672 = vmatpush1.bf16.msra.mxu0 %v4671_v50  ;;  %4830 = vmatpush1.bf16.msra.mxu1 %v5318_v53  ;;  %v254_v50 = vld [vmem:[#allocation2 + $0x560] sm:$0xff]  ;;  %v5345_v62 = vpack.c.bf16 %v1261_v49, %v1259_v48  ;;  %v1213_v47 = vld [vmem:[#allocation4 + $0x1d58] sm:$0xff]  ;;  %v1275_v48 = vld [vmem:[#allocation4 + $0x1f48] sm:$0xff] }
 0x225   :  { %4674 = vmatprep.subr.bf16.mxu0 %v4673_v55  ;;  %4815 = vmatprep.subr.bf16.mxu1 %v5321_v57  ;;  %v1196_v55 = vld [vmem:[#allocation4 + $0x1cd0] sm:$0xff]  ;;  %v1277_v49 = vld [vmem:[#allocation4 + $0x1f58] sm:$0xff]  ;;  %v1282_v30 = vld [vmem:[#allocation4 + $0x1f80] sm:$0xff] }
 0x226   :  { %1993 = vmatmul.mubr.f32.gmra.mrb[4].mxu1 %v158_v63  ;;  %2699 = vmatprep.mubr.f32.mxu0 %v173_v1  ;;  %v1258_v63 = vld [vmem:[#allocation4 + $0x1ec0] sm:$0xff]  ;;  %v1201_v1 = vld [vmem:[#allocation4 + $0x1cf8] sm:$0xff] }
 0x227   :  { %1998 = vmatprep.mubr.f32.mxu1 %v191_v0  ;;  %2700 = vmatmul.mubr.f32.gmra.mrb[4].mxu0 %v172_v6  ;;  %v1260_v0 = vld [vmem:[#allocation4 + $0x1ed0] sm:$0xff]  ;;  %v4691_v6 = vpack.c.bf16 %v1196_v55, %v1194_v51  ;;  %v4693_v11 = vpack.c.bf16 %v1201_v1, %v1199_v61  ;;  %v1210_v51 = vld [vmem:[#allocation4 + $0x1d40] sm:$0xff]  ;;  %v1281_v1 = vld [vmem:[#allocation4 + $0x1f78] sm:$0xff] }
 0x228   :  { %4676 = vmatpush1.bf16.msra.mxu0 %v4675_v2  ;;  %4831 = vmatpush1.bf16.msra.mxu1 %v5324_v5  ;;  %v1263_v2 = vld [vmem:[#allocation4 + $0x1ee8] sm:$0xff]  ;;  %v5348_v10 = vpack.c.bf16 %v1260_v0, %v1258_v63  ;;  %v1276_v61 = vld [vmem:[#allocation4 + $0x1f50] sm:$0xff]  ;;  %v1217_v63 = vld [vmem:[#allocation4 + $0x1d78] sm:$0xff] }
 0x229   :  { %4678 = vmatprep.subr.bf16.mxu0 %v4677_v7  ;;  %4816 = vmatprep.subr.bf16.mxu1 %v5327_v9  ;;  %v1198_v7 = vld [vmem:[#allocation4 + $0x1ce0] sm:$0xff]  ;;  %v5351_v13 = vpack.c.bf16 %v1265_v3, %v1263_v2  ;;  %v1279_v0 = vld [vmem:[#allocation4 + $0x1f68] sm:$0xff] }
 0x22a   :  { %1999 = vmatmul.mubr.f32.gmra.mrb[6].mxu1 %v190_v15  ;;  %2705 = vmatprep.mubr.f32.mxu0 %v205_v17  ;;  %v1264_v15 = vld [vmem:[#allocation4 + $0x1ef0] sm:$0xff]  ;;  %v1267_v17 = vld [vmem:[#allocation4 + $0x1f08] sm:$0xff]  ;;  %v4695_v19 = vpack.c.bf16 %v1200_v8, %v1198_v7  ;;  %v1214_v3 = vld [vmem:[#allocation4 + $0x1d60] sm:$0xff] }
 0x22b   :  { %2004 = vmatprep.mubr.f32.mxu1 %v223_v16  ;;  %2706 = vmatmul.mubr.f32.gmra.mrb[6].mxu0 %v204_v22  ;;  %v1205_v16 = vld [vmem:[#allocation4 + $0x1d18] sm:$0xff]  ;;  %v1204_v22 = vld [vmem:[#allocation4 + $0x1d10] sm:$0xff]  ;;  %v1219_v8 = vld [vmem:[#allocation4 + $0x1d88] sm:$0xff] }
 0x22c   :  { %4680 = vmatpush1.bf16.msra.mxu0 %v4679_v18  ;;  %4832 = vmatpush1.bf16.msra.mxu1 %v5330_v21  ;;  %v1269_v18 = vld [vmem:[#allocation4 + $0x1f18] sm:$0xff]  ;;  %v4697_v25 = vpack.c.bf16 %v1205_v16, %v1203_v12  ;;  %v1278_v12 = vld [vmem:[#allocation4 + $0x1f60] sm:$0xff]  ;;  %v1283_v16 = vld [vmem:[#allocation4 + $0x1f88] sm:$0xff] }
 0x22d   :  { %4682 = vmatprep.subr.bf16.mxu0 %v4681_v23  ;;  %4817 = vmatprep.subr.bf16.mxu1 %v5333_v26  ;;  %v5354_v23 = vpack.c.bf16 %v1264_v15, %v1262_v14  ;;  %v5357_v28 = vpack.c.bf16 %v1269_v18, %v1267_v17  ;;  %v1280_v14 = vld [vmem:[#allocation4 + $0x1f70] sm:$0xff]  ;;  %v1221_v15 = vld [vmem:[#allocation4 + $0x1d98] sm:$0xff] }
 0x22e   :  { %2005 = vmatmul.mubr.f32.gmra.mrb[8].mxu1 %v222_v32  ;;  %2711 = vmatprep.mubr.f32.mxu0 %v237_v34  ;;  %v1271_v32 = vld [vmem:[#allocation4 + $0x1f28] sm:$0xff]  ;;  %v4699_v34 = vpack.c.bf16 %v1204_v22, %v1202_v20  ;;  %v1285_v17 = vld [vmem:[#allocation4 + $0x1f98] sm:$0xff]  ;;  %v1220_v20 = vld [vmem:[#allocation4 + $0x1d90] sm:$0xff]  ;;  %v5378_v22 = vpack.c.bf16 %v1280_v14, %v1278_v12 }
 0x22f   :  { %2010 = vmatprep.mubr.f32.mxu1 %v255_v33  ;;  %2712 = vmatmul.mubr.f32.gmra.mrb[8].mxu0 %v236_v40  ;;  %v1273_v33 = vld [vmem:[#allocation4 + $0x1f38] sm:$0xff]  ;;  %v4701_v40 = vpack.c.bf16 %v1209_v31, %v1207_v27  ;;  %v1223_v27 = vld [vmem:[#allocation4 + $0x1da8] sm:$0xff]  ;;  %v5381_v29 = vpack.c.bf16 %v1285_v17, %v1283_v16  ;;  %v1284_v31 = vld [vmem:[#allocation4 + $0x1f90] sm:$0xff] }
 0x230   :  { %4684 = vmatpush1.bf16.msra.mxu0 %v4683_v35  ;;  %4833 = vmatpush1.bf16.msra.mxu1 %v5336_v39  ;;  %v1206_v35 = vld [vmem:[#allocation4 + $0x1d20] sm:$0xff]  ;;  %v5363_v43 = vpack.c.bf16 %v1273_v33, %v1271_v32  ;;  %v1225_v32 = vld [vmem:[#allocation4 + $0x1db8] sm:$0xff]  ;;  %v1287_v33 = vld [vmem:[#allocation4 + $0x1fa8] sm:$0xff] }
 0x231   :  { %4686 = vmatprep.subr.bf16.mxu0 %v4685_v42  ;;  %4818 = vmatprep.subr.bf16.mxu1 %v5339_v44  ;;  %v1211_v42 = vld [vmem:[#allocation4 + $0x1d48] sm:$0xff]  ;;  %v1230_v14 = vld [vmem:[#allocation4 + $0x1de0] sm:$0xff]  ;;  %v1232_v17 = vld [vmem:[#allocation4 + $0x1df0] sm:$0xff] }
 0x232   :  { %2011 = vmatmul.mubr.f32.gmra.mrb[10].mxu1 %v254_v50  ;;  %2717 = vmatprep.mubr.f32.mxu0 %v269_v52  ;;  %v4703_v50 = vpack.c.bf16 %v1208_v36, %v1206_v35  ;;  %v1212_v52 = vld [vmem:[#allocation4 + $0x1d50] sm:$0xff]  ;;  %v4705_v55 = vpack.c.bf16 %v1213_v47, %v1211_v42  ;;  %v1222_v36 = vld [vmem:[#allocation4 + $0x1da0] sm:$0xff]  ;;  %v5384_v42 = vpack.c.bf16 %v1284_v31, %v1282_v30 }
 0x233   :  { %2718 = vmatmul.mubr.f32.gmra.mrb[10].mxu0 %v268_v58  ;;  %2907 = vmatprep.mubr.f32.mxu1 %v209_v59  ;;  %v1215_v58 = vld [vmem:[#allocation4 + $0x1d68] sm:$0xff]  ;;  %v5369_v59 = vpack.c.bf16 %v1277_v49, %v1275_v48  ;;  %v4707_v2 = vpack.c.bf16 %v1212_v52, %v1210_v51  ;;  %v1286_v48 = vld [vmem:[#allocation4 + $0x1fa0] sm:$0xff]  ;;  %v1288_v49 = vld [vmem:[#allocation4 + $0x1fb0] sm:$0xff] }
 0x234   :  { %4688 = vmatpush1.bf16.msra.mxu0 %v4687_v54  ;;  %4834 = vmatpush1.bf16.msra.mxu1 %v5342_v56  ;;  %v5366_v54 = vpack.c.bf16 %v1272_v46, %v1270_v45  ;;  %v4709_v7 = vpack.c.bf16 %v1217_v63, %v1215_v58  ;;  %v4717_v45 = vpack.c.bf16 %v1225_v32, %v1223_v27  ;;  %v1227_v46 = vld [vmem:[#allocation4 + $0x1dc8] sm:$0xff]  ;;  %v1293_v52 = vld [vmem:[#allocation4 + $0x1fd8] sm:$0xff]  ;;  %v1226_v58 = vld [vmem:[#allocation4 + $0x1dc0] sm:$0xff] }
 0x235   :  { %4690 = vmatprep.subr.bf16.mxu0 %v4689_v60  ;;  %4819 = vmatprep.subr.bf16.mxu1 %v5345_v62  ;;  %v1274_v60 = vld [vmem:[#allocation4 + $0x1f40] sm:$0xff]  ;;  %v1291_v51 = vld [vmem:[#allocation4 + $0x1fc8] sm:$0xff]  ;;  %v208_v31 = vld [vmem:[#allocation2 + $0x3f0] sm:$0xff] }
 0x236   :  { %2788 = vmatprep.mubr.f32.mxu0 %v111_v4  ;;  %v1216_v4 = vld [vmem:[#allocation4 + $0x1d70] sm:$0xff]  ;;  %v110_v30 = vld [vmem:[#allocation2 + $0xe0] sm:$0xff]  ;;  %v143_v32 = vld [vmem:[#allocation2 + $0x1e8] sm:$0xff] }
 0x237   :  { %v4711_v18 = vpack.c.bf16 %v1216_v4, %v1214_v3  ;;  %v1292_v3 = vld [vmem:[#allocation4 + $0x1fd0] sm:$0xff]  ;;  %v1233_v4 = vld [vmem:[#allocation4 + $0x1df8] sm:$0xff] }
 0x238   :  { %4692 = vmatpush1.bf16.msra.mxu0 %v4691_v6  ;;  %4835 = vmatpush1.bf16.msra.mxu1 %v5348_v10  ;;  %v5372_v6 = vpack.c.bf16 %v1276_v61, %v1274_v60  ;;  %v1228_v60 = vld [vmem:[#allocation4 + $0x1dd0] sm:$0xff]  ;;  %v5390_v61 = vpack.c.bf16 %v1288_v49, %v1286_v48  ;;  %v271_v48 = vld [vmem:[#allocation2 + $0x5e8] sm:$0xff] }
 0x239   :  { %4694 = vmatprep.subr.bf16.mxu0 %v4693_v11  ;;  %4820 = vmatprep.subr.bf16.mxu1 %v5351_v13  ;;  %v5375_v11 = vpack.c.bf16 %v1281_v1, %v1279_v0  ;;  %v1231_v0 = vld [vmem:[#allocation4 + $0x1de8] sm:$0xff]  ;;  %v5393_v1 = vpack.c.bf16 %v1293_v52, %v1291_v51  ;;  %v4723_v12 = vpack.c.bf16 %v1228_v60, %v1226_v58 }
 0x23a   :  { %v4725_v16 = vpack.c.bf16 %v1233_v4, %v1231_v0 }
 0x23c   :  { %4696 = vmatpush1.bf16.msra.mxu0 %v4695_v19  ;;  %4836 = vmatpush1.bf16.msra.mxu1 %v5354_v23  ;;  %v1218_v19 = vld [vmem:[#allocation4 + $0x1d80] sm:$0xff] }
 0x23d   :  { %4698 = vmatprep.subr.bf16.mxu0 %v4697_v25  ;;  %4821 = vmatprep.subr.bf16.mxu1 %v5357_v28  ;;  %v4713_v25 = vpack.c.bf16 %v1221_v15, %v1219_v8  ;;  %v4715_v35 = vpack.c.bf16 %v1220_v20, %v1218_v19  ;;  %v1297_v8 = vld [vmem:[#allocation4 + $0x1ff8] sm:$0xff]  ;;  %v1294_v19 = vld [vmem:[#allocation4 + $0x1fe0] sm:$0xff]  ;;  %v1296_v20 = vld [vmem:[#allocation4 + $0x1ff0] sm:$0xff] }
 0x23e   :  { %v5402_v27 = vpack.c.bf16 %v1296_v20, %v1294_v19 }
 0x240   :  { %4700 = vmatpush1.bf16.msra.mxu0 %v4699_v34  ;;  %4837 = vmatpush1.bf16.msra.mxu1 %v5360_v37  ;;  %v1289_v34 = vld [vmem:[#allocation4 + $0x1fb8] sm:$0xff] }
 0x241   :  { %4702 = vmatprep.subr.bf16.mxu0 %v4701_v40  ;;  %4822 = vmatprep.subr.bf16.mxu1 %v5363_v43  ;;  %v1224_v40 = vld [vmem:[#allocation4 + $0x1db0] sm:$0xff]  ;;  %v5387_v47 = vpack.c.bf16 %v1289_v34, %v1287_v33  ;;  %v241_v33 = vld [vmem:[#allocation2 + $0x4f8] sm:$0xff]  ;;  %v142_v34 = vld [vmem:[#allocation2 + $0x1e0] sm:$0xff] }
 0x244   :  { %4704 = vmatpush1.bf16.msra.mxu0 %v4703_v50  ;;  %4838 = vmatpush1.bf16.msra.mxu1 %v5366_v54  ;;  %v1229_v50 = vld [vmem:[#allocation4 + $0x1dd8] sm:$0xff] }
 0x245   :  { %4706 = vmatprep.subr.bf16.mxu0 %v4705_v55  ;;  %4823 = vmatprep.subr.bf16.mxu1 %v5369_v59  ;;  %v4719_v55 = vpack.c.bf16 %v1224_v40, %v1222_v36  ;;  %v4721_v63 = vpack.c.bf16 %v1229_v50, %v1227_v46  ;;  %v175_v36 = vld [vmem:[#allocation2 + $0x2e8] sm:$0xff]  ;;  %v273_v40 = vld [vmem:[#allocation2 + $0x5f8] sm:$0xff] }
 0x246   :  { %v207_v46 = vld [vmem:[#allocation2 + $0x3e8] sm:$0xff] }
 0x248   :  { %4708 = vmatpush1.bf16.msra.mxu0 %v4707_v2  ;;  %4839 = vmatpush1.bf16.msra.mxu1 %v5372_v6  ;;  %v1290_v2 = vld [vmem:[#allocation4 + $0x1fc0] sm:$0xff] }
 0x249   :  { %4710 = vmatprep.subr.bf16.mxu0 %v4709_v7  ;;  %4824 = vmatprep.subr.bf16.mxu1 %v5375_v11  ;;  %v1295_v7 = vld [vmem:[#allocation4 + $0x1fe8] sm:$0xff]  ;;  %v5396_v15 = vpack.c.bf16 %v1292_v3, %v1290_v2 }
 0x24c   :  { %4712 = vmatpush1.bf16.msra.mxu0 %v4711_v18  ;;  %4840 = vmatpush1.bf16.msra.mxu1 %v5378_v22  ;;  %v5399_v18 = vpack.c.bf16 %v1297_v8, %v1295_v7 }
 0x24d   :  { %4714 = vmatprep.subr.bf16.mxu0 %v4713_v25  ;;  %4825 = vmatprep.subr.bf16.mxu1 %v5381_v29  ;;  %v4727_v25 = vpack.c.bf16 %v1232_v17, %v1230_v14 }
 0x250   :  { %4716 = vmatpush1.bf16.msra.mxu0 %v4715_v35  ;;  %4841 = vmatpush1.bf16.msra.mxu1 %v5384_v42  ;;  %v240_v35 = vld [vmem:[#allocation2 + $0x4f0] sm:$0xff] }
 0x251   :  { %4718 = vmatprep.subr.bf16.mxu0 %v4717_v45  ;;  %4826 = vmatprep.subr.bf16.mxu1 %v5387_v47  ;;  %v272_v45 = vld [vmem:[#allocation2 + $0x5f0] sm:$0xff] }
 0x254   :  { %4720 = vmatpush1.bf16.msra.mxu0 %v4719_v55  ;;  %4842 = vmatpush1.bf16.msra.mxu1 %v5390_v61 }
 0x255   :  { %4722 = vmatprep.subr.bf16.mxu0 %v4721_v63  ;;  %4827 = vmatprep.subr.bf16.mxu1 %v5393_v1 }
 0x258   :  { %4724 = vmatpush1.bf16.msra.mxu0 %v4723_v12  ;;  %4843 = vmatpush1.bf16.msra.mxu1 %v5396_v15 }
 0x259   :  { %4726 = vmatprep.subr.bf16.mxu0 %v4725_v16  ;;  %4828 = vmatprep.subr.bf16.mxu1 %v5399_v18 }
 0x25c   :  { %4728 = vmatpush1.bf16.msra.mxu0 %v4727_v25  ;;  %4844 = vmatpush1.bf16.msra.mxu1 %v5402_v27 }
 0x25d   :  { %4730 = vmatprep.subr.bf16.mxu0 %v5310_v24  ;;  %v174_v24 = vld [vmem:[#allocation2 + $0x2e0] sm:$0xff] }
 0x25f   :  { %2789 = vmatmul.mubr.f32.vlgmr.msra.gmra.mrb[0].mxu0 %v110_v30  ;;  %2908 = vmatmul.mubr.f32.vlgmr.msra.gmra.mrb[12].mxu1 %v208_v31 }
 0x260   :  { %4732 = vmatpush1.bf16.msra.mxu0 %v5313_v38  ;;  %2794 = vmatprep.mubr.f32.mxu0 %v143_v32  ;;  %v206_v38 = vld [vmem:[#allocation2 + $0x3e0] sm:$0xff] }
 0x261   :  { %4734 = vmatprep.subr.bf16.mxu0 %v5315_v41  ;;  %2913 = vmatprep.mubr.f32.mxu1 %v241_v33  ;;  %v239_v41 = vld [vmem:[#allocation2 + $0x4e8] sm:$0xff] }
 0x263   :  { %2795 = vmatmul.mubr.f32.gmra.mrb[2].mxu0 %v142_v34  ;;  %2914 = vmatmul.mubr.f32.gmra.mrb[14].mxu1 %v240_v35 }
 0x264   :  { %4736 = vmatpush1.bf16.msra.mxu0 %v5318_v53  ;;  %2800 = vmatprep.mubr.f32.mxu0 %v175_v36  ;;  %v238_v53 = vld [vmem:[#allocation2 + $0x4e0] sm:$0xff] }
 0x265   :  { %4738 = vmatprep.subr.bf16.mxu0 %v5321_v57  ;;  %2919 = vmatprep.mubr.f32.mxu1 %v273_v40  ;;  %v270_v57 = vld [vmem:[#allocation2 + $0x5e0] sm:$0xff] }
 0x267   :  { %2801 = vmatmul.mubr.f32.gmra.mrb[4].mxu0 %v174_v24  ;;  %2920 = vmatmul.mubr.f32.gmra.mrb[16].mxu1 %v272_v45 }
 0x268   :  { %4740 = vmatpush1.bf16.msra.mxu0 %v5324_v5  ;;  %2806 = vmatprep.mubr.f32.mxu0 %v207_v46  ;;  %v113_v5 = vld [vmem:[#allocation2 + $0xf8] sm:$0xff] }
 0x269   :  { %4742 = vmatprep.subr.bf16.mxu0 %v5327_v9  ;;  %v112_v9 = vld [vmem:[#allocation2 + $0xf0] sm:$0xff] }
 0x26b   :  { %2807 = vmatmul.mubr.f32.gmra.mrb[6].mxu0 %v206_v38 }
 0x26c   :  { %4744 = vmatpush1.bf16.msra.mxu0 %v5330_v21  ;;  %2812 = vmatprep.mubr.f32.mxu0 %v239_v41  ;;  %v145_v21 = vld [vmem:[#allocation2 + $0x1f8] sm:$0xff] }
 0x26d   :  { %4746 = vmatprep.subr.bf16.mxu0 %v5333_v26  ;;  %v144_v26 = vld [vmem:[#allocation2 + $0x1f0] sm:$0xff] }
 0x26f   :  { %2813 = vmatmul.mubr.f32.gmra.mrb[8].mxu0 %v238_v53 }
 0x270   :  { %4748 = vmatpush1.bf16.msra.mxu0 %v5336_v39  ;;  %2818 = vmatprep.mubr.f32.mxu0 %v271_v48  ;;  %v177_v39 = vld [vmem:[#allocation2 + $0x2f8] sm:$0xff] }
 0x271   :  { %4750 = vmatprep.subr.bf16.mxu0 %v5339_v44  ;;  %v176_v44 = vld [vmem:[#allocation2 + $0x2f0] sm:$0xff] }
 0x273   :  { %2819 = vmatmul.mubr.f32.gmra.mrb[10].mxu0 %v270_v57 }
 0x274   :  { %4752 = vmatpush1.bf16.msra.mxu0 %v5342_v56  ;;  %2889 = vmatprep.mubr.f32.mxu0 %v113_v5  ;;  %v1300_v56 = vlaneseq }
 0x275   :  { %4754 = vmatprep.subr.bf16.mxu0 %v5345_v62 }
 0x276   :  { %v5439_v62 = vshrl.u32 %v1300_v56, 7 }
 0x278   :  { %4756 = vmatpush1.bf16.msra.mxu0 %v5348_v10 }
 0x279   :  { %4758 = vmatprep.subr.bf16.mxu0 %v5351_v13 }
 0x27c   :  { %4760 = vmatpush1.bf16.msra.mxu0 %v5354_v23  ;;  %v1302_v23 = vsub.s32 0, %v5439_v62 }
 0x27d   :  { %4762 = vmatprep.subr.bf16.mxu0 %v5357_v28  ;;  %v1298_v28 = vld [vmem:[#allocation6] sm:$0x3] }
 0x280   :  { %4764 = vmatpush1.bf16.msra.mxu0 %v5360_v37  ;;  %v1306_v37 = vsub.s32 1, %v5439_v62 }
 0x281   :  { %4766 = vmatprep.subr.bf16.mxu0 %v5363_v43 }
 0x284   :  { %4768 = vmatpush1.bf16.msra.mxu0 %v5366_v54 }
 0x285   :  { %4770 = vmatprep.subr.bf16.mxu0 %v5369_v59  ;;  %v1303_v59 = vrot.slane %v1298_v28, %v1302_v23 }
 0x288   :  { %4772 = vmatpush1.bf16.msra.mxu0 %v5372_v6  ;;  %v1307_v6 = vrot.slane %v1298_v28, %v1306_v37 }
 0x289   :  { %4774 = vmatprep.subr.bf16.mxu0 %v5375_v11 }
 0x28c   :  { %4776 = vmatpush1.bf16.msra.mxu0 %v5378_v22 }
 0x28d   :  { %4778 = vmatprep.subr.bf16.mxu0 %v5381_v29 }
 0x290   :  { %4780 = vmatpush1.bf16.msra.mxu0 %v5384_v42 }
 0x291   :  { %4782 = vmatprep.subr.bf16.mxu0 %v5387_v47 }
 0x294   :  { %4784 = vmatpush1.bf16.msra.mxu0 %v5390_v61 }
 0x295   :  { %4786 = vmatprep.subr.bf16.mxu0 %v5393_v1 }
 0x298   :  { %4788 = vmatpush1.bf16.msra.mxu0 %v5396_v15 }
 0x299   :  { %4790 = vmatprep.subr.bf16.mxu0 %v5399_v18 }
 0x29c   :  { %4792 = vmatpush1.bf16.msra.mxu0 %v5402_v27 }
 0x29f   :  { %2890 = vmatmul.mubr.f32.vlgmr.msra.gmra.mrb[0].mxu0 %v112_v9 }
 0x2a0   :  { %2895 = vmatprep.mubr.f32.mxu0 %v145_v21 }
 0x2a3   :  { %2896 = vmatmul.mubr.f32.gmra.mrb[2].mxu0 %v144_v26 }
 0x2a4   :  { %2901 = vmatprep.mubr.f32.mxu0 %v177_v39 }
 0x2a7   :  { %2902 = vmatmul.mubr.f32.gmra.mrb[4].mxu0 %v176_v44 }
 0x2f1   :  { %v1982_v10 = vpop.f32.mrb[0].mxu1 }
 0x2f2   :  { %v1984_v13 = vpop.f32.mrb[1].mxu1  ;;  %v4845_v45 = vadd.f32 %v1982_v10, %v1303_v59 }
 0x2f3   :  { %v4847_v46 = vadd.f32 %v1984_v13, %v1307_v6 }
 0x2f5   :  { %v1988_v43 = vpop.f32.mrb[2].mxu1 }
 0x2f6   :  { %v1990_v54 = vpop.f32.mrb[3].mxu1  ;;  %v4849_v57 = vadd.f32 %v1988_v43, %v1303_v59 }
 0x2f7   :  { %v4851_v5 = vadd.f32 %v1990_v54, %v1307_v6 }
 0x2f9   :  { %v1994_v11 = vpop.f32.mrb[4].mxu1 }
 0x2fa   :  { %v4853_v22 = vadd.f32 %v1994_v11, %v1303_v59  ;;  %v1996_v29 = vpop.f32.mrb[5].mxu1 }
 0x2fb   :  { %v4855_v42 = vadd.f32 %v1996_v29, %v1307_v6 }
 0x2fd   :  { %v2000_v47 = vpop.f32.mrb[6].mxu1 }
 0x2fe   :  { %v2002_v49 = vpop.f32.mrb[7].mxu1  ;;  %v4857_v7 = vadd.f32 %v2000_v47, %v1303_v59 }
 0x2ff   :  { %v4860_v50 = vadd.f32 %v2002_v49, %v1307_v6 }
 0x301   :  { %v2006_v51 = vpop.f32.mrb[8].mxu1 }
 0x302   :  { %v2008_v52 = vpop.f32.mrb[9].mxu1  ;;  %v4863_v16 = vadd.f32 %v2006_v51, %v1303_v59 }
 0x303   :  { %v4866_v55 = vadd.f32 %v2008_v52, %v1307_v6 }
 0x305   :  { %v2012_v58 = vpop.f32.mrb[10].mxu1 }
 0x306   :  { %v2014_v60 = vpop.f32.mrb[11].mxu1  ;;  %v4869_v30 = vadd.f32 %v2012_v58, %v1303_v59 }
 0x307   :  { %v4872_v61 = vadd.f32 %v2014_v60, %v1307_v6 }
 0x332   :  { %v2909_v63 = vpop.f32.mrb[12].mxu1 }
 0x333   :  { %v2911_v0 = vpop.f32.mrb[13].mxu1 }
 0x336   :  { %v2915_v1 = vpop.f32.mrb[14].mxu1 }
 0x337   :  { %v2917_v2 = vpop.f32.mrb[15].mxu1 }
 0x33a   :  { %v2921_v3 = vpop.f32.mrb[16].mxu1 }
 0x33b   :  { %v2923_v4 = vpop.f32.mrb[17].mxu1 }
 0x33e   :  { %v2808_v8 = vpop.f32.mrb[6].mxu0 }
 0x33f   :  { %v4858_v12 = vadd.f32 %v4857_v7, %v2808_v8  ;;  %v2810_v14 = vpop.f32.mrb[7].mxu0  ;;  %v5212_v7 = vmov 0.0|0.0   ;;  %v5214_v8 = vmov 0.0  }
 0x340   :  { %v4861_v15 = vadd.f32 %v4860_v50, %v2810_v14  ;;  %4793 = vmatprep.subr.bf16.mxu1 %v5212_v7  ;;  %3703 = vmatprep.mubr.msk.f32.mxu1 %vm5213_vm1, %v5214_v8 }
 0x341   :  { %v4859_v17 = vadd.f32 %v4858_v12, %v2909_v63 }
 0x342   :  { %v5443_v18 = vadd.f32 %v4861_v15, %v2911_v0  ;;  %v2814_v19 = vpop.f32.mrb[8].mxu0 }
 0x343   :  { %v4864_v20 = vadd.f32 %v4863_v16, %v2814_v19  ;;  %v2816_v25 = vpop.f32.mrb[9].mxu0  ;;  %2932 = vadd.xlane.f32.xlu1 %v4859_v17 }
 0x344   :  { %v4867_v27 = vadd.f32 %v4866_v55, %v2816_v25 }
 0x345   :  { %v4865_v31 = vadd.f32 %v4864_v20, %v2915_v1 }
 0x346   :  { %v5445_v32 = vadd.f32 %v4867_v27, %v2917_v2  ;;  %v2820_v33 = vpop.f32.mrb[10].mxu0 }
 0x347   :  { %v4870_v34 = vadd.f32 %v4869_v30, %v2820_v33  ;;  %v2822_v35 = vpop.f32.mrb[11].mxu0  ;;  %2934 = vadd.xlane.f32.xlu1 %v4865_v31 }
 0x348   :  { %v4873_v36 = vadd.f32 %v4872_v61, %v2822_v35 }
 0x349   :  { %v4871_v40 = vadd.f32 %v4870_v34, %v2921_v3 }
 0x34a   :  { %v5447_v24 = vadd.f32 %v4873_v36, %v2923_v4 }
 0x372   :  { %v2891_v38 = vpop.f32.mrb[0].mxu0 }
 0x373   :  { %v4846_v41 = vadd.f32 %v4845_v45, %v2891_v38  ;;  %v2893_v53 = vpop.f32.mrb[1].mxu0 }
 0x374   :  { %v5449_v48 = vadd.f32 %v4847_v46, %v2893_v53  ;;  %v5464_v46 = vld [vmem:[#allocation7] ss:$0 sm:$0xff] }
 0x375   :  { %2926 = vadd.xlane.f32.xlu0 %v4846_v41 }
 0x376   :  { %v2897_v9 = vpop.f32.mrb[2].mxu0 }
 0x377   :  { %v4850_v21 = vadd.f32 %v4849_v57, %v2897_v9  ;;  %v2899_v26 = vpop.f32.mrb[3].mxu0  ;;  %v5467_v9 = vld [vmem:[#allocation9] ss:$0 sm:$0xff] }
 0x378   :  { %v5451_v39 = vadd.f32 %v4851_v5, %v2899_v26 }
 0x379   :  { %2928 = vadd.xlane.f32.xlu0 %v4850_v21 }
 0x37a   :  { %v4797_v44 = vpack.c.bf16 %v5451_v39, %v5449_v48  ;;  %v2903_v23 = vpop.f32.mrb[4].mxu0  ;;  %v3460_v37 = vrot.slane %v5451_v39, 4 }
 0x37b   :  { %v5455_v10 = vadd.f32 %v4853_v22, %v2903_v23  ;;  %v2905_v13 = vpop.f32.mrb[5].mxu0 }
 0x37c   :  { %v4856_v28 = vadd.f32 %v4855_v42, %v2905_v13 }
 0x37d   :  { %2936 = vadd.xlane.f32.xlu0 %v4871_v40 }
 0x37e   :  { %v3461_v43 = vrot.slane %v4856_v28, 4 }
 0x380   :  { %v3462_v54 = vsel %vm3157_vm0, %v3460_v37, %v3461_v43 }
 0x381   :  { %v5459_v59 = vpack.c.bf16 %v3461_v43, %v3462_v54 }
 0x3d0   :  { %v2933_v6 = vpop.xlane.xlu1 %2932 }
 0x3d1   :  { %v2942_v29 = vmul.f32 0.0078125, %v2933_v6 }
 0x3d3   :  { %v2948_v22 = vsub.f32 %v4859_v17, %v2942_v29 }
 0x3d4   :  { %v2935_v49 = vpop.xlane.xlu1 %2934 }
 0x3d5   :  { %v2943_v52 = vmul.f32 0.0078125, %v2935_v49  ;;  %v2954_v1 = vmul.f32 %v2948_v22, %v2948_v22 }
 0x3d7   :  { %v2949_v61 = vsub.f32 %v4865_v31, %v2943_v52 }
 0x3d9   :  { %v2955_v4 = vmul.f32 %v2949_v61, %v2949_v61 }
 0x402   :  { %v2927_v11 = vpop.xlane.xlu0 %2926 }
 0x403   :  { %v2939_v47 = vmul.f32 0.0078125, %v2927_v11 }
 0x405   :  { %v2945_v50 = vsub.f32 %v4846_v41, %v2939_v47 }
 0x406   :  { %v2929_v51 = vpop.xlane.xlu0 %2928 }
 0x407   :  { %v2940_v55 = vmul.f32 0.0078125, %v2929_v51  ;;  %v2951_v42 = vmul.f32 %v2945_v50, %v2945_v50 }
 0x409   :  { %v2946_v58 = vsub.f32 %v4850_v21, %v2940_v55  ;;  %2957 = vadd.xlane.f32.xlu1 %v2951_v42 }
 0x40a   :  { %v2937_v60 = vpop.xlane.xlu0 %2936 }
 0x40b   :  { %v2944_v63 = vmul.f32 0.0078125, %v2937_v60  ;;  %v2952_v0 = vmul.f32 %v2946_v58, %v2946_v58 }
 0x40d   :  { %v2950_v2 = vsub.f32 %v4871_v40, %v2944_v63  ;;  %2959 = vadd.xlane.f32.xlu0 %v2952_v0  ;;  %2963 = vadd.xlane.f32.xlu1 %v2954_v1 }
 0x40f   :  { %v2956_v3 = vmul.f32 %v2950_v2, %v2950_v2 }
 0x411   :  { %2967 = vadd.xlane.f32.xlu1 %v2956_v3  ;;  %2965 = vadd.xlane.f32.xlu0 %v2955_v4 }
 0x496   :  { %v2958_v12 = vpop.xlane.xlu1 %2957 }
 0x497   :  { %v2969_v14 = vmul.f32 0.0078125, %v2958_v12 }
 0x499   :  { %v2975_v15 = vadd.f32 1e-05, %v2969_v14 }
 0x49a   :  { %v2960_v16 = vpop.xlane.xlu0 %2959  ;;  %v2964_v17 = vpop.xlane.xlu1 %2963 }
 0x49b   :  { %5052 = vrsqrt.f32 %v2975_v15  ;;  %v2970_v19 = vmul.f32 0.0078125, %v2960_v16  ;;  %v2972_v20 = vmul.f32 0.0078125, %v2964_v17 }
 0x49d   :  { %v2976_v25 = vadd.f32 1e-05, %v2970_v19  ;;  %v2978_v27 = vadd.f32 1e-05, %v2972_v20 }
 0x49e   :  { %v2966_v30 = vpop.xlane.xlu0 %2965  ;;  %v2968_v31 = vpop.xlane.xlu1 %2967 }
 0x49f   :  { %5054 = vrsqrt.f32 %v2976_v25  ;;  %v2973_v33 = vmul.f32 0.0078125, %v2966_v30  ;;  %v2974_v34 = vmul.f32 0.0078125, %v2968_v31 }
 0x4a0   :  { %5056 = vrsqrt.f32 %v2978_v27 }
 0x4a1   :  { %v2979_v35 = vadd.f32 1e-05, %v2973_v33  ;;  %v2980_v36 = vadd.f32 1e-05, %v2974_v34 }
 0x4a3   :  { %5058 = vrsqrt.f32 %v2979_v35 }
 0x4a4   :  { %5060 = vrsqrt.f32 %v2980_v36 }
 0x4a5   :  { %v5053_v40 = vpop.eup %5052 }
 0x4a6   :  { %v2987_v45 = vmul.f32 %v5053_v40, %v2945_v50 }
 0x4a8   :  { %v3000_v57 = vmul.f32 %v5464_v46, %v2987_v45 }
 0x4a9   :  { %v5055_v38 = vpop.eup %5054 }
 0x4aa   :  { %v5057_v41 = vpop.eup %5056  ;;  %v2988_v53 = vmul.f32 %v5055_v38, %v2946_v58  ;;  %v3013_v23 = vadd.f32 %v5467_v9, %v3000_v57 }
 0x4ab   :  { %v2990_v5 = vmul.f32 %v5057_v41, %v2948_v22 }
 0x4ac   :  { %v3001_v21 = vmul.f32 %v5464_v46, %v2988_v53 }
 0x4ad   :  { %v5059_v26 = vpop.eup %5058  ;;  %v3003_v28 = vmul.f32 %v5464_v46, %v2990_v5 }
 0x4ae   :  { %v5472_v13 = vadd.f32 %v5467_v9, %v3001_v21  ;;  %v2991_v37 = vmul.f32 %v5059_v26, %v2949_v61  ;;  %v5061_v43 = vpop.eup %5060 }
 0x4af   :  { %v3016_v6 = vadd.f32 %v5467_v9, %v3003_v28  ;;  %v2992_v29 = vmul.f32 %v5061_v43, %v2950_v2 }
 0x4b0   :  { %v4794_v54 = vpack.c.bf16 %v5472_v13, %v3013_v23  ;;  %v3004_v11 = vmul.f32 %v5464_v46, %v2991_v37 }
 0x4b1   :  { %v5479_v47 = vmul.f32 0.088388346, %v3016_v6  ;;  %v3005_v51 = vmul.f32 %v5464_v46, %v2992_v29 }
 0x4b2   :  { %4795 = vmatpush3.bf16.xpose.msra.mxu1 %v4794_v54  ;;  %v3017_v50 = vadd.f32 %v5467_v9, %v3004_v11 }
 0x4b3   :  { %4796 = vmatprep.subr.bf16.mxu1 %v5212_v7  ;;  %v3018_v52 = vadd.f32 %v5467_v9, %v3005_v51 }
 0x4b4   :  { %v5496_v22 = vmul.f32 0.088388346, %v3017_v50 }
 0x4b5   :  { %v5503_v55 = vmul.f32 0.088388346, %v3018_v52 }
 0x4b9   :  { %3704 = vmatmul.mubr.f32.vlgmr.msra.gmra.mrb[18].mxu1 %v5479_v47 }
 0x4ba   :  { %4799 = vmatpush3.bf16.msk.msra.mxu1 %vm5482_vm3, %v4797_v44  ;;  %3706 = vmatprep.mubr.msk.f32.mxu1 %vm5213_vm1, %v5214_v8 }
 0x4bb   :  { %4800 = vmatprep.subr.bf16.mxu1 %v5212_v7 }
 0x4bd   :  { %3707 = vmatmul.mubr.f32.gmra.mrb[20].mxu1 %v5496_v22 }
 0x4be   :  { %3709 = vmatprep.mubr.msk.f32.mxu1 %vm5213_vm1, %v5214_v8 }
 0x4c1   :  { %3710 = vmatmul.mubr.f32.gmra.mrb[22].mxu1 %v5503_v55 }
 0x4c2   :  { %3716 = vmatprep.mubr.msk.f32.mxu1 %vm5213_vm1, %v5214_v8 }
 0x58c   :  { %v3099_v48 = vpop.f32.mrb[18].mxu1 }
 0x58d   :  { %v3705_v39 = vpop.f32.mrb[19].mxu1  ;;  %v3114_v44 = vsel %vm3113_vm4, %v3099_v48, -inf }
 0x58e   :  { %3115 = vmax.xlane.f32.xlu0 %v3114_v44 }
 0x590   :  { %v3104_v42 = vpop.f32.mrb[20].mxu1 }
 0x591   :  { %v3708_v58 = vpop.f32.mrb[21].mxu1  ;;  %v3117_v60 = vsel %vm3113_vm4, %v3104_v42, -inf }
 0x592   :  { %3118 = vmax.xlane.f32.xlu1 %v3117_v60  ;;  %v3028_v60 = vadd.s32 1, %v5439_v62 }
 0x594   :  { %v3109_v61 = vpop.f32.mrb[22].mxu1 }
 0x595   :  { %v3711_v63 = vpop.f32.mrb[23].mxu1  ;;  %v3121_v0 = vsel %vm3120_vm5, %v3109_v61, -inf }
 0x596   :  { %3122 = vmax.xlane.f32.xlu0 %v3121_v0  ;;  %v5531_v63 = vand.u32 127, %v1300_v56  ;;  %v3026_v0 = vmul.u32 6, %v5439_v62 }
 0x598   :  { %vm3027_vm7 = vcmp.ge.s32.totalorder %v5531_v63, %v3026_v0  ;;  %vm3332_vm11 = vcmp.eq.s32.totalorder %v5531_v63, 0  ;;  %vm3641_vm12 = vcmp.eq.s32.totalorder %v5531_v63, 1 }
 0x61b   :  { %v3116_v1 = vpop.xlane.xlu0 %3115 }
 0x61c   :  { %v3124_v2 = vsub.f32 %v3099_v48, %v3116_v1  ;;  %v3029_v1 = vmul.u32 6, %v3028_v60 }
 0x61e   :  { %v3127_v3 = vmul.f32 1.442695, %v3124_v2  ;;  %vm3030_vm8 = vcmp.lt.s32.totalorder %v5531_v63, %v3029_v1 }
 0x61f   :  { %v3119_v4 = vpop.xlane.xlu1 %3118  ;;  %vm3031_vm9 = vmand %vm3027_vm7, %vm3030_vm8 }
 0x620   :  { %5062 = vpow2.f32 %v3127_v3  ;;  %v3125_v12 = vsub.f32 %v3104_v42, %v3119_v4 }
 0x622   :  { %v3129_v14 = vmul.f32 1.442695, %v3125_v12 }
 0x623   :  { %v3123_v15 = vpop.xlane.xlu0 %3122 }
 0x624   :  { %5064 = vpow2.f32 %v3129_v14  ;;  %v3126_v16 = vsub.f32 %v3109_v61, %v3123_v15  ;;  %v5540_v15 = vsel %vm3031_vm9, -0.16666667, %v5214_v8 }
 0x626   :  { %v3131_v17 = vmul.f32 1.442695, %v3126_v16 }
 0x628   :  { %5066 = vpow2.f32 %v3131_v17 }
 0x62a   :  { %v5063_v19 = vpop.eup %5062 }
 0x62b   :  { %v3133_v20 = vsel %vm3113_vm4, %v5063_v19, 0.0 }
 0x62c   :  { %3134 = vadd.xlane.f32.xlu1 %v3133_v20 }
 0x62e   :  { %v5065_v25 = vpop.eup %5064 }
 0x62f   :  { %v3136_v27 = vsel %vm3113_vm4, %v5065_v25, 0.0 }
 0x630   :  { %3137 = vadd.xlane.f32.xlu0 %v3136_v27 }
 0x632   :  { %v5067_v30 = vpop.eup %5066 }
 0x633   :  { %v3139_v31 = vsel %vm3120_vm5, %v5067_v30, 0.0 }
 0x634   :  { %3140 = vadd.xlane.f32.xlu1 %v3139_v31  ;;  %2930 = vadd.xlane.f32.xlu0 %v5455_v10 }
 0x6b9   :  { %v3135_v33 = vpop.xlane.xlu1 %3134 }
 0x6ba   :  { %5068 = vrcp.f32 %v3135_v33 }
 0x6bd   :  { %v3138_v34 = vpop.xlane.xlu0 %3137 }
 0x6be   :  { %5070 = vrcp.f32 %v3138_v34 }
 0x6c1   :  { %v2931_v35 = vpop.xlane.xlu0 %2930  ;;  %v3141_v36 = vpop.xlane.xlu1 %3140 }
 0x6c2   :  { %v2941_v40 = vmul.f32 0.0078125, %v2931_v35  ;;  %5072 = vrcp.f32 %v3141_v36 }
 0x6c4   :  { %v5069_v45 = vpop.eup %5068  ;;  %v2947_v38 = vsub.f32 %v5455_v10, %v2941_v40 }
 0x6c5   :  { %v3145_v41 = vmul.f32 %v5069_v45, %v5063_v19 }
 0x6c6   :  { %v2953_v53 = vmul.f32 %v2947_v38, %v2947_v38 }
 0x6c7   :  { %3717 = vmatmul.mubr.msk.f32.vlgmr.msra.gmra.mrb[24].mxu1 %vm3113_vm4, %v3145_v41 }
 0x6c8   :  { %v5071_v57 = vpop.eup %5070  ;;  %2961 = vadd.xlane.f32.xlu1 %v2953_v53  ;;  %3719 = vmatprep.mubr.msk.f32.mxu1 %vm5213_vm1, %v5214_v8 }
 0x6c9   :  { %v3146_v5 = vmul.f32 %v5071_v57, %v5065_v25 }
 0x6cb   :  { %3720 = vmatmul.mubr.msk.f32.gmra.mrb[26].mxu1 %vm3113_vm4, %v3146_v5 }
 0x6cc   :  { %v5073_v21 = vpop.eup %5072  ;;  %3722 = vmatprep.mubr.msk.f32.mxu1 %vm5213_vm1, %v5214_v8 }
 0x6cd   :  { %v3147_v26 = vmul.f32 %v5073_v21, %v5067_v30 }
 0x6cf   :  { %3723 = vmatmul.mubr.msk.f32.gmra.mrb[28].mxu1 %vm3113_vm4, %v3147_v26 }
 0x6d0   :  { %3731 = vmatprep.mubr.msk.f32.mxu1 %vm5213_vm1, %v5214_v8 }
 0x755   :  { %v2962_v39 = vpop.xlane.xlu1 %2961 }
 0x756   :  { %v2971_v44 = vmul.f32 0.0078125, %v2962_v39 }
 0x758   :  { %v2977_v42 = vadd.f32 1e-05, %v2971_v44 }
 0x75a   :  { %5074 = vrsqrt.f32 %v2977_v42 }
 0x764   :  { %v5075_v58 = vpop.eup %5074 }
 0x765   :  { %v2989_v61 = vmul.f32 %v5075_v58, %v2947_v38 }
 0x767   :  { %v3002_v2 = vmul.f32 %v5464_v46, %v2989_v61  ;;  %v3341_v46 = vrot.slane %v5472_v13, 4 }
 0x769   :  { %v3015_v14 = vadd.f32 %v5467_v9, %v3002_v2 }
 0x76b   :  { %v3342_v62 = vrot.slane %v3015_v14, 4 }
 0x76d   :  { %v3343_v9 = vsel %vm3157_vm0, %v3341_v46, %v3342_v62 }
 0x76e   :  { %v4804_v16 = vpack.c.bf16 %v3342_v62, %v3343_v9 }
 0x79a   :  { %v3227_v10 = vpop.f32.mrb[24].mxu1 }
 0x79b   :  { %v3241_v23 = vsub.f32 %v5443_v18, %v3227_v10  ;;  %v3718_v28 = vpop.f32.mrb[25].mxu1 }
 0x79d   :  { %v3244_v37 = vmul.f32 %v3241_v23, %v3241_v23 }
 0x79e   :  { %v3232_v43 = vpop.f32.mrb[26].mxu1 }
 0x79f   :  { %v3242_v54 = vsub.f32 %v5445_v32, %v3232_v43  ;;  %3247 = vadd.xlane.f32.xlu0 %v3244_v37  ;;  %v3721_v6 = vpop.f32.mrb[27].mxu1 }
 0x7a1   :  { %v3245_v11 = vmul.f32 %v3242_v54, %v3242_v54 }
 0x7a2   :  { %v3237_v29 = vpop.f32.mrb[28].mxu1 }
 0x7a3   :  { %v3243_v50 = vsub.f32 %v5447_v24, %v3237_v29  ;;  %3249 = vadd.xlane.f32.xlu1 %v3245_v11  ;;  %v3724_v51 = vpop.f32.mrb[29].mxu1  ;;  %v5216_v29 = vmov 0  }
 0x7a4   :  { %5050 = vset.pattern.permute.xlu0 %v5216_v29  ;;  %5051 = vset.pattern.permute.xlu1 %v5216_v29 }
 0x7a5   :  { %v3246_v52 = vmul.f32 %v3243_v50, %v3243_v50 }
 0x7a7   :  { %v3252_v48 = vsel %vm3251_vm6, %v3246_v52, 0.0 }
 0x7a8   :  { %3253 = vadd.xlane.f32.xlu0 %v3252_v48 }
 0x82c   :  { %v3248_v3 = vpop.xlane.xlu0 %3247 }
 0x830   :  { %v3250_v4 = vpop.xlane.xlu1 %3249 }
 0x831   :  { %v4801_v12 = vpack.c.bf16 %v3250_v4, %v3248_v3 }
 0x833   :  { %4802 = vmatpush3.bf16.msra.mxu1 %v4801_v12 }
 0x834   :  { %3729 = vmatprep.subr.mxu1 %v5214_v8 }
 0x835   :  { %v3254_v56 = vpop.xlane.xlu0 %3253 }
 0x837   :  { %3730 = vmatpush3.msk.msra.mxu1 %vm3251_vm6, %v3254_v56 }
 0x838   :  { %3732 = vmatmul.mubr.msk.f32.vlgmr.msra.gmra.mrb[30].mxu1 %vm3255_vm10, %v5540_v15  ;;  %4803 = vmatprep.subr.bf16.mxu1 %v5212_v7 }
 0x839   :  { %3738 = vmatprep.mubr.msk.f32.mxu1 %vm5213_vm1, %v5214_v8 }
 0x83e   :  { %4805 = vmatpush3.bf16.xpose.msra.mxu1 %v4804_v16 }
 0x83f   :  { %4806 = vmatprep.subr.bf16.mxu1 %v5212_v7 }
 0x845   :  { %3739 = vmatmul.mubr.f32.vlgmr.msra.gmra.mrb[32].mxu1 %v5479_v47 }
 0x846   :  { %4809 = vmatpush3.bf16.msk.msra.mxu1 %vm5482_vm3, %v5459_v59  ;;  %3741 = vmatprep.mubr.msk.f32.mxu1 %vm5213_vm1, %v5214_v8 }
 0x847   :  { %4810 = vmatprep.subr.bf16.mxu1 %v5212_v7 }
 0x849   :  { %3742 = vmatmul.mubr.f32.gmra.mrb[34].mxu1 %v5496_v22 }
 0x84a   :  { %3744 = vmatprep.mubr.msk.f32.mxu1 %vm5213_vm1, %v5214_v8 }
 0x84d   :  { %3745 = vmatmul.mubr.f32.gmra.mrb[36].mxu1 %v5503_v55 }
 0x84e   :  { %3751 = vmatprep.mubr.msk.f32.mxu1 %vm5213_vm1, %v5214_v8 }
 0x90b   :  { %v5564_v13 = vpop.f32.mrb[30].mxu1 }
 0x90c   :  { %v3733_v47 = vpop.f32.mrb[31].mxu1 }
 0x918   :  { %v3412_v49 = vpop.f32.mrb[32].mxu1 }
 0x919   :  { %v3740_v59 = vpop.f32.mrb[33].mxu1  ;;  %v3426_v17 = vsel %vm3113_vm4, %v3412_v49, -inf }
 0x91a   :  { %3427 = vmax.xlane.f32.xlu1 %v3426_v17 }
 0x91c   :  { %v3417_v19 = vpop.f32.mrb[34].mxu1 }
 0x91d   :  { %v3743_v7 = vpop.f32.mrb[35].mxu1  ;;  %v3429_v22 = vsel %vm3113_vm4, %v3417_v19, -inf }
 0x91e   :  { %3430 = vmax.xlane.f32.xlu0 %v3429_v22 }
 0x920   :  { %v3422_v20 = vpop.f32.mrb[36].mxu1 }
 0x921   :  { %v3746_v25 = vpop.f32.mrb[37].mxu1  ;;  %v3432_v55 = vsel %vm3120_vm5, %v3422_v20, -inf }
 0x922   :  { %3433 = vmax.xlane.f32.xlu1 %v3432_v55 }
 0x9a7   :  { %v3428_v27 = vpop.xlane.xlu1 %3427 }
 0x9a8   :  { %v3435_v30 = vsub.f32 %v3412_v49, %v3428_v27 }
 0x9aa   :  { %v3438_v31 = vmul.f32 1.442695, %v3435_v30 }
 0x9ab   :  { %v3431_v33 = vpop.xlane.xlu0 %3430 }
 0x9ac   :  { %5076 = vpow2.f32 %v3438_v31  ;;  %v3436_v34 = vsub.f32 %v3417_v19, %v3431_v33 }
 0x9ae   :  { %v3440_v35 = vmul.f32 1.442695, %v3436_v34 }
 0x9af   :  { %v3434_v36 = vpop.xlane.xlu1 %3433 }
 0x9b0   :  { %5078 = vpow2.f32 %v3440_v35  ;;  %v3437_v40 = vsub.f32 %v3422_v20, %v3434_v36 }
 0x9b2   :  { %v3442_v45 = vmul.f32 1.442695, %v3437_v40 }
 0x9b4   :  { %5080 = vpow2.f32 %v3442_v45 }
 0x9b6   :  { %v5077_v38 = vpop.eup %5076 }
 0x9b7   :  { %v3444_v41 = vsel %vm3113_vm4, %v5077_v38, 0.0 }
 0x9b8   :  { %3445 = vadd.xlane.f32.xlu0 %v3444_v41 }
 0x9ba   :  { %v5079_v53 = vpop.eup %5078 }
 0x9bb   :  { %v3447_v57 = vsel %vm3113_vm4, %v5079_v53, 0.0 }
 0x9bc   :  { %3448 = vadd.xlane.f32.xlu1 %v3447_v57 }
 0x9be   :  { %v5081_v5 = vpop.eup %5080 }
 0x9bf   :  { %v3450_v21 = vsel %vm3120_vm5, %v5081_v5, 0.0 }
 0x9c0   :  { %3451 = vadd.xlane.f32.xlu0 %v3450_v21 }
 0xa45   :  { %v3446_v26 = vpop.xlane.xlu0 %3445 }
 0xa46   :  { %5082 = vrcp.f32 %v3446_v26 }
 0xa49   :  { %v3449_v10 = vpop.xlane.xlu1 %3448 }
 0xa4a   :  { %5084 = vrcp.f32 %v3449_v10 }
 0xa4d   :  { %v3452_v23 = vpop.xlane.xlu0 %3451 }
 0xa4e   :  { %5086 = vrcp.f32 %v3452_v23 }
 0xa50   :  { %v5083_v28 = vpop.eup %5082 }
 0xa51   :  { %v3456_v37 = vmul.f32 %v5083_v28, %v5077_v38 }
 0xa53   :  { %3752 = vmatmul.mubr.msk.f32.vlgmr.msra.gmra.mrb[38].mxu1 %vm3113_vm4, %v3456_v37 }
 0xa54   :  { %v5085_v43 = vpop.eup %5084  ;;  %3754 = vmatprep.mubr.msk.f32.mxu1 %vm5213_vm1, %v5214_v8 }
 0xa55   :  { %v3457_v54 = vmul.f32 %v5085_v43, %v5079_v53 }
 0xa57   :  { %3755 = vmatmul.mubr.msk.f32.gmra.mrb[40].mxu1 %vm3113_vm4, %v3457_v54 }
 0xa58   :  { %v5087_v6 = vpop.eup %5086  ;;  %3757 = vmatprep.mubr.msk.f32.mxu1 %vm5213_vm1, %v5214_v8 }
 0xa59   :  { %v3458_v11 = vmul.f32 %v5087_v6, %v5081_v5 }
 0xa5b   :  { %3758 = vmatmul.mubr.msk.f32.gmra.mrb[42].mxu1 %vm3113_vm4, %v3458_v11 }
 0xa5c   :  { %3766 = vmatprep.mubr.msk.f32.mxu1 %vm5213_vm1, %v5214_v8 }
 0xb26   :  { %v3541_v50 = vpop.f32.mrb[38].mxu1 }
 0xb27   :  { %v3555_v51 = vsub.f32 %v5443_v18, %v3541_v50  ;;  %v3753_v52 = vpop.f32.mrb[39].mxu1 }
 0xb29   :  { %v3558_v48 = vmul.f32 %v3555_v51, %v3555_v51 }
 0xb2a   :  { %v3546_v39 = vpop.f32.mrb[40].mxu1 }
 0xb2b   :  { %v3556_v44 = vsub.f32 %v5445_v32, %v3546_v39  ;;  %3561 = vadd.xlane.f32.xlu1 %v3558_v48  ;;  %v3756_v42 = vpop.f32.mrb[41].mxu1 }
 0xb2d   :  { %v3559_v58 = vmul.f32 %v3556_v44, %v3556_v44 }
 0xb2e   :  { %v3551_v60 = vpop.f32.mrb[42].mxu1 }
 0xb2f   :  { %v3557_v61 = vsub.f32 %v5447_v24, %v3551_v60  ;;  %3563 = vadd.xlane.f32.xlu0 %v3559_v58  ;;  %v3759_v0 = vpop.f32.mrb[43].mxu1 }
 0xb31   :  { %v3560_v1 = vmul.f32 %v3557_v61, %v3557_v61 }
 0xb33   :  { %v3565_v2 = vsel %vm3251_vm6, %v3560_v1, 0.0 }
 0xb34   :  { %3566 = vadd.xlane.f32.xlu1 %v3565_v2 }
 0xb45   :  { %3335 = vperm.xlu0 %5050, %v5564_v13  }
 0xbb8   :  { %v3562_v18 = vpop.xlane.xlu1 %3561 }
 0xbbc   :  { %v3564_v3 = vpop.xlane.xlu0 %3563 }
 0xbbd   :  { %v4811_v4 = vpack.c.bf16 %v3564_v3, %v3562_v18 }
 0xbbf   :  { %4812 = vmatpush3.bf16.msra.mxu1 %v4811_v4 }
 0xbc0   :  { %3764 = vmatprep.subr.mxu1 %v5214_v8 }
 0xbc1   :  { %v3567_v32 = vpop.xlane.xlu1 %3566 }
 0xbc3   :  { %3765 = vmatpush3.msk.msra.mxu1 %vm3251_vm6, %v3567_v32 }
 0xbc4   :  { %3767 = vmatmul.mubr.msk.f32.vlgmr.msra.gmra.mrb[44].mxu1 %vm3255_vm10, %v5540_v15  ;;  %v3336_v14 = vpop.permute.xlu0 %3335 }
 0xbc5   :  { %v3338_v56 = vsel %vm3332_vm11, %v3336_v14, 0.0 }
 0xc97   :  { %v3637_v24 = vpop.f32.mrb[44].mxu1 }
 0xc98   :  { %3644 = vperm.xlu1 %5051, %v3637_v24   ;;  %v3768_v12 = vpop.f32.mrb[45].mxu1 }
 0xd17   :  { %v3645_v62 = vpop.permute.xlu1 %3644 }
 0xd18   :  { %v3647_v46 = vsel %vm3641_vm12, %v3645_v62, %v3338_v56 }
 0xd19   :  { %3649 = vst.msk [vmem:[%s5600_s5] sm:$0x7] %vm3648_vm13, %v3647_v46 }
 0xd1a   :  { %3654 = vsyncpa [#allocation3], 1 }
 0xd1b   :  { %3655 = vsyncpa [#allocation5], 1 }
 0xd1c   :  { %3656 = vsyncpa [#allocation8], 1 }

</bundles_post_ra>
